<compile_context>
chip_gen: v7x
topology: tpu7x:2x2x1
jax: 0.10.0
libtpu: 0.0.40
codegen_flags: <defaults>
</compile_context>

<pallas_src>
import math

import jax
import jax.numpy as jnp
from jax.experimental import pallas as pl
from jax.experimental.pallas import tpu as pltpu


def _make_decoder_kernel(num_heads, d_k, dff_chunk=512, eps=1e-6):
    """Builds the fused decoder-layer kernel for one (batch, query-tile) step."""
    D = num_heads * d_k
    scale = 1.0 / math.sqrt(d_k)

    def layernorm(x, gamma, beta):
        # PyTorch LayerNorm: biased variance over last dim, f32 math.
        mean = jnp.mean(x, axis=-1, keepdims=True)
        xc = x - mean
        var = jnp.mean(xc * xc, axis=-1, keepdims=True)
        return xc * jax.lax.rsqrt(var + eps) * gamma + beta

    def split_heads(t):            # (S, D) -> (H, S, d_k)
        s = t.shape[0]
        return t.reshape(s, num_heads, d_k).transpose(1, 0, 2)

    def merge_heads(t):            # (H, S, d_k) -> (S, D)
        return t.transpose(1, 0, 2).reshape(t.shape[1], D)

    def project_kv(src, w_ref, b_ref):
        # src: (Sk, D) f32 -> K, V projections (Sk, D) bf16 (bias added in f32).
        s = src.astype(jnp.bfloat16)
        k = jnp.dot(s, w_ref[1], preferred_element_type=jnp.float32) + b_ref[1:2, :]
        v = jnp.dot(s, w_ref[2], preferred_element_type=jnp.float32) + b_ref[2:3, :]
        return k.astype(jnp.bfloat16), v.astype(jnp.bfloat16)

    def mha(q_in, kh, vh, bias, w_ref, b_ref):
        # q_in: (TQ, D) f32; kh, vh: (H, Sk, d_k) bf16; bias: additive mask, f32.
        q = jnp.dot(q_in.astype(jnp.bfloat16), w_ref[0],
                    preferred_element_type=jnp.float32) + b_ref[0:1, :]
        qh = split_heads((q * scale).astype(jnp.bfloat16))        # (H, TQ, d_k)
        scores = jnp.einsum('hqd,hkd->hqk', qh, kh,
                            preferred_element_type=jnp.float32)   # (H, TQ, Sk)
        scores = scores + bias[None, :, :]
        scores = scores - jnp.max(scores, axis=-1, keepdims=True)
        p = jnp.exp(scores)
        p = p * pl.reciprocal(jnp.sum(p, axis=-1, keepdims=True), approx=True)
        ctx = jnp.einsum('hqk,hkd->hqd', p.astype(jnp.bfloat16), vh,
                         preferred_element_type=jnp.float32)      # (H, TQ, d_k)
        cat = merge_heads(ctx)                                    # (TQ, D) f32
        return jnp.dot(cat.astype(jnp.bfloat16), w_ref[3],
                       preferred_element_type=jnp.float32) + b_ref[3:4, :]

    def kernel(xq_ref, xf_ref, mem_ref, pad_ref,
               sw_ref, sb_ref, cw_ref, cb_ref,
               w1_ref, b1_ref, w2_ref, b2_ref,
               g_ref, be_ref, o_ref,
               ks_ref, vs_ref, kc_ref, vc_ref):
        t = pl.program_id(1)
        tq = xq_ref.shape[1]
        S = xf_ref.shape[1]
        Sm = mem_ref.shape[1]

        # K/V projections are shared by all query tiles of a batch element:
        # compute once per batch element, keep in VMEM scratch.
        @pl.when(t == 0)
        def _():
            k, v = project_kv(xf_ref[0], sw_ref, sb_ref)
            ks_ref[...] = k
            vs_ref[...] = v
            k, v = project_kv(mem_ref[0], cw_ref, cb_ref)
            kc_ref[...] = k
            vc_ref[...] = v

        xq = xq_ref[0]                                            # (TQ, D) f32

        # --- self attention (causal mask generated in-kernel) + residual + LN1 ---
        q_off = t * tq
        row = jax.lax.broadcasted_iota(jnp.int32, (tq, S), 0) + q_off
        col = jax.lax.broadcasted_iota(jnp.int32, (tq, S), 1)
        causal_bias = jnp.where(col > row, -1.0e9, 0.0).astype(jnp.float32)
        attn = mha(xq, split_heads(ks_ref[...]), split_heads(vs_ref[...]),
                   causal_bias, sw_ref, sb_ref)
        x1 = layernorm(xq + attn, g_ref[0:1, :], be_ref[0:1, :])

        # --- cross attention (row-constant padding mask) + residual + LN2 ---
        pad_bias = pad_ref[0] * (-1.0e9)                          # (1, Sm) f32
        src = mha(x1, split_heads(kc_ref[...]), split_heads(vc_ref[...]),
                  pad_bias, cw_ref, cb_ref)
        x2 = layernorm(x1 + src, g_ref[1:2, :], be_ref[1:2, :])

        # --- positionwise FFN (chunked along dff) + residual + LN3 ---
        x2b = x2.astype(jnp.bfloat16)
        dff = w1_ref.shape[1]
        ck = min(dff_chunk, dff)

        def ffn_chunk(c0, c1):
            h = jnp.dot(x2b, w1_ref[:, c0:c1],
                        preferred_element_type=jnp.float32) + b1_ref[0:1, c0:c1]
            h = jnp.maximum(h, 0.0)
            return jnp.dot(h.astype(jnp.bfloat16), w2_ref[c0:c1, :],
                           preferred_element_type=jnp.float32)

        bounds = list(range(0, dff, ck)) + [dff]
        ffn = ffn_chunk(bounds[0], bounds[1])
        for i in range(1, len(bounds) - 1):
            ffn = ffn + ffn_chunk(bounds[i], bounds[i + 1])
        ffn = ffn + b2_ref[0:1, :]

        x3 = layernorm(x2 + ffn, g_ref[2:3, :], be_ref[2:3, :])
        o_ref[0] = x3

    return kernel


def decoder_layer(x, memory, trg_padding_mask, params, num_heads, q_tile=None):
    """Pallas-backed DecoderLayer forward.

    x:                (B, S, D)   float32
    memory:           (B, Sm, D)  float32
    trg_padding_mask: (B, Sm) or (B, 1, Sm) float32, 1.0 = masked (row-constant).
    The causal look-ahead mask is generated in-kernel.
    """
    B, S, D = x.shape
    Sm = memory.shape[1]
    assert D % num_heads == 0
    d_k = D // num_heads
    dff = params["ffn_w1"].shape[1]

    if q_tile is None:
        q_tile = 128 if S % 128 == 0 else S
    assert S % q_tile == 0 and (q_tile % 8 == 0 or q_tile == S)
    n_q = S // q_tile

    pad = trg_padding_mask
    if pad.ndim == 2:
        pad = pad[:, None, :]
    pad = pad[:, :1, :].astype(jnp.float32)          # (B, 1, Sm) row-constant

    bf16 = lambda a: a.astype(jnp.bfloat16)
    f32 = lambda a: a.astype(jnp.float32)

    kernel = _make_decoder_kernel(num_heads, d_k)

    const = lambda shape: pl.BlockSpec(shape, lambda b, t: (0,) * len(shape))

    grid_spec = pltpu.PrefetchScalarGridSpec(
        num_scalar_prefetch=0,
        grid=(B, n_q),
        in_specs=[
            pl.BlockSpec((1, q_tile, D), lambda b, t: (b, t, 0)),   # x (query tile)
            pl.BlockSpec((1, S, D), lambda b, t: (b, 0, 0)),        # x (full, self K/V)
            pl.BlockSpec((1, Sm, D), lambda b, t: (b, 0, 0)),       # memory (cross K/V)
            pl.BlockSpec((1, 1, Sm), lambda b, t: (b, 0, 0)),       # padding mask
            const((4, D, D)), const((4, D)),                        # self-attn W, b
            const((4, D, D)), const((4, D)),                        # cross-attn W, b
            const((D, dff)), const((1, dff)),                       # ffn w1, b1
            const((dff, D)), const((1, D)),                         # ffn w2, b2
            const((3, D)), const((3, D)),                           # LN gamma, beta
        ],
        out_specs=pl.BlockSpec((1, q_tile, D), lambda b, t: (b, t, 0)),
        scratch_shapes=[
            pltpu.VMEM((S, D), jnp.bfloat16),    # self-attn K
            pltpu.VMEM((S, D), jnp.bfloat16),    # self-attn V
            pltpu.VMEM((Sm, D), jnp.bfloat16),   # cross-attn K
            pltpu.VMEM((Sm, D), jnp.bfloat16),   # cross-attn V
        ],
    )

    return pl.pallas_call(
        kernel,
        out_shape=jax.ShapeDtypeStruct((B, S, D), jnp.float32),
        grid_spec=grid_spec,
        compiler_params=pltpu.CompilerParams(
            dimension_semantics=("parallel", "arbitrary"),
            vmem_limit_bytes=48 * 1024 * 1024),
    )(f32(x), f32(x), f32(memory), pad,
      bf16(params["self_w"]), f32(params["self_b"]),
      bf16(params["src_w"]), f32(params["src_b"]),
      bf16(params["ffn_w1"]), f32(params["ffn_b1"]),
      bf16(params["ffn_w2"]), f32(params["ffn_b2"]),
      f32(params["ln_gamma"]), f32(params["ln_beta"]))


# -------------------- pure-JAX reference (for verification) --------------------
def _ref_layernorm(x, g, b, eps=1e-6):
    mean = jnp.mean(x, axis=-1, keepdims=True)
    var = jnp.mean((x - mean) ** 2, axis=-1, keepdims=True)
    return (x - mean) / jnp.sqrt(var + eps) * g + b


def _ref_mha(q_in, k_in, v_in, mask, w, b, num_heads):
    B, Sq, D = q_in.shape
    d_k = D // num_heads

    def proj(t, wi, bi):
        y = jnp.einsum("bsd,de->bse", t, wi) + bi
        return y.reshape(B, -1, num_heads, d_k).transpose(0, 2, 1, 3)

    q = proj(q_in, w[0], b[0])
    k = proj(k_in, w[1], b[1])
    v = proj(v_in, w[2], b[2])
    scores = jnp.einsum("bhqd,bhkd->bhqk", q, k) / math.sqrt(d_k)
    scores = scores + mask[:, None, :, :] * (-1.0e9)
    p = jax.nn.softmax(scores, axis=-1)
    out = jnp.einsum("bhqk,bhkd->bhqd", p, v)
    out = out.transpose(0, 2, 1, 3).reshape(B, Sq, D)
    return jnp.einsum("bsd,de->bse", out, w[3]) + b[3]


def _ref_decoder_layer(x, memory, la, pad, params, num_heads):
    a = _ref_mha(x, x, x, la, params["self_w"], params["self_b"], num_heads)
    x1 = _ref_layernorm(x + a, params["ln_gamma"][0], params["ln_beta"][0])
    s = _ref_mha(x1, memory, memory, pad, params["src_w"], params["src_b"], num_heads)
    x2 = _ref_layernorm(x1 + s, params["ln_gamma"][1], params["ln_beta"][1])
    h = jnp.maximum(jnp.einsum("bsd,df->bsf", x2, params["ffn_w1"]) + params["ffn_b1"][0], 0.0)
    f = jnp.einsum("bsf,fd->bsd", h, params["ffn_w2"]) + params["ffn_b2"][0]
    return _ref_layernorm(x2 + f, params["ln_gamma"][2], params["ln_beta"][2])


# -------------------------------- driver --------------------------------
if __name__ == "__main__":
    # Small but lane-dense shapes: D multiple of 128, S multiple of 8.
    B, S, Sm = 2, 16, 16
    D, H, DFF = 128, 4, 256
    Q_TILE = 8

    key = jax.random.PRNGKey(0)
    ks = jax.random.split(key, 16)

    def init(k, shape, fan_in):
        bound = 1.0 / math.sqrt(fan_in)
        return jax.random.uniform(k, shape, jnp.float32, -bound, bound)

    params = {
        "self_w": init(ks[0], (4, D, D), D),
        "self_b": init(ks[1], (4, D), D),
        "src_w": init(ks[2], (4, D, D), D),
        "src_b": init(ks[3], (4, D), D),
        "ffn_w1": init(ks[4], (D, DFF), D),
        "ffn_b1": init(ks[5], (1, DFF), D),
        "ffn_w2": init(ks[6], (DFF, D), DFF),
        "ffn_b2": init(ks[7], (1, D), DFF),
        "ln_gamma": jnp.ones((3, D), jnp.float32),
        "ln_beta": jnp.zeros((3, D), jnp.float32),
    }

    x = jax.random.normal(ks[8], (B, S, D), jnp.float32)
    memory = jax.random.normal(ks[9], (B, Sm, D), jnp.float32)
    # row-constant padding mask: mask out the last two memory positions of batch 1
    pad_row = jnp.zeros((B, 1, Sm), jnp.float32).at[1, 0, -2:].set(1.0)

    out = decoder_layer(x, memory, pad_row, params, num_heads=H, q_tile=Q_TILE)
    out = jax.block_until_ready(out)

    # reference uses the equivalent dense masks
    look_ahead = jnp.broadcast_to(jnp.triu(jnp.ones((S, S), jnp.float32), k=1), (B, S, S))
    pad_full = jnp.broadcast_to(pad_row, (B, S, Sm))
    ref = _ref_decoder_layer(x, memory, look_ahead, pad_full, params, num_heads=H)

    assert out.shape == (B, S, D)
    # bf16 MXU matmuls (f32 accumulation) => loosened tolerance vs f32 reference
    assert jnp.allclose(out, ref, atol=5e-2, rtol=5e-2), "mismatch vs reference"

    print("KERNEL_OK")
</pallas_src>

<mosaic_0001>
module attributes {stable_mosaic.version = 11 : i64} {
  func.func @kernel(%arg0: i32, %arg1: i32, %arg2: memref<1x8x128xf32, #tpu.memory_space<vmem>>, %arg3: memref<1x16x128xf32, #tpu.memory_space<vmem>>, %arg4: memref<1x16x128xf32, #tpu.memory_space<vmem>>, %arg5: memref<1x1x16xf32, #tpu.memory_space<vmem>>, %arg6: memref<4x128x128xbf16, #tpu.memory_space<vmem>>, %arg7: memref<4x128xf32, #tpu.memory_space<vmem>>, %arg8: memref<4x128x128xbf16, #tpu.memory_space<vmem>>, %arg9: memref<4x128xf32, #tpu.memory_space<vmem>>, %arg10: memref<128x256xbf16, #tpu.memory_space<vmem>>, %arg11: memref<1x256xf32, #tpu.memory_space<vmem>>, %arg12: memref<256x128xbf16, #tpu.memory_space<vmem>>, %arg13: memref<1x128xf32, #tpu.memory_space<vmem>>, %arg14: memref<3x128xf32, #tpu.memory_space<vmem>>, %arg15: memref<3x128xf32, #tpu.memory_space<vmem>>, %arg16: memref<1x8x128xf32, #tpu.memory_space<vmem>>, %arg17: memref<16x128xbf16, #tpu.memory_space<vmem>>, %arg18: memref<16x128xbf16, #tpu.memory_space<vmem>>, %arg19: memref<16x128xbf16, #tpu.memory_space<vmem>>, %arg20: memref<16x128xbf16, #tpu.memory_space<vmem>>) attributes {dimension_semantics = [#tpu.dimension_semantics<parallel>, #tpu.dimension_semantics<arbitrary>], iteration_bounds = array<i64: 2, 2>, scalar_prefetch = 0 : i64, scratch_operands = 4 : i64, tpu.core_type = #tpu.core_type<tc>, window_params = [{transform_indices = @transform_0, window_bounds = array<i64: 1, 8, 128>}, {transform_indices = @transform_1, window_bounds = array<i64: 1, 16, 128>}, {transform_indices = @transform_2, window_bounds = array<i64: 1, 16, 128>}, {transform_indices = @transform_3, window_bounds = array<i64: 1, 1, 16>}, {pipeline_mode = #tpu.pipeline_mode<synchronous>, transform_indices = @transform_4, window_bounds = array<i64: 4, 128, 128>}, {pipeline_mode = #tpu.pipeline_mode<synchronous>, transform_indices = @transform_5, window_bounds = array<i64: 4, 128>}, {pipeline_mode = #tpu.pipeline_mode<synchronous>, transform_indices = @transform_6, window_bounds = array<i64: 4, 128, 128>}, {pipeline_mode = #tpu.pipeline_mode<synchronous>, transform_indices = @transform_7, window_bounds = array<i64: 4, 128>}, {pipeline_mode = #tpu.pipeline_mode<synchronous>, transform_indices = @transform_8, window_bounds = array<i64: 128, 256>}, {pipeline_mode = #tpu.pipeline_mode<synchronous>, transform_indices = @transform_9, window_bounds = array<i64: 1, 256>}, {pipeline_mode = #tpu.pipeline_mode<synchronous>, transform_indices = @transform_10, window_bounds = array<i64: 256, 128>}, {pipeline_mode = #tpu.pipeline_mode<synchronous>, transform_indices = @transform_11, window_bounds = array<i64: 1, 128>}, {pipeline_mode = #tpu.pipeline_mode<synchronous>, transform_indices = @transform_12, window_bounds = array<i64: 3, 128>}, {pipeline_mode = #tpu.pipeline_mode<synchronous>, transform_indices = @transform_13, window_bounds = array<i64: 3, 128>}, {transform_indices = @transform_14, window_bounds = array<i64: 1, 8, 128>}]} {
    %c0_i32 = arith.constant 0 : i32
    %0 = arith.cmpi eq, %arg1, %c0_i32 : i32
    %1 = arith.extui %0 : i1 to i32
    %c0_i32_0 = arith.constant 0 : i32
    %2 = arith.cmpi ne, %1, %c0_i32_0 : i32
    scf.if %2 {
      %c0_88 = arith.constant 0 : index
      %c0_89 = arith.constant 0 : index
      %c0_90 = arith.constant 0 : index
      %190 = vector.load %arg3[%c0_88, %c0_89, %c0_90] : memref<1x16x128xf32, #tpu.memory_space<vmem>>, vector<1x16x128xf32>
      %191 = vector.shape_cast %190 : vector<1x16x128xf32> to vector<16x128xf32>
      %192 = arith.truncf %191 : vector<16x128xf32> to vector<16x128xbf16>
      %c1_91 = arith.constant 1 : index
      %c0_92 = arith.constant 0 : index
      %c0_93 = arith.constant 0 : index
      %193 = vector.load %arg6[%c1_91, %c0_92, %c0_93] : memref<4x128x128xbf16, #tpu.memory_space<vmem>>, vector<1x128x128xbf16>
      %194 = vector.shape_cast %193 : vector<1x128x128xbf16> to vector<128x128xbf16>
      %cst_94 = arith.constant dense<0.000000e+00> : vector<16x128xf32>
      %195 = tpu.matmul %192, %194, %cst_94 {dimension_numbers = #tpu.dot_dimension_numbers<[1], [0], [0], [1], [0, 0, 1, 1], [], []>} : vector<16x128xbf16>, vector<128x128xbf16>, vector<16x128xf32> -> vector<16x128xf32>
      %c1_95 = arith.constant 1 : index
      %c0_96 = arith.constant 0 : index
      %196 = vector.load %arg7[%c1_95, %c0_96] : memref<4x128xf32, #tpu.memory_space<vmem>>, vector<1x128xf32>
      %197 = vector.broadcast %196 : vector<1x128xf32> to vector<16x128xf32>
      %198 = arith.addf %195, %197 : vector<16x128xf32>
      %c2_97 = arith.constant 2 : index
      %c0_98 = arith.constant 0 : index
      %c0_99 = arith.constant 0 : index
      %199 = vector.load %arg6[%c2_97, %c0_98, %c0_99] : memref<4x128x128xbf16, #tpu.memory_space<vmem>>, vector<1x128x128xbf16>
      %200 = vector.shape_cast %199 : vector<1x128x128xbf16> to vector<128x128xbf16>
      %cst_100 = arith.constant dense<0.000000e+00> : vector<16x128xf32>
      %201 = tpu.matmul %192, %200, %cst_100 {dimension_numbers = #tpu.dot_dimension_numbers<[1], [0], [0], [1], [0, 0, 1, 1], [], []>} : vector<16x128xbf16>, vector<128x128xbf16>, vector<16x128xf32> -> vector<16x128xf32>
      %c2_101 = arith.constant 2 : index
      %c0_102 = arith.constant 0 : index
      %202 = vector.load %arg7[%c2_101, %c0_102] : memref<4x128xf32, #tpu.memory_space<vmem>>, vector<1x128xf32>
      %203 = vector.broadcast %202 : vector<1x128xf32> to vector<16x128xf32>
      %204 = arith.addf %201, %203 : vector<16x128xf32>
      %205 = arith.truncf %198 : vector<16x128xf32> to vector<16x128xbf16>
      %206 = arith.truncf %204 : vector<16x128xf32> to vector<16x128xbf16>
      %c0_103 = arith.constant 0 : index
      %c0_104 = arith.constant 0 : index
      %207 = vector.load %arg17[%c0_103, %c0_104] : memref<16x128xbf16, #tpu.memory_space<vmem>>, vector<16x128xbf16>
      tpu.vector_store %arg17[%c0_103, %c0_104], %205 {strides = array<i32>} : memref<16x128xbf16, #tpu.memory_space<vmem>>, vector<16x128xbf16>,
      %c0_105 = arith.constant 0 : index
      %c0_106 = arith.constant 0 : index
      %208 = vector.load %arg18[%c0_105, %c0_106] : memref<16x128xbf16, #tpu.memory_space<vmem>>, vector<16x128xbf16>
      tpu.vector_store %arg18[%c0_105, %c0_106], %206 {strides = array<i32>} : memref<16x128xbf16, #tpu.memory_space<vmem>>, vector<16x128xbf16>,
      %c0_107 = arith.constant 0 : index
      %c0_108 = arith.constant 0 : index
      %c0_109 = arith.constant 0 : index
      %209 = vector.load %arg4[%c0_107, %c0_108, %c0_109] : memref<1x16x128xf32, #tpu.memory_space<vmem>>, vector<1x16x128xf32>
      %210 = vector.shape_cast %209 : vector<1x16x128xf32> to vector<16x128xf32>
      %211 = arith.truncf %210 : vector<16x128xf32> to vector<16x128xbf16>
      %c1_110 = arith.constant 1 : index
      %c0_111 = arith.constant 0 : index
      %c0_112 = arith.constant 0 : index
      %212 = vector.load %arg8[%c1_110, %c0_111, %c0_112] : memref<4x128x128xbf16, #tpu.memory_space<vmem>>, vector<1x128x128xbf16>
      %213 = vector.shape_cast %212 : vector<1x128x128xbf16> to vector<128x128xbf16>
      %cst_113 = arith.constant dense<0.000000e+00> : vector<16x128xf32>
      %214 = tpu.matmul %211, %213, %cst_113 {dimension_numbers = #tpu.dot_dimension_numbers<[1], [0], [0], [1], [0, 0, 1, 1], [], []>} : vector<16x128xbf16>, vector<128x128xbf16>, vector<16x128xf32> -> vector<16x128xf32>
      %c1_114 = arith.constant 1 : index
      %c0_115 = arith.constant 0 : index
      %215 = vector.load %arg9[%c1_114, %c0_115] : memref<4x128xf32, #tpu.memory_space<vmem>>, vector<1x128xf32>
      %216 = vector.broadcast %215 : vector<1x128xf32> to vector<16x128xf32>
      %217 = arith.addf %214, %216 : vector<16x128xf32>
      %c2_116 = arith.constant 2 : index
      %c0_117 = arith.constant 0 : index
      %c0_118 = arith.constant 0 : index
      %218 = vector.load %arg8[%c2_116, %c0_117, %c0_118] : memref<4x128x128xbf16, #tpu.memory_space<vmem>>, vector<1x128x128xbf16>
      %219 = vector.shape_cast %218 : vector<1x128x128xbf16> to vector<128x128xbf16>
      %cst_119 = arith.constant dense<0.000000e+00> : vector<16x128xf32>
      %220 = tpu.matmul %211, %219, %cst_119 {dimension_numbers = #tpu.dot_dimension_numbers<[1], [0], [0], [1], [0, 0, 1, 1], [], []>} : vector<16x128xbf16>, vector<128x128xbf16>, vector<16x128xf32> -> vector<16x128xf32>
      %c2_120 = arith.constant 2 : index
      %c0_121 = arith.constant 0 : index
      %221 = vector.load %arg9[%c2_120, %c0_121] : memref<4x128xf32, #tpu.memory_space<vmem>>, vector<1x128xf32>
      %222 = vector.broadcast %221 : vector<1x128xf32> to vector<16x128xf32>
      %223 = arith.addf %220, %222 : vector<16x128xf32>
      %224 = arith.truncf %217 : vector<16x128xf32> to vector<16x128xbf16>
      %225 = arith.truncf %223 : vector<16x128xf32> to vector<16x128xbf16>
      %c0_122 = arith.constant 0 : index
      %c0_123 = arith.constant 0 : index
      %226 = vector.load %arg19[%c0_122, %c0_123] : memref<16x128xbf16, #tpu.memory_space<vmem>>, vector<16x128xbf16>
      tpu.vector_store %arg19[%c0_122, %c0_123], %224 {strides = array<i32>} : memref<16x128xbf16, #tpu.memory_space<vmem>>, vector<16x128xbf16>,
      %c0_124 = arith.constant 0 : index
      %c0_125 = arith.constant 0 : index
      %227 = vector.load %arg20[%c0_124, %c0_125] : memref<16x128xbf16, #tpu.memory_space<vmem>>, vector<16x128xbf16>
      tpu.vector_store %arg20[%c0_124, %c0_125], %225 {strides = array<i32>} : memref<16x128xbf16, #tpu.memory_space<vmem>>, vector<16x128xbf16>,
    } else {
    }
    %c0 = arith.constant 0 : index
    %c0_1 = arith.constant 0 : index
    %c0_2 = arith.constant 0 : index
    %3 = vector.load %arg2[%c0, %c0_1, %c0_2] : memref<1x8x128xf32, #tpu.memory_space<vmem>>, vector<1x8x128xf32>
    %4 = vector.shape_cast %3 : vector<1x8x128xf32> to vector<8x128xf32>
    %c8_i32 = arith.constant 8 : i32
    %5 = arith.muli %arg1, %c8_i32 : i32
    %6 = tpu.iota {dimensions = array<i32: 0>} : vector<8x16xi32>
    %7 = vector.broadcast %5 : i32 to vector<8x16xi32>
    %8 = arith.addi %6, %7 : vector<8x16xi32>
    %9 = tpu.iota {dimensions = array<i32: 1>} : vector<8x16xi32>
    %10 = arith.cmpi sgt, %9, %8 : vector<8x16xi32>
    %cst = arith.constant -1.000000e+09 : f32
    %cst_3 = arith.constant 0.000000e+00 : f32
    %11 = vector.broadcast %cst : f32 to vector<8x16xf32>
    %12 = vector.broadcast %cst_3 : f32 to vector<8x16xf32>
    %13 = arith.select %10, %11, %12 : vector<8x16xi1>, vector<8x16xf32>
    %c0_4 = arith.constant 0 : index
    %c0_5 = arith.constant 0 : index
    %14 = vector.load %arg17[%c0_4, %c0_5] : memref<16x128xbf16, #tpu.memory_space<vmem>>, vector<16x128xbf16>
    %15 = vector.shape_cast %14 : vector<16x128xbf16> to vector<16x4x32xbf16>
    %16 = tpu.transpose %15, [1, 0, 2] : vector<16x4x32xbf16> -> vector<4x16x32xbf16>
    %c0_6 = arith.constant 0 : index
    %c0_7 = arith.constant 0 : index
    %17 = vector.load %arg18[%c0_6, %c0_7] : memref<16x128xbf16, #tpu.memory_space<vmem>>, vector<16x128xbf16>
    %18 = vector.shape_cast %17 : vector<16x128xbf16> to vector<16x4x32xbf16>
    %19 = tpu.transpose %18, [1, 0, 2] : vector<16x4x32xbf16> -> vector<4x16x32xbf16>
    %20 = arith.truncf %4 : vector<8x128xf32> to vector<8x128xbf16>
    %c0_8 = arith.constant 0 : index
    %c0_9 = arith.constant 0 : index
    %c0_10 = arith.constant 0 : index
    %21 = vector.load %arg6[%c0_8, %c0_9, %c0_10] : memref<4x128x128xbf16, #tpu.memory_space<vmem>>, vector<1x128x128xbf16>
    %22 = vector.shape_cast %21 : vector<1x128x128xbf16> to vector<128x128xbf16>
    %cst_11 = arith.constant dense<0.000000e+00> : vector<8x128xf32>
    %23 = tpu.matmul %20, %22, %cst_11 {dimension_numbers = #tpu.dot_dimension_numbers<[1], [0], [0], [1], [0, 0, 1, 1], [], []>} : vector<8x128xbf16>, vector<128x128xbf16>, vector<8x128xf32> -> vector<8x128xf32>
    %c0_12 = arith.constant 0 : index
    %c0_13 = arith.constant 0 : index
    %24 = vector.load %arg7[%c0_12, %c0_13] : memref<4x128xf32, #tpu.memory_space<vmem>>, vector<1x128xf32>
    %25 = vector.broadcast %24 : vector<1x128xf32> to vector<8x128xf32>
    %26 = arith.addf %23, %25 : vector<8x128xf32>
    %cst_14 = arith.constant 0.176776692 : f32
    %27 = vector.broadcast %cst_14 : f32 to vector<8x128xf32>
    %28 = arith.mulf %26, %27 : vector<8x128xf32>
    %29 = arith.truncf %28 : vector<8x128xf32> to vector<8x128xbf16>
    %30 = vector.shape_cast %29 : vector<8x128xbf16> to vector<8x4x32xbf16>
    %31 = tpu.transpose %30, [1, 0, 2] : vector<8x4x32xbf16> -> vector<4x8x32xbf16>
    "tpu.trace_start"() <{level = 10 : i32, message = "hqd,hkd->hqk"}> : () -> ()
    %cst_15 = arith.constant dense<0.000000e+00> : vector<4x8x16xf32>
    %32 = tpu.matmul %31, %16, %cst_15 {dimension_numbers = #tpu.dot_dimension_numbers<[2], [2], [1], [1], [0, 0, 0, 1, 1, 1], [0], [0]>} : vector<4x8x32xbf16>, vector<4x16x32xbf16>, vector<4x8x16xf32> -> vector<4x8x16xf32>
    "tpu.trace_stop"() : () -> ()
    %33 = vector.shape_cast %13 : vector<8x16xf32> to vector<1x8x16xf32>
    %34 = vector.broadcast %33 : vector<1x8x16xf32> to vector<4x8x16xf32>
    %35 = arith.addf %32, %34 : vector<4x8x16xf32>
    %cst_16 = arith.constant dense<0xFF800000> : vector<4x8xf32>
    %36 = vector.multi_reduction <maximumf>, %35, %cst_16 [2] : vector<4x8x16xf32> to vector<4x8xf32>
    %37 = vector.shape_cast %36 : vector<4x8xf32> to vector<4x8x1xf32>
    %38 = vector.broadcast %37 : vector<4x8x1xf32> to vector<4x8x16xf32>
    %39 = arith.subf %35, %38 : vector<4x8x16xf32>
    %40 = math.exp %39 : vector<4x8x16xf32>
    %cst_17 = arith.constant dense<0.000000e+00> : vector<4x8xf32>
    %41 = vector.multi_reduction <add>, %40, %cst_17 [2] : vector<4x8x16xf32> to vector<4x8xf32>
    %42 = vector.shape_cast %41 : vector<4x8xf32> to vector<4x8x1xf32>
    %43 = tpu.reciprocal %42 {approx = true} : vector<4x8x1xf32> -> vector<4x8x1xf32>
    %44 = vector.broadcast %43 : vector<4x8x1xf32> to vector<4x8x16xf32>
    %45 = arith.mulf %40, %44 : vector<4x8x16xf32>
    %46 = arith.truncf %45 : vector<4x8x16xf32> to vector<4x8x16xbf16>
    "tpu.trace_start"() <{level = 10 : i32, message = "hqk,hkd->hqd"}> : () -> ()
    %cst_18 = arith.constant dense<0.000000e+00> : vector<4x8x32xf32>
    %47 = tpu.matmul %46, %19, %cst_18 {dimension_numbers = #tpu.dot_dimension_numbers<[2], [1], [1], [2], [0, 0, 0, 1, 1, 2], [0], [0]>} : vector<4x8x16xbf16>, vector<4x16x32xbf16>, vector<4x8x32xf32> -> vector<4x8x32xf32>
    "tpu.trace_stop"() : () -> ()
    %48 = tpu.transpose %47, [1, 0, 2] : vector<4x8x32xf32> -> vector<8x4x32xf32>
    %49 = vector.shape_cast %48 : vector<8x4x32xf32> to vector<8x128xf32>
    %50 = arith.truncf %49 : vector<8x128xf32> to vector<8x128xbf16>
    %c3 = arith.constant 3 : index
    %c0_19 = arith.constant 0 : index
    %c0_20 = arith.constant 0 : index
    %51 = vector.load %arg6[%c3, %c0_19, %c0_20] : memref<4x128x128xbf16, #tpu.memory_space<vmem>>, vector<1x128x128xbf16>
    %52 = vector.shape_cast %51 : vector<1x128x128xbf16> to vector<128x128xbf16>
    %cst_21 = arith.constant dense<0.000000e+00> : vector<8x128xf32>
    %53 = tpu.matmul %50, %52, %cst_21 {dimension_numbers = #tpu.dot_dimension_numbers<[1], [0], [0], [1], [0, 0, 1, 1], [], []>} : vector<8x128xbf16>, vector<128x128xbf16>, vector<8x128xf32> -> vector<8x128xf32>
    %c3_22 = arith.constant 3 : index
    %c0_23 = arith.constant 0 : index
    %54 = vector.load %arg7[%c3_22, %c0_23] : memref<4x128xf32, #tpu.memory_space<vmem>>, vector<1x128xf32>
    %55 = vector.broadcast %54 : vector<1x128xf32> to vector<8x128xf32>
    %56 = arith.addf %53, %55 : vector<8x128xf32>
    %57 = arith.addf %4, %56 : vector<8x128xf32>
    %c0_24 = arith.constant 0 : index
    %c0_25 = arith.constant 0 : index
    %58 = vector.load %arg14[%c0_24, %c0_25] : memref<3x128xf32, #tpu.memory_space<vmem>>, vector<1x128xf32>
    %c0_26 = arith.constant 0 : index
    %c0_27 = arith.constant 0 : index
    %59 = vector.load %arg15[%c0_26, %c0_27] : memref<3x128xf32, #tpu.memory_space<vmem>>, vector<1x128xf32>
    %cst_28 = arith.constant dense<0.000000e+00> : vector<8xf32>
    %60 = vector.multi_reduction <add>, %57, %cst_28 [1] : vector<8x128xf32> to vector<8xf32>
    %61 = vector.shape_cast %60 : vector<8xf32> to vector<8x1xf32>
    %cst_29 = arith.constant 1.280000e+02 : f32
    %62 = vector.broadcast %cst_29 : f32 to vector<8x1xf32>
    %63 = arith.divf %61, %62 : vector<8x1xf32>
    %64 = vector.broadcast %63 : vector<8x1xf32> to vector<8x128xf32>
    %65 = arith.subf %57, %64 : vector<8x128xf32>
    %66 = arith.mulf %65, %65 : vector<8x128xf32>
    %cst_30 = arith.constant dense<0.000000e+00> : vector<8xf32>
    %67 = vector.multi_reduction <add>, %66, %cst_30 [1] : vector<8x128xf32> to vector<8xf32>
    %68 = vector.shape_cast %67 : vector<8xf32> to vector<8x1xf32>
    %cst_31 = arith.constant 1.280000e+02 : f32
    %69 = vector.broadcast %cst_31 : f32 to vector<8x1xf32>
    %70 = arith.divf %68, %69 : vector<8x1xf32>
    %cst_32 = arith.constant 9.99999997E-7 : f32
    %71 = vector.broadcast %cst_32 : f32 to vector<8x1xf32>
    %72 = arith.addf %70, %71 : vector<8x1xf32>
    %73 = math.rsqrt %72 : vector<8x1xf32>
    %74 = vector.broadcast %73 : vector<8x1xf32> to vector<8x128xf32>
    %75 = arith.mulf %65, %74 : vector<8x128xf32>
    %76 = vector.broadcast %58 : vector<1x128xf32> to vector<8x128xf32>
    %77 = arith.mulf %75, %76 : vector<8x128xf32>
    %78 = vector.broadcast %59 : vector<1x128xf32> to vector<8x128xf32>
    %79 = arith.addf %77, %78 : vector<8x128xf32>
    %c0_33 = arith.constant 0 : index
    %c0_34 = arith.constant 0 : index
    %c0_35 = arith.constant 0 : index
    %80 = vector.load %arg5[%c0_33, %c0_34, %c0_35] : memref<1x1x16xf32, #tpu.memory_space<vmem>>, vector<1x1x16xf32>
    %81 = vector.shape_cast %80 : vector<1x1x16xf32> to vector<1x16xf32>
    %cst_36 = arith.constant -1.000000e+09 : f32
    %82 = vector.broadcast %cst_36 : f32 to vector<1x16xf32>
    %83 = arith.mulf %81, %82 : vector<1x16xf32>
    %c0_37 = arith.constant 0 : index
    %c0_38 = arith.constant 0 : index
    %84 = vector.load %arg19[%c0_37, %c0_38] : memref<16x128xbf16, #tpu.memory_space<vmem>>, vector<16x128xbf16>
    %85 = vector.shape_cast %84 : vector<16x128xbf16> to vector<16x4x32xbf16>
    %86 = tpu.transpose %85, [1, 0, 2] : vector<16x4x32xbf16> -> vector<4x16x32xbf16>
    %c0_39 = arith.constant 0 : index
    %c0_40 = arith.constant 0 : index
    %87 = vector.load %arg20[%c0_39, %c0_40] : memref<16x128xbf16, #tpu.memory_space<vmem>>, vector<16x128xbf16>
    %88 = vector.shape_cast %87 : vector<16x128xbf16> to vector<16x4x32xbf16>
    %89 = tpu.transpose %88, [1, 0, 2] : vector<16x4x32xbf16> -> vector<4x16x32xbf16>
    %90 = arith.truncf %79 : vector<8x128xf32> to vector<8x128xbf16>
    %c0_41 = arith.constant 0 : index
    %c0_42 = arith.constant 0 : index
    %c0_43 = arith.constant 0 : index
    %91 = vector.load %arg8[%c0_41, %c0_42, %c0_43] : memref<4x128x128xbf16, #tpu.memory_space<vmem>>, vector<1x128x128xbf16>
    %92 = vector.shape_cast %91 : vector<1x128x128xbf16> to vector<128x128xbf16>
    %cst_44 = arith.constant dense<0.000000e+00> : vector<8x128xf32>
    %93 = tpu.matmul %90, %92, %cst_44 {dimension_numbers = #tpu.dot_dimension_numbers<[1], [0], [0], [1], [0, 0, 1, 1], [], []>} : vector<8x128xbf16>, vector<128x128xbf16>, vector<8x128xf32> -> vector<8x128xf32>
    %c0_45 = arith.constant 0 : index
    %c0_46 = arith.constant 0 : index
    %94 = vector.load %arg9[%c0_45, %c0_46] : memref<4x128xf32, #tpu.memory_space<vmem>>, vector<1x128xf32>
    %95 = vector.broadcast %94 : vector<1x128xf32> to vector<8x128xf32>
    %96 = arith.addf %93, %95 : vector<8x128xf32>
    %cst_47 = arith.constant 0.176776692 : f32
    %97 = vector.broadcast %cst_47 : f32 to vector<8x128xf32>
    %98 = arith.mulf %96, %97 : vector<8x128xf32>
    %99 = arith.truncf %98 : vector<8x128xf32> to vector<8x128xbf16>
    %100 = vector.shape_cast %99 : vector<8x128xbf16> to vector<8x4x32xbf16>
    %101 = tpu.transpose %100, [1, 0, 2] : vector<8x4x32xbf16> -> vector<4x8x32xbf16>
    "tpu.trace_start"() <{level = 10 : i32, message = "hqd,hkd->hqk"}> : () -> ()
    %cst_48 = arith.constant dense<0.000000e+00> : vector<4x8x16xf32>
    %102 = tpu.matmul %101, %86, %cst_48 {dimension_numbers = #tpu.dot_dimension_numbers<[2], [2], [1], [1], [0, 0, 0, 1, 1, 1], [0], [0]>} : vector<4x8x32xbf16>, vector<4x16x32xbf16>, vector<4x8x16xf32> -> vector<4x8x16xf32>
    "tpu.trace_stop"() : () -> ()
    %103 = vector.shape_cast %83 : vector<1x16xf32> to vector<1x1x16xf32>
    %104 = vector.broadcast %103 : vector<1x1x16xf32> to vector<4x8x16xf32>
    %105 = arith.addf %102, %104 : vector<4x8x16xf32>
    %cst_49 = arith.constant dense<0xFF800000> : vector<4x8xf32>
    %106 = vector.multi_reduction <maximumf>, %105, %cst_49 [2] : vector<4x8x16xf32> to vector<4x8xf32>
    %107 = vector.shape_cast %106 : vector<4x8xf32> to vector<4x8x1xf32>
    %108 = vector.broadcast %107 : vector<4x8x1xf32> to vector<4x8x16xf32>
    %109 = arith.subf %105, %108 : vector<4x8x16xf32>
    %110 = math.exp %109 : vector<4x8x16xf32>
    %cst_50 = arith.constant dense<0.000000e+00> : vector<4x8xf32>
    %111 = vector.multi_reduction <add>, %110, %cst_50 [2] : vector<4x8x16xf32> to vector<4x8xf32>
    %112 = vector.shape_cast %111 : vector<4x8xf32> to vector<4x8x1xf32>
    %113 = tpu.reciprocal %112 {approx = true} : vector<4x8x1xf32> -> vector<4x8x1xf32>
    %114 = vector.broadcast %113 : vector<4x8x1xf32> to vector<4x8x16xf32>
    %115 = arith.mulf %110, %114 : vector<4x8x16xf32>
    %116 = arith.truncf %115 : vector<4x8x16xf32> to vector<4x8x16xbf16>
    "tpu.trace_start"() <{level = 10 : i32, message = "hqk,hkd->hqd"}> : () -> ()
    %cst_51 = arith.constant dense<0.000000e+00> : vector<4x8x32xf32>
    %117 = tpu.matmul %116, %89, %cst_51 {dimension_numbers = #tpu.dot_dimension_numbers<[2], [1], [1], [2], [0, 0, 0, 1, 1, 2], [0], [0]>} : vector<4x8x16xbf16>, vector<4x16x32xbf16>, vector<4x8x32xf32> -> vector<4x8x32xf32>
    "tpu.trace_stop"() : () -> ()
    %118 = tpu.transpose %117, [1, 0, 2] : vector<4x8x32xf32> -> vector<8x4x32xf32>
    %119 = vector.shape_cast %118 : vector<8x4x32xf32> to vector<8x128xf32>
    %120 = arith.truncf %119 : vector<8x128xf32> to vector<8x128xbf16>
    %c3_52 = arith.constant 3 : index
    %c0_53 = arith.constant 0 : index
    %c0_54 = arith.constant 0 : index
    %121 = vector.load %arg8[%c3_52, %c0_53, %c0_54] : memref<4x128x128xbf16, #tpu.memory_space<vmem>>, vector<1x128x128xbf16>
    %122 = vector.shape_cast %121 : vector<1x128x128xbf16> to vector<128x128xbf16>
    %cst_55 = arith.constant dense<0.000000e+00> : vector<8x128xf32>
    %123 = tpu.matmul %120, %122, %cst_55 {dimension_numbers = #tpu.dot_dimension_numbers<[1], [0], [0], [1], [0, 0, 1, 1], [], []>} : vector<8x128xbf16>, vector<128x128xbf16>, vector<8x128xf32> -> vector<8x128xf32>
    %c3_56 = arith.constant 3 : index
    %c0_57 = arith.constant 0 : index
    %124 = vector.load %arg9[%c3_56, %c0_57] : memref<4x128xf32, #tpu.memory_space<vmem>>, vector<1x128xf32>
    %125 = vector.broadcast %124 : vector<1x128xf32> to vector<8x128xf32>
    %126 = arith.addf %123, %125 : vector<8x128xf32>
    %127 = arith.addf %79, %126 : vector<8x128xf32>
    %c1 = arith.constant 1 : index
    %c0_58 = arith.constant 0 : index
    %128 = vector.load %arg14[%c1, %c0_58] : memref<3x128xf32, #tpu.memory_space<vmem>>, vector<1x128xf32>
    %c1_59 = arith.constant 1 : index
    %c0_60 = arith.constant 0 : index
    %129 = vector.load %arg15[%c1_59, %c0_60] : memref<3x128xf32, #tpu.memory_space<vmem>>, vector<1x128xf32>
    %cst_61 = arith.constant dense<0.000000e+00> : vector<8xf32>
    %130 = vector.multi_reduction <add>, %127, %cst_61 [1] : vector<8x128xf32> to vector<8xf32>
    %131 = vector.shape_cast %130 : vector<8xf32> to vector<8x1xf32>
    %cst_62 = arith.constant 1.280000e+02 : f32
    %132 = vector.broadcast %cst_62 : f32 to vector<8x1xf32>
    %133 = arith.divf %131, %132 : vector<8x1xf32>
    %134 = vector.broadcast %133 : vector<8x1xf32> to vector<8x128xf32>
    %135 = arith.subf %127, %134 : vector<8x128xf32>
    %136 = arith.mulf %135, %135 : vector<8x128xf32>
    %cst_63 = arith.constant dense<0.000000e+00> : vector<8xf32>
    %137 = vector.multi_reduction <add>, %136, %cst_63 [1] : vector<8x128xf32> to vector<8xf32>
    %138 = vector.shape_cast %137 : vector<8xf32> to vector<8x1xf32>
    %cst_64 = arith.constant 1.280000e+02 : f32
    %139 = vector.broadcast %cst_64 : f32 to vector<8x1xf32>
    %140 = arith.divf %138, %139 : vector<8x1xf32>
    %cst_65 = arith.constant 9.99999997E-7 : f32
    %141 = vector.broadcast %cst_65 : f32 to vector<8x1xf32>
    %142 = arith.addf %140, %141 : vector<8x1xf32>
    %143 = math.rsqrt %142 : vector<8x1xf32>
    %144 = vector.broadcast %143 : vector<8x1xf32> to vector<8x128xf32>
    %145 = arith.mulf %135, %144 : vector<8x128xf32>
    %146 = vector.broadcast %128 : vector<1x128xf32> to vector<8x128xf32>
    %147 = arith.mulf %145, %146 : vector<8x128xf32>
    %148 = vector.broadcast %129 : vector<1x128xf32> to vector<8x128xf32>
    %149 = arith.addf %147, %148 : vector<8x128xf32>
    %150 = arith.truncf %149 : vector<8x128xf32> to vector<8x128xbf16>
    %c0_66 = arith.constant 0 : index
    %c0_67 = arith.constant 0 : index
    %151 = vector.load %arg10[%c0_66, %c0_67] : memref<128x256xbf16, #tpu.memory_space<vmem>>, vector<128x256xbf16>
    %cst_68 = arith.constant dense<0.000000e+00> : vector<8x256xf32>
    %152 = tpu.matmul %150, %151, %cst_68 {dimension_numbers = #tpu.dot_dimension_numbers<[1], [0], [0], [1], [0, 0, 1, 1], [], []>} : vector<8x128xbf16>, vector<128x256xbf16>, vector<8x256xf32> -> vector<8x256xf32>
    %c0_69 = arith.constant 0 : index
    %c0_70 = arith.constant 0 : index
    %153 = vector.load %arg11[%c0_69, %c0_70] : memref<1x256xf32, #tpu.memory_space<vmem>>, vector<1x256xf32>
    %154 = vector.broadcast %153 : vector<1x256xf32> to vector<8x256xf32>
    %155 = arith.addf %152, %154 : vector<8x256xf32>
    %cst_71 = arith.constant 0.000000e+00 : f32
    %156 = vector.broadcast %cst_71 : f32 to vector<8x256xf32>
    %157 = arith.maximumf %155, %156 : vector<8x256xf32>
    %158 = arith.truncf %157 : vector<8x256xf32> to vector<8x256xbf16>
    %c0_72 = arith.constant 0 : index
    %c0_73 = arith.constant 0 : index
    %159 = vector.load %arg12[%c0_72, %c0_73] : memref<256x128xbf16, #tpu.memory_space<vmem>>, vector<256x128xbf16>
    %cst_74 = arith.constant dense<0.000000e+00> : vector<8x128xf32>
    %160 = tpu.matmul %158, %159, %cst_74 {dimension_numbers = #tpu.dot_dimension_numbers<[1], [0], [0], [1], [0, 0, 1, 1], [], []>} : vector<8x256xbf16>, vector<256x128xbf16>, vector<8x128xf32> -> vector<8x128xf32>
    %c0_75 = arith.constant 0 : index
    %c0_76 = arith.constant 0 : index
    %161 = vector.load %arg13[%c0_75, %c0_76] : memref<1x128xf32, #tpu.memory_space<vmem>>, vector<1x128xf32>
    %162 = vector.broadcast %161 : vector<1x128xf32> to vector<8x128xf32>
    %163 = arith.addf %160, %162 : vector<8x128xf32>
    %164 = arith.addf %149, %163 : vector<8x128xf32>
    %c2 = arith.constant 2 : index
    %c0_77 = arith.constant 0 : index
    %165 = vector.load %arg14[%c2, %c0_77] : memref<3x128xf32, #tpu.memory_space<vmem>>, vector<1x128xf32>
    %c2_78 = arith.constant 2 : index
    %c0_79 = arith.constant 0 : index
    %166 = vector.load %arg15[%c2_78, %c0_79] : memref<3x128xf32, #tpu.memory_space<vmem>>, vector<1x128xf32>
    %cst_80 = arith.constant dense<0.000000e+00> : vector<8xf32>
    %167 = vector.multi_reduction <add>, %164, %cst_80 [1] : vector<8x128xf32> to vector<8xf32>
    %168 = vector.shape_cast %167 : vector<8xf32> to vector<8x1xf32>
    %cst_81 = arith.constant 1.280000e+02 : f32
    %169 = vector.broadcast %cst_81 : f32 to vector<8x1xf32>
    %170 = arith.divf %168, %169 : vector<8x1xf32>
    %171 = vector.broadcast %170 : vector<8x1xf32> to vector<8x128xf32>
    %172 = arith.subf %164, %171 : vector<8x128xf32>
    %173 = arith.mulf %172, %172 : vector<8x128xf32>
    %cst_82 = arith.constant dense<0.000000e+00> : vector<8xf32>
    %174 = vector.multi_reduction <add>, %173, %cst_82 [1] : vector<8x128xf32> to vector<8xf32>
    %175 = vector.shape_cast %174 : vector<8xf32> to vector<8x1xf32>
    %cst_83 = arith.constant 1.280000e+02 : f32
    %176 = vector.broadcast %cst_83 : f32 to vector<8x1xf32>
    %177 = arith.divf %175, %176 : vector<8x1xf32>
    %cst_84 = arith.constant 9.99999997E-7 : f32
    %178 = vector.broadcast %cst_84 : f32 to vector<8x1xf32>
    %179 = arith.addf %177, %178 : vector<8x1xf32>
    %180 = math.rsqrt %179 : vector<8x1xf32>
    %181 = vector.broadcast %180 : vector<8x1xf32> to vector<8x128xf32>
    %182 = arith.mulf %172, %181 : vector<8x128xf32>
    %183 = vector.broadcast %165 : vector<1x128xf32> to vector<8x128xf32>
    %184 = arith.mulf %182, %183 : vector<8x128xf32>
    %185 = vector.broadcast %166 : vector<1x128xf32> to vector<8x128xf32>
    %186 = arith.addf %184, %185 : vector<8x128xf32>
    %c0_85 = arith.constant 0 : index
    %c0_86 = arith.constant 0 : index
    %c0_87 = arith.constant 0 : index
    %187 = vector.load %arg16[%c0_85, %c0_86, %c0_87] : memref<1x8x128xf32, #tpu.memory_space<vmem>>, vector<1x8x128xf32>
    %188 = vector.shape_cast %187 : vector<1x8x128xf32> to vector<8x128xf32>
    %189 = vector.shape_cast %186 : vector<8x128xf32> to vector<1x8x128xf32>
    tpu.vector_store %arg16[%c0_85, %c0_86, %c0_87], %189 {strides = array<i32>} : memref<1x8x128xf32, #tpu.memory_space<vmem>>, vector<1x8x128xf32>,
    return
  }
  func.func @transform_0(%arg0: i32, %arg1: i32) -> (i32, i32, i32) {
    %c0_i32 = arith.constant 0 : i32
    %c0_i32_0 = arith.constant 0 : i32
    return %arg0, %arg1, %c0_i32 : i32, i32, i32
  }
  func.func @transform_1(%arg0: i32, %arg1: i32) -> (i32, i32, i32) {
    %c0_i32 = arith.constant 0 : i32
    %c0_i32_0 = arith.constant 0 : i32
    %c0_i32_1 = arith.constant 0 : i32
    return %arg0, %c0_i32, %c0_i32_0 : i32, i32, i32
  }
  func.func @transform_2(%arg0: i32, %arg1: i32) -> (i32, i32, i32) {
    %c0_i32 = arith.constant 0 : i32
    %c0_i32_0 = arith.constant 0 : i32
    %c0_i32_1 = arith.constant 0 : i32
    return %arg0, %c0_i32, %c0_i32_0 : i32, i32, i32
  }
  func.func @transform_3(%arg0: i32, %arg1: i32) -> (i32, i32, i32) {
    %c0_i32 = arith.constant 0 : i32
    %c0_i32_0 = arith.constant 0 : i32
    %c0_i32_1 = arith.constant 0 : i32
    return %arg0, %c0_i32, %c0_i32_0 : i32, i32, i32
  }
  func.func @transform_4(%arg0: i32, %arg1: i32) -> (i32, i32, i32) {
    %c0_i32 = arith.constant 0 : i32
    %c0_i32_0 = arith.constant 0 : i32
    %c0_i32_1 = arith.constant 0 : i32
    %c0_i32_2 = arith.constant 0 : i32
    return %c0_i32, %c0_i32_0, %c0_i32_1 : i32, i32, i32
  }
  func.func @transform_5(%arg0: i32, %arg1: i32) -> (i32, i32) {
    %c0_i32 = arith.constant 0 : i32
    %c0_i32_0 = arith.constant 0 : i32
    %c0_i32_1 = arith.constant 0 : i32
    return %c0_i32, %c0_i32_0 : i32, i32
  }
  func.func @transform_6(%arg0: i32, %arg1: i32) -> (i32, i32, i32) {
    %c0_i32 = arith.constant 0 : i32
    %c0_i32_0 = arith.constant 0 : i32
    %c0_i32_1 = arith.constant 0 : i32
    %c0_i32_2 = arith.constant 0 : i32
    return %c0_i32, %c0_i32_0, %c0_i32_1 : i32, i32, i32
  }
  func.func @transform_7(%arg0: i32, %arg1: i32) -> (i32, i32) {
    %c0_i32 = arith.constant 0 : i32
    %c0_i32_0 = arith.constant 0 : i32
    %c0_i32_1 = arith.constant 0 : i32
    return %c0_i32, %c0_i32_0 : i32, i32
  }
  func.func @transform_8(%arg0: i32, %arg1: i32) -> (i32, i32) {
    %c0_i32 = arith.constant 0 : i32
    %c0_i32_0 = arith.constant 0 : i32
    %c0_i32_1 = arith.constant 0 : i32
    return %c0_i32, %c0_i32_0 : i32, i32
  }
  func.func @transform_9(%arg0: i32, %arg1: i32) -> (i32, i32) {
    %c0_i32 = arith.constant 0 : i32
    %c0_i32_0 = arith.constant 0 : i32
    %c0_i32_1 = arith.constant 0 : i32
    return %c0_i32, %c0_i32_0 : i32, i32
  }
  func.func @transform_10(%arg0: i32, %arg1: i32) -> (i32, i32) {
    %c0_i32 = arith.constant 0 : i32
    %c0_i32_0 = arith.constant 0 : i32
    %c0_i32_1 = arith.constant 0 : i32
    return %c0_i32, %c0_i32_0 : i32, i32
  }
  func.func @transform_11(%arg0: i32, %arg1: i32) -> (i32, i32) {
    %c0_i32 = arith.constant 0 : i32
    %c0_i32_0 = arith.constant 0 : i32
    %c0_i32_1 = arith.constant 0 : i32
    return %c0_i32, %c0_i32_0 : i32, i32
  }
  func.func @transform_12(%arg0: i32, %arg1: i32) -> (i32, i32) {
    %c0_i32 = arith.constant 0 : i32
    %c0_i32_0 = arith.constant 0 : i32
    %c0_i32_1 = arith.constant 0 : i32
    return %c0_i32, %c0_i32_0 : i32, i32
  }
  func.func @transform_13(%arg0: i32, %arg1: i32) -> (i32, i32) {
    %c0_i32 = arith.constant 0 : i32
    %c0_i32_0 = arith.constant 0 : i32
    %c0_i32_1 = arith.constant 0 : i32
    return %c0_i32, %c0_i32_0 : i32, i32
  }
  func.func @transform_14(%arg0: i32, %arg1: i32) -> (i32, i32, i32) {
    %c0_i32 = arith.constant 0 : i32
    %c0_i32_0 = arith.constant 0 : i32
    return %arg0, %arg1, %c0_i32 : i32, i32, i32
  }
}

</mosaic_0001>

<bundles_post_ra>
// kernel: tpu_custom_call.1
= control target key start
LH: loop header
LB: loop body
LE: loop exit
PB: predicated region body
PF: predicated region fallthrough
CT: control target
= control target key end

     0   :  { %s7052_s0 = inlined_call_operand.hbm [shape: f32[2,16,128], index: 0, kind: input, shape index: {}]   ;;  %s7053_s1 = inlined_call_operand.hbm [shape: f32[2,16,128], index: 1, kind: input, shape index: {}]   ;;  %s7054_s2 = inlined_call_operand.hbm [shape: f32[2,16,128], index: 2, kind: input, shape index: {}]   ;;  %s7055_s3 = inlined_call_operand.vmem [shape: f32[2,1,16], index: 3, kind: input, shape index: {}]   ;;  %s7056_s4 = inlined_call_operand.hbm [shape: bf16[4,128,128], index: 4, kind: input, shape index: {}]   ;;  %s7057_s5 = inlined_call_operand.vmem [shape: f32[4,128], index: 5, kind: input, shape index: {}]   ;;  %s7058_s6 = inlined_call_operand.hbm [shape: bf16[4,128,128], index: 6, kind: input, shape index: {}]   ;;  %s7059_s7 = inlined_call_operand.vmem [shape: f32[4,128], index: 7, kind: input, shape index: {}]   ;;  %s7060_s8 = inlined_call_operand.hbm [shape: bf16[128,256], index: 8, kind: input, shape index: {}]   ;;  %s7061_s9 = inlined_call_operand.vmem [shape: f32[1,256], index: 9, kind: input, shape index: {}]   ;;  %s7062_s10 = inlined_call_operand.hbm [shape: bf16[256,128], index: 10, kind: input, shape index: {}]   ;;  %s7063_s11 = inlined_call_operand.vmem [shape: f32[1,128], index: 11, kind: input, shape index: {}]   ;;  %s7064_s12 = inlined_call_operand.vmem [shape: f32[3,128], index: 12, kind: input, shape index: {}]   ;;  %s7065_s13 = inlined_call_operand.vmem [shape: f32[3,128], index: 13, kind: input, shape index: {}]   ;;  %s7066_s14 = inlined_call_operand.hbm [shape: f32[2,16,128], index: 14, kind: output, shape index: {}]  }
   0x1   :  { %7113 = sst [smem:[#allocation36_spill]] %s7052_s0 }
   0x2   :  { %7114 = sst [smem:[#allocation37_spill]] %s7053_s1 }
   0x3   :  { %7115 = sst [smem:[#allocation38_spill]] %s7055_s3 }
   0x4   :  { %7116 = sst [smem:[#allocation39_spill]] %s7056_s4 }
   0x5   :  { %7117 = sst [smem:[#allocation40_spill]] %s7057_s5 }
   0x6   :  { %7118 = sst [smem:[#allocation41_spill]] %s7058_s6 }
   0x7   :  { %7119 = sst [smem:[#allocation42_spill]] %s7059_s7 }
   0x8   :  { %7120 = sst [smem:[#allocation43_spill]] %s7060_s8 }
   0x9   :  { %7121 = sst [smem:[#allocation44_spill]] %s7061_s9 }
   0xa   :  { %7122 = sst [smem:[#allocation45_spill]] %s7062_s10 }
   0xb   :  { %7123 = sst [smem:[#allocation46_spill]] %s7063_s11 }
   0xc   :  { %7124 = sst [smem:[#allocation47_spill]] %s7064_s12 }
   0xd   :  { %7125 = sst [smem:[#allocation48_spill]] %s7065_s13 }
   0xe   :  { %7126 = sst [smem:[#allocation49_spill]] %s7066_s14 }
   0xf   :  { %19 = vsyncpa [#allocation7], 0 }
  0x10   :  { %21 = vsyncpa [#allocation7 + $0x1], 0 }
  0x11   :  { %22 = vsyncpa [#allocation10], 0 }
  0x12   :  { %24 = vsyncpa [#allocation10 + $0x1], 0 }
  0x13   :  { %25 = vsyncpa [#allocation13], 0 }
  0x14   :  { %26 = vsyncpa [#allocation16], 0 }
  0x15   :  { %27 = vsyncpa [#allocation8], 0 }
  0x16   :  { %29 = vsyncpa [#allocation8 + $0x1], 0  ;;  %s6015_s29 = smov 0   ;;  %s6017_s30 = smov 0  }
  0x17   :  { %s6019_s15 = smov 0   ;;  %s6021_s16 = smov 0  }
  0x18   :  { %s6023_s17 = smov 0   ;;  %s6025_s18 = smov 0  }
  0x19   :  { %s6027_s19 = smov 0   ;;  %s6029_s20 = smov 0  }
  0x1a   :  { %s6031_s21 = smov 0   ;;  %s6033_s22 = smov 0  }
  0x1b   :  { %s6035_s23 = smov 0  }
  0x1c LB: > { %7127 = sst [smem:[#allocation24_spill]] %s5880_s30  ;;  %s6071_s24 = sadd.s32 4294967295, %s5916_s23   ;;  %s5916_s23 = sphi %s6035_s23, %s35_s23   ;;  %s5912_s22 = sphi %s6033_s22, %s7213_s22   ;;  %s5908_s21 = sphi %s6031_s21, %s7212_s21   ;;  %s5904_s20 = sphi %s6029_s20, %s7211_s20   ;;  %s5900_s19 = sphi %s6027_s19, %s7210_s19   ;;  %s5896_s18 = sphi %s6025_s18, %s7209_s18   ;;  %s5892_s17 = sphi %s6023_s17, %s7208_s17   ;;  %s5888_s16 = sphi %s6021_s16, %s7207_s16   ;;  %s5884_s15 = sphi %s6019_s15, %s7206_s15   ;;  %s5880_s30 = sphi %s6017_s30, %s7201_s30   ;;  %s5876_s29 = sphi %s6015_s29, %s7205_s29  }
  0x1d   : > { %7128 = sst [smem:[#allocation25_spill]] %s5884_s15  ;;  %p4709_p0 = scmp.ge.s32.totalorder %s5916_s23, 1 }
  0x1e   : > { %7129 = sst [smem:[#allocation26_spill]] %s5888_s16  ;;  %p7075_p1 = scmp.eq.s32.totalorder %s6071_s24, 0 }
  0x1f   : > { %7130 = sst [smem:[#allocation27_spill]] %s5900_s19  ;;  %p396_p2 = scmp.lt.s32.totalorder %s5916_s23, 5 }
  0x20   : > { %7131 = sst [smem:[#allocation28_spill]] %s5904_s20  ;;  %s5918_s26 = smov [#allocation12]  }
  0x21   : > { %7132 = sst [smem:[#allocation29_spill]] %s6071_s24  ;;  %p6076_p3 = pnand %p4709_p0, %p396_p2 }
  0x22   : > { %s408_s27 = sshll.u32 %s5918_s26, 4  ;;  %s5919_s14 = smov [#allocation15]   ;;  %s409_s27 = int_to_ptr.vmem [resolvable:$true] %s408_s27 }
  0x23   : > { %s7133_s25 = scalar_select %p6076_p3, 1, 0 }
  0x24   : > { %p5295_p4 = pneg %p6076_p3  ;;  %s440_s11 = sshll.u32 %s5919_s14, 4  ;;  %s6088_s11 = int_to_ptr.vmem [resolvable:$true] %s440_s11 }
  0x25   : > { %7134 = sst [smem:[#allocation30_spill]] %s7133_s25  ;;  %s7136_s4 = sld [smem:[#allocation39_spill]] }
  0x26   : > { %p6084_p5 = pnand %p5295_p4, %p7075_p1 }
  0x28   : > { %s7135_s28 = scalar_select %p6084_p5, 1, 0 }
  0x29   : > { %p6098_p7 = pneg %p6084_p5 }
  0x2b   : > { %s5580_s12 = scalar_lea.hbm %s7136_s4, 4096 }
  0x2c   : > { %p5581_p6 = scmp.ne.s32.totalorder %s7136_s4, %s5580_s12  ;;  %p5587_p10 = scmp.lt.u32.totalorder %s5580_s12, %s7136_s4 }
  0x2e   : > { %p5583_p8 = pnand %p6098_p7, %p5581_p6 }
  0x30   : > { %p5584_p9 = pneg %p5583_p8 }
  0x32   : > { %p5589_p11 = pnand %p5587_p10, %p5584_p9 }
  0x34   : > { %5592 = shalt.err (!%p5589_p11)
}
  0x35   : > { %s5593_s9 = scalar_lea.vmem %s409_s27, 4096  ;;  %p5601_p2 = scmp.lt.s32.totalorder %s409_s27, %s409_s27 }
  0x36   : > { %p5594_p12 = scmp.ne.s32.totalorder %s409_s27, %s5593_s9  ;;  %p5602_p4 = scmp.lt.s32.totalorder %s5593_s9, %s5593_s9 }
  0x38   : > { %p5596_p13 = pnand %p5594_p12, %p6098_p7  ;;  %p5603_p1 = por %p5602_p4, %p5601_p2 }
  0x3a   : > { %p5597_p0 = pneg %p5596_p13 }
  0x3c   : > { %p5604_p3 = pnand %p5603_p1, %p5597_p0 }
  0x3e   : > { %5607 = shalt.err (!%p5604_p3)
}
  0x3f   : > { %s7080_s5 = smov 64   ;;  %s7082_s7 = smov 4  }
  0x40   : > { %5298 = dma.hbm_to_vmem [thread:$0]  (!%p6084_p5), %s7136_s4, 4096, %s409_s27, [#allocation13], %s7080_s5, %s7080_s5, %s7082_s7  }
  0x41   : > { %s7138_s8 = sld [smem:[#allocation43_spill]] }
  0x47   : > { %s5608_s3 = scalar_lea.hbm %s7138_s8, 2048 }
  0x48   : > { %p5609_p1 = scmp.ne.s32.totalorder %s7138_s8, %s5608_s3  ;;  %p5615_p8 = scmp.lt.u32.totalorder %s5608_s3, %s7138_s8 }
  0x4a   : > { %p5611_p3 = pnand %p5609_p1, %p6098_p7 }
  0x4c   : > { %p5612_p6 = pneg %p5611_p3 }
  0x4e   : > { %p5617_p9 = pnand %p5615_p8, %p5612_p6 }
  0x50   : > { %5620 = shalt.err (!%p5617_p9)
}
  0x51   : > { %s5621_s27 = scalar_lea.vmem %s6088_s11, 2048  ;;  %p5629_p13 = scmp.lt.s32.totalorder %s6088_s11, %s6088_s11 }
  0x52   : > { %p5622_p10 = scmp.ne.s32.totalorder %s6088_s11, %s5621_s27  ;;  %p5630_p0 = scmp.lt.s32.totalorder %s5621_s27, %s5621_s27 }
  0x54   : > { %p5624_p11 = pnand %p5622_p10, %p6098_p7  ;;  %p5631_p2 = por %p5630_p0, %p5629_p13 }
  0x56   : > { %p5625_p12 = pneg %p5624_p11 }
  0x58   : > { %p5632_p4 = pnand %p5631_p2, %p5625_p12 }
  0x5a   : > { %5635 = shalt.err (!%p5632_p4)
}
  0x5b   : > { %s7085_s20 = smov 128   ;;  %s7087_s0 = smov 8  }
  0x5c   : > { %5304 = dma.hbm_to_vmem [thread:$0]  (!%p6084_p5), %s7138_s8, 2048, %s6088_s11, [#allocation16], %s7085_s20, %s7085_s20, %s7087_s0  }
  0x5d   : > { %p7090_p1 = scmp.eq.s32.totalorder %s5916_s23, 0  ;;  %p89_p3 = scmp.ne.s32.totalorder %s5884_s15, %s5880_s30 }
  0x5e   : > { %p95_p6 = scmp.ne.s32.totalorder %s5880_s30, %s5876_s29  ;;  %p7089_p8 = scmp.lt.s32.totalorder %s5916_s23, 4 }
  0x5f   : > { %p91_p9 = por %p89_p3, %p7090_p1  ;;  %s499_s12 = sand.u32 1, %s5916_s23  }
  0x60   : > { %p7139_p10 = scmp.eq.s32.totalorder %s6071_s24, 0  ;;  %s501_s19 = sand.u32 1, %s5884_s15  }
  0x61   : > { %s7084_s14 = sshll.u32 %s5912_s22, 8  ;;  %s6160_s9 = sshll.u32 %s501_s19, 4 }
  0x62   : > { %p6154_p11 = por %p95_p6, %p7139_p10  ;;  %s7142_s1 = sld [smem:[#allocation37_spill]] }
  0x63   : > { %p6171_p12 = pnand %p7089_p8, %p91_p9  ;;  %s503_s25 = scalar_lea.vmem [#allocation9], %s6160_s9 }
  0x64   : > { %s7140_s13 = scalar_select %p6154_p11, 1, 0 }
  0x65   : > { %s7143_s29 = scalar_select %p6171_p12, 1, 0 }
  0x66   : > { %7141 = sst [smem:[#allocation31_spill]] %s7140_s13  ;;  %s510_s19 = sshll.u32 %s503_s25, 4  ;;  %s6176_s19 = int_to_ptr.vmem [resolvable:$true] %s510_s19 }
  0x67   : > { %7144 = sst [smem:[#allocation32_spill]] %s7143_s29  ;;  %s6178_s5 = scalar_lea.sflag [#allocation10], %s499_s12 }
  0x68   : > { %s6167_s11 = scalar_lea.hbm %s7142_s1, %s7084_s14  ;;  %p7101_p0 = pneg %p6171_p12 }
  0x69   : > { %s5636_s27 = scalar_lea.hbm %s6167_s11, 256  ;;  %s5641_s14 = scalar_lea.hbm %s7142_s1, 512 }
  0x6a   : > { %p5637_p13 = scmp.ne.s32.totalorder %s6167_s11, %s5636_s27  ;;  %p5642_p3 = scmp.lt.u32.totalorder %s6167_s11, %s7142_s1 }
  0x6b   : > { %p5643_p6 = scmp.lt.u32.totalorder %s5641_s14, %s5636_s27  ;;  %p5645_p10 = scmp.lt.u32.totalorder %s5636_s27, %s6167_s11 }
  0x6c   : > { %p5639_p2 = pnand %p7101_p0, %p5637_p13 }
  0x6d   : > { %p5644_p9 = por %p5643_p6, %p5642_p3 }
  0x6e   : > { %p5640_p4 = pneg %p5639_p2 }
  0x6f   : > { %p5646_p8 = por %p5645_p10, %p5644_p9 }
  0x71   : > { %p5647_p1 = pnand %p5646_p8, %p5640_p4 }
  0x73   : > { %5650 = shalt.err (!%p5647_p1)
}
  0x74   : > { %s5651_s12 = scalar_lea.vmem %s6176_s19, 256  ;;  %s5924_s7 = smov [#allocation9]  }
  0x75   : > { %p5652_p13 = scmp.ne.s32.totalorder %s6176_s19, %s5651_s12  ;;  %s5656_s25 = sshll.u32 %s5924_s7, 4  ;;  %s5657_s25 = int_to_ptr.vmem [resolvable:$false] %s5656_s25 }
  0x76   : > { %s5658_s20 = scalar_lea.vmem %s5657_s25, 512  ;;  %p5659_p5 = scmp.lt.s32.totalorder %s6176_s19, %s5657_s25 }
  0x77   : > { %p5654_p2 = pnand %p5652_p13, %p7101_p0  ;;  %p5660_p3 = scmp.lt.s32.totalorder %s5658_s20, %s5651_s12 }
  0x79   : > { %p5655_p11 = pneg %p5654_p2  ;;  %p5661_p6 = por %p5660_p3, %p5659_p5 }
  0x7b   : > { %p5662_p9 = pnand %p5661_p6, %p5655_p11 }
  0x7d   : > { %5665 = shalt.err (!%p5662_p9)
}
  0x7e   : > { %s7145_s0 = smov 8   ;;  %s7146_s14 = smov 128  }
  0x7f   : > { %5314 = dma.hbm_to_vmem [thread:$0]  (!%p6171_p12), %s6167_s11, 256, %s6176_s19, %s6178_s5, %s7146_s14, %s7146_s14, %s7145_s0  }
  0x80   : > { %s7147_s27 = sshll.u32 %s5912_s22, 8  ;;  %s524_s25 = scalar_lea.vmem [#allocation11], %s6160_s9 }
  0x81   : > { %s6214_s12 = scalar_lea.hbm %s7054_s2, %s7147_s27  ;;  %s531_s20 = sshll.u32 %s524_s25, 4  ;;  %s6217_s20 = int_to_ptr.vmem [resolvable:$true] %s531_s20 }
  0x82   : > { %s5925_s1 = smov [#allocation14]   ;;  %s5926_s8 = smov [#allocation17]  }
  0x83   : > { %s424_s4 = sshll.u32 %s5925_s1, 4  ;;  %s456_s13 = sshll.u32 %s5926_s8, 4  ;;  %s425_s4 = int_to_ptr.vmem [resolvable:$true] %s424_s4  ;;  %s457_s13 = int_to_ptr.vmem [resolvable:$true] %s456_s13 }
  0x84   : > { %s7148_s6 = sld [smem:[#allocation41_spill]] }
  0x8a   : > { %s5666_s15 = scalar_lea.hbm %s7148_s6, 4096 }
  0x8b   : > { %p5667_p5 = scmp.ne.s32.totalorder %s7148_s6, %s5666_s15  ;;  %p5673_p11 = scmp.lt.u32.totalorder %s5666_s15, %s7148_s6 }
  0x8d   : > { %p5669_p1 = pnand %p5667_p5, %p6098_p7 }
  0x8f   : > { %p5670_p8 = pneg %p5669_p1 }
  0x91   : > { %p5675_p4 = pnand %p5673_p11, %p5670_p8 }
  0x93   : > { %5678 = shalt.err (!%p5675_p4)
}
  0x94   : > { %s5679_s1 = scalar_lea.vmem %s425_s4, 4096  ;;  %p5687_p3 = scmp.lt.s32.totalorder %s425_s4, %s425_s4 }
  0x95   : > { %p5680_p10 = scmp.ne.s32.totalorder %s425_s4, %s5679_s1  ;;  %p5688_p6 = scmp.lt.s32.totalorder %s5679_s1, %s5679_s1 }
  0x97   : > { %p5682_p13 = pnand %p5680_p10, %p6098_p7  ;;  %p5689_p9 = por %p5688_p6, %p5687_p3 }
  0x99   : > { %p5683_p2 = pneg %p5682_p13 }
  0x9b   : > { %p5690_p0 = pnand %p5689_p9, %p5683_p2 }
  0x9d   : > { %5693 = shalt.err (!%p5690_p0)
}
  0x9e   : > { %p7149_p5 = scmp.ne.s32.totalorder %s7135_s28, 0  ;;  %s7150_s8 = smov 4  }
  0x9f   : > { %s7151_s30 = smov 64   ;;  %s7152_s10 = sld [smem:[#allocation45_spill]] }
  0xa0   : > { %5301 = dma.hbm_to_vmem [thread:$0]  (!%p7149_p5), %s7148_s6, 4096, %s425_s4, [#allocation13], %s7151_s30, %s7151_s30, %s7150_s8  }
  0xa5   : > { %s5694_s25 = scalar_lea.hbm %s7152_s10, 2048 }
  0xa6   : > { %p5695_p1 = scmp.ne.s32.totalorder %s7152_s10, %s5694_s25  ;;  %p5701_p11 = scmp.lt.u32.totalorder %s5694_s25, %s7152_s10 }
  0xa8   : > { %p5697_p0 = pnand %p5695_p1, %p6098_p7 }
  0xaa   : > { %p5698_p8 = pneg %p5697_p0 }
  0xac   : > { %p5703_p4 = pnand %p5701_p11, %p5698_p8 }
  0xae   : > { %5706 = shalt.err (!%p5703_p4)
}
  0xaf   : > { %s5707_s1 = scalar_lea.vmem %s457_s13, 2048  ;;  %p5715_p3 = scmp.lt.s32.totalorder %s457_s13, %s457_s13 }
  0xb0   : > { %p5708_p10 = scmp.ne.s32.totalorder %s457_s13, %s5707_s1  ;;  %p5716_p6 = scmp.lt.s32.totalorder %s5707_s1, %s5707_s1 }
  0xb2   : > { %p5710_p13 = pnand %p5708_p10, %p6098_p7  ;;  %p5717_p9 = por %p5716_p6, %p5715_p3 }
  0xb4   : > { %p5711_p2 = pneg %p5710_p13 }
  0xb6   : > { %p5718_p12 = pnand %p5717_p9, %p5711_p2 }
  0xb8   : > { %5721 = shalt.err (!%p5718_p12)
}
  0xb9   : > { %s7153_s28 = sld [smem:[#allocation25_spill]]  ;;  %s4708_s26 = sadd.s32 4294967294, %s5916_s23  }
  0xba   : > { %5307 = dma.hbm_to_vmem [thread:$0]  (!%p7149_p5), %s7152_s10, 2048, %s457_s13, [#allocation16], %s7151_s30, %s7151_s30, %s7150_s8  }
  0xbb   : > { %s44_s15 = sadd.s32 1, %s5908_s21  ;;  %s47_s3 = sadd.s32 1, %s5912_s22 }
  0xbc   : > { %p45_p7 = scmp.ge.s32.totalorder %s44_s15, 2  ;;  %s56_s7 = sadd.s32 1, %s5896_s18 }
  0xbd   : > { %p63_p12 = scmp.ne.s32.totalorder %s5896_s18, %s5892_s17  ;;  %p69_p1 = scmp.ne.s32.totalorder %s5892_s17, %s5888_s16 }
  0xbe   : > { %s7215_s15 = smov (%p45_p7, %s44_s15), 0  ;;  %s7217_s3 = smov (!%p45_p7, %s47_s3), %s5912_s22 }
  0xbf   : > { %7154 = sst [smem:[#allocation33_spill]] %s7215_s15  ;;  %s52_s25 = ssub.s32 %s5908_s21, %s7215_s15 }
  0xc0   : > { %p7155_p0 = scmp.eq.s32.totalorder %s5916_s23, 0  ;;  %p49_p8 = scmp.ge.s32.totalorder %s7217_s3, 2 }
  0xc1   : > { %p7157_p11 = scmp.eq.s32.totalorder %s6071_s24, 0  ;;  %s82_s30 = sadd.s32 1, %s7153_s28 }
  0xc2   : > { %p6276_p5 = por %p7155_p0, %p63_p12  ;;  %p383_p10 = scmp.eq.s32.totalorder %s6071_s24, 3 }
  0xc3   : > { %p6285_p4 = por %p7157_p11, %p69_p1  ;;  %s7219_s3 = smov (%p49_p8, %s7217_s3), 0 }
  0xc4   : > { %7159 = sst [smem:[#allocation34_spill]] %s7219_s3  ;;  %p6293_p13 = por %p383_p10, %p63_p12 }
  0xc5   : > { %s7158_s8 = scalar_select %p6285_p4, 1, 0 }
  0xc6   : > { %s7160_s11 = scalar_select %p6293_p13, 1, 0 }
  0xc7   : > { %p389_p2 = scmp.eq.s32.totalorder %s4708_s26, 3  ;;  %s51_s19 = ssub.s32 %s5912_s22, %s7219_s3 }
  0xc8   : > { %7161 = sst [smem:[#allocation35_spill]] %s7160_s11  ;;  %s479_s9 = sand.u32 1, %s5896_s18  }
  0xc9   : > { %s53_s27 = sor.u32 %s52_s25, %s51_s19  ;;  %p80_p3 = scmp.eq.s32.totalorder %s51_s19, 0 }
  0xca   : > { %s7162_s1 = sld [smem:[#allocation32_spill]]  ;;  %p54_p6 = scmp.eq.s32.totalorder %s53_s27, 0 }
  0xcb   : > { %p6303_p9 = por %p389_p2, %p69_p1  ;;  %s7221_s28 = smov (!%p80_p3, %s7153_s28), %s82_s30 }
  0xcc   : > { %s6311_s29 = scalar_select %p54_p6, %s5896_s18, %s56_s7  }
  0xcd   : > { %s7163_s4 = scalar_select %p6303_p9, 1, 0 }
  0xce   : > { %s4715_s26 = sshll.u32 %s479_s9, 3  ;;  %s4716_s6 = sshll.u32 %s5912_s22, 1 }
  0xcf   : > { %s488_s10 = sadd.s32 %s5908_s21, %s4716_s6  ;;  %s483_s25 = scalar_lea.vmem [#allocation6], %s4715_s26 }
  0xd0   : > { %s492_s3 = sshll.u32 %s483_s25, 4  ;;  %s4717_s19 = sshll.u32 %s488_s10, 7  ;;  %s6317_s3 = int_to_ptr.vmem [resolvable:$true] %s492_s3 }
  0xd1   : > { %s7164_s16 = sld [smem:[#allocation36_spill]]  ;;  %p7166_p7 = scmp.lt.s32.totalorder %s5916_s23, 4 }
  0xd2   : > { %s5722_s30 = scalar_lea.hbm %s6214_s12, 256  ;;  %p7168_p0 = scmp.ne.s32.totalorder %s7162_s1, 0 }
  0xd3   : > { %p6328_p12 = pnand %p7166_p7, %p6276_p5  ;;  %p5723_p1 = scmp.ne.s32.totalorder %s6214_s12, %s5722_s30 }
  0xd4   : > { %p7169_p8 = pneg %p7168_p0  ;;  %s5727_s26 = scalar_lea.hbm %s7054_s2, 512 }
  0xd5   : > { %p5728_p2 = scmp.lt.u32.totalorder %s6214_s12, %s7054_s2  ;;  %p5729_p3 = scmp.lt.u32.totalorder %s5727_s26, %s5722_s30 }
  0xd6   : > { %p5725_p11 = pnand %p5723_p1, %p7169_p8  ;;  %p5731_p5 = scmp.lt.u32.totalorder %s5722_s30, %s6214_s12 }
  0xd7   : > { %s7165_s11 = smov %s7164_s16  ;;  %s6322_s24 = scalar_lea.hbm %s7164_s16, %s4717_s19 }
  0xd8   : > { %p5726_p10 = pneg %p5725_p11  ;;  %p5730_p6 = por %p5729_p3, %p5728_p2 }
  0xda   : > { %p5732_p7 = por %p5731_p5, %p5730_p6 }
  0xdc   : > { %p5733_p9 = pnand %p5732_p7, %p5726_p10 }
  0xde   : > { %5736 = shalt.err (!%p5733_p9)
}
  0xdf   : > { %s5737_s16 = scalar_lea.vmem %s6217_s20, 256  ;;  %s5927_s13 = smov [#allocation11]  }
  0xe0   : > { %p5738_p1 = scmp.ne.s32.totalorder %s6217_s20, %s5737_s16  ;;  %s5742_s19 = sshll.u32 %s5927_s13, 4  ;;  %s5743_s19 = int_to_ptr.vmem [resolvable:$false] %s5742_s19 }
  0xe1   : > { %s5744_s27 = scalar_lea.vmem %s5743_s19, 512  ;;  %p5745_p4 = scmp.lt.s32.totalorder %s6217_s20, %s5743_s19 }
  0xe2   : > { %p5740_p11 = pnand %p5738_p1, %p7169_p8  ;;  %p5746_p2 = scmp.lt.s32.totalorder %s5744_s27, %s5737_s16 }
  0xe4   : > { %p5741_p13 = pneg %p5740_p11  ;;  %p5747_p3 = por %p5746_p2, %p5745_p4 }
  0xe6   : > { %p5748_p6 = pnand %p5747_p3, %p5741_p13 }
  0xe8   : > { %5751 = shalt.err (!%p5748_p6)
}
  0xe9   : > { %5317 = dma.hbm_to_vmem [thread:$0]  (!%p7168_p0), %s6214_s12, 256, %s6217_s20, %s6178_s5, %s7146_s14, %s7146_s14, %s7145_s0  }
  0xea   : > { %s480_s30 = scalar_lea.sflag [#allocation7], %s479_s9  ;;  %s5752_s6 = scalar_lea.hbm %s6322_s24, 128 }
  0xeb   : > { %p5753_p4 = scmp.ne.s32.totalorder %s6322_s24, %s5752_s6  ;;  %p5754_p13 = pneg %p6328_p12 }
  0xec   : > { %s5757_s26 = scalar_lea.hbm %s7165_s11, 512  ;;  %p5758_p5 = scmp.lt.u32.totalorder %s6322_s24, %s7165_s11 }
  0xed   : > { %p5755_p9 = pnand %p5754_p13, %p5753_p4  ;;  %p5759_p7 = scmp.lt.u32.totalorder %s5757_s26, %s5752_s6 }
  0xee   : > { %p5761_p1 = scmp.lt.u32.totalorder %s5752_s6, %s6322_s24 }
  0xef   : > { %p5756_p10 = pneg %p5755_p9  ;;  %p5760_p0 = por %p5759_p7, %p5758_p5 }
  0xf1   : > { %p5762_p8 = por %p5761_p1, %p5760_p0 }
  0xf3   : > { %p5763_p11 = pnand %p5762_p8, %p5756_p10 }
  0xf5   : > { %5766 = shalt.err (!%p5763_p11)
}
  0xf6   : > { %s5767_s5 = scalar_lea.vmem %s6317_s3, 128  ;;  %s5928_s0 = smov [#allocation6]  }
  0xf7   : > { %p5768_p2 = scmp.ne.s32.totalorder %s6317_s3, %s5767_s5  ;;  %s5772_s14 = sshll.u32 %s5928_s0, 4  ;;  %s5773_s14 = int_to_ptr.vmem [resolvable:$false] %s5772_s14 }
  0xf8   : > { %s5774_s12 = scalar_lea.vmem %s5773_s14, 256  ;;  %p5775_p4 = scmp.lt.s32.totalorder %s6317_s3, %s5773_s14 }
  0xf9   : > { %p5770_p3 = pnand %p5768_p2, %p5754_p13  ;;  %p5776_p9 = scmp.lt.s32.totalorder %s5774_s12, %s5767_s5 }
  0xfb   : > { %p5771_p6 = pneg %p5770_p3  ;;  %p5777_p5 = por %p5776_p9, %p5775_p4 }
  0xfd   : > { %p5778_p7 = pnand %p5777_p5, %p5771_p6 }
  0xff   : > { %5781 = shalt.err (!%p5778_p7)
}
 0x100   : > { %5311 = dma.hbm_to_vmem [thread:$0]  (!%p6328_p12), %s6322_s24, 128, %s6317_s3, %s480_s30  }
 0x101   : > { %s7170_s20 = sld [smem:[#allocation30_spill]] }
 0x107   : > { %p7171_p10 = scmp.ne.s32.totalorder %s7170_s20, 0 }
 0x108   : > { %s6389_s9 = sand.u32 (!%p7171_p10), 1, %s5892_s17   ;;  %p7172_p13 = scmp.ne.s32.totalorder (!%p7171_p10), %s7158_s8, 0 }
 0x109   : > { %549 = sbr.rel (%p7171_p10) target bundleno = 4995 (0x1383), region = 76  ;;  %s4725_s16 = sshll.u32 (!%p7171_p10), %s6389_s9, 3 }
 0x10a   : > { %s552_s13 = scalar_lea.sflag (!%p7171_p10), [#allocation7], %s6389_s9  ;;  %s6393_s19 = scalar_lea.vmem (!%p7171_p10), [#allocation6], %s4725_s16 }
 0x110   : > { %5855 = dma.done.wait (%p7172_p13), %s552_s13, 128  }
 0x111   : > { %5857 = vsyncadd (%p7172_p13), %s552_s13, 4294967168  ;;  %s7173_s7 = sld [smem:[#allocation29_spill]]  ;;  %s7174_s24 = sld [smem:[#allocation24_spill]] }
 0x112   : > { %s7175_s3 = sld [smem:[#allocation31_spill]] }
 0x117   : > { %s560_s27 = sand.u32 1, %s7173_s7   ;;  %s562_s30 = sand.u32 1, %s7174_s24  }
 0x118   : > { %s6401_s6 = sshll.u32 %s562_s30, 4  ;;  %s561_s1 = scalar_lea.sflag [#allocation10], %s560_s27 }
 0x119   : > { %s564_s10 = scalar_lea.vmem [#allocation9], %s6401_s6  ;;  %p7176_p12 = scmp.ne.s32.totalorder %s7175_s3, 0 }
 0x11b   : > { %5859 = dma.done.wait (%p7176_p12), %s561_s1, 512  }
 0x11c   : > { %5861 = vsyncadd (%p7176_p12), %s561_s1, 4294966784  ;;  %s573_s26 = scalar_lea.vmem [#allocation11], %s6401_s6  ;;  %p7177_p0 = scmp.eq.s32.totalorder %s7173_s7, 0 }
 0x11e   : > { %5863 = dma.done.wait (%p7177_p0), [#allocation13], 8192   ;;  %p7178_p1 = pmov %p7177_p0 }
 0x11f   : > { %p7179_p8 = pmov %p7177_p0 }
 0x120   : > { %5865 = vsyncadd (%p7178_p1), [#allocation13], 4294959104 }
 0x121   : > { %5867 = dma.done.wait (%p7179_p8), [#allocation16], 4096   ;;  %p7180_p11 = pmov %p7177_p0 }
 0x122   : > { %s7181_s8 = sld [smem:[#allocation28_spill]]  ;;  %s7182_s5 = sld [smem:[#allocation38_spill]] }
 0x123   : > { %5869 = vsyncadd (%p7180_p11), [#allocation16], 4294963200  ;;  %s6425_s14 = scalar_lea.vmem [#allocation18], %s4725_s16  ;;  %s7183_s12 = sld [smem:[#allocation27_spill]] }
 0x128   : > { %p647_p2 = scmp.lt.s32.totalorder %s7181_s8, 1 }
 0x129   : > { %p4733_p3 = scmp.ne.s32.totalorder %s7183_s12, 0 }
 0x12a   : > { %s7223_s8 = smov (!%p647_p2, %s7181_s8), 1  ;;  %v5438_v0 = vld [vmem:[#allocation12 + $0x40] sm:$0xff] (!%p4733_p3)   ;;  %v5929_v1 = vmov (!%p4733_p3), 0.0   ;;  %v5440_v3 = vld [vmem:[#allocation12 + $0x48] sm:$0xff] (!%p4733_p3)   ;;  %vm5930_vm0 = vmmov (!%p4733_p3), 0   ;;  %v5442_v5 = vld [vmem:[#allocation12 + $0x50] sm:$0xff] (!%p4733_p3)  }
 0x12b   : > { %s649_s0 = scalar_lea.vmem %s7182_s5, %s7223_s8  ;;  %654 = sbr.rel (%p4733_p3) target bundleno = 583 (0x247), region = 108  ;;  %5015 = vmatprep.subr.bf16.mxu0 (!%p4733_p3), %v5929_v1  ;;  %5035 = vmatprep.subr.bf16.mxu1 (!%p4733_p3), %v5929_v1  ;;  %v5439_v2 = vld [vmem:[#allocation12 + $0x80] sm:$0xff] (!%p4733_p3)   ;;  %v5441_v4 = vld [vmem:[#allocation12 + $0x88] sm:$0xff] (!%p4733_p3)   ;;  %v5443_v6 = vld [vmem:[#allocation12 + $0x90] sm:$0xff] (!%p4733_p3)  }
 0x12c   : > { %5016 = vmatpush3.bf16.msra.mxu0 (!%p4733_p3), %v5438_v0  ;;  %5031 = vmatprep.mubr.msk.bf16.mxu0 (!%p4733_p3), %vm5930_vm0, %v5929_v1  ;;  %v5444_v7 = vld [vmem:[#allocation12 + $0x58] sm:$0xff] (!%p4733_p3)   ;;  %v5446_v9 = vld [vmem:[#allocation12 + $0x60] sm:$0xff] (!%p4733_p3)   ;;  %v5448_v11 = vld [vmem:[#allocation12 + $0x68] sm:$0xff] (!%p4733_p3)   ;;  %s7184_s13 = sld [smem:[#allocation40_spill]] (!%p4733_p3)  ;;  %s7185_s30 = sld [smem:[#allocation42_spill]] (!%p4733_p3) }
 0x12d   : > { %5036 = vmatpush3.bf16.msra.mxu1 (!%p4733_p3), %v5439_v2  ;;  %5017 = vmatprep.subr.bf16.mxu0 (!%p4733_p3), %v5929_v1  ;;  %v5445_v8 = vld [vmem:[#allocation12 + $0x98] sm:$0xff] (!%p4733_p3)   ;;  %v5447_v10 = vld [vmem:[#allocation12 + $0xa0] sm:$0xff] (!%p4733_p3)   ;;  %v5449_v12 = vld [vmem:[#allocation12 + $0xa8] sm:$0xff] (!%p4733_p3)  }
 0x12e   : > { %5037 = vmatprep.subr.bf16.mxu1 (!%p4733_p3), %v5929_v1  ;;  %5051 = vmatprep.mubr.msk.bf16.mxu1 (!%p4733_p3), %vm5930_vm0, %v5929_v1  ;;  %v5450_v13 = vld [vmem:[#allocation12 + $0x70] sm:$0xff] (!%p4733_p3)   ;;  %v5452_v15 = vld [vmem:[#allocation12 + $0x78] sm:$0xff] (!%p4733_p3)   ;;  %v5454_v20 = vld [vmem:[#allocation14 + $0x40] sm:$0xff] (!%p4733_p3)  }
 0x12f   : > { %v5451_v14 = vld [vmem:[#allocation12 + $0xb0] sm:$0xff] (!%p4733_p3)   ;;  %v656_v17 = vld [vmem:[%s564_s10 + $0x8] sm:$0xff] (!%p4733_p3)  ;;  %v5455_v21 = vld [vmem:[#allocation14 + $0x80] sm:$0xff] (!%p4733_p3)  }
 0x130   : > { %5018 = vmatpush3.bf16.msra.mxu0 (!%p4733_p3), %v5440_v3  ;;  %v655_v16 = vld [vmem:[%s564_s10] sm:$0xff] (!%p4733_p3)  ;;  %v5453_v18 = vld [vmem:[#allocation12 + $0xb8] sm:$0xff] (!%p4733_p3)   ;;  %v5456_v22 = vld [vmem:[#allocation14 + $0x48] sm:$0xff] (!%p4733_p3)  }
 0x131   : > { %5038 = vmatpush3.bf16.msra.mxu1 (!%p4733_p3), %v5441_v4  ;;  %5019 = vmatprep.subr.bf16.mxu0 (!%p4733_p3), %v5929_v1  ;;  %v657_v19 = vpack.c.bf16 (!%p4733_p3), %v656_v17, %v655_v16  ;;  %v5457_v23 = vld [vmem:[#allocation14 + $0x88] sm:$0xff] (!%p4733_p3)   ;;  %v5458_v24 = vld [vmem:[#allocation14 + $0x50] sm:$0xff] (!%p4733_p3)   ;;  %v5460_v26 = vld [vmem:[#allocation14 + $0x58] sm:$0xff] (!%p4733_p3)  }
 0x132   : > { %5039 = vmatprep.subr.bf16.mxu1 %v5929_v1  ;;  %v5459_v25 = vld [vmem:[#allocation14 + $0x90] sm:$0xff]   ;;  %v5461_v27 = vld [vmem:[#allocation14 + $0x98] sm:$0xff]   ;;  %v5462_v28 = vld [vmem:[#allocation14 + $0x60] sm:$0xff]  }
 0x133   : > { %v5463_v29 = vld [vmem:[#allocation14 + $0xa0] sm:$0xff]   ;;  %v5464_v30 = vld [vmem:[#allocation14 + $0x68] sm:$0xff]   ;;  %v5466_v32 = vld [vmem:[#allocation14 + $0x70] sm:$0xff]  }
 0x134   : > { %5020 = vmatpush3.bf16.msra.mxu0 %v5442_v5  ;;  %v5465_v31 = vld [vmem:[#allocation14 + $0xa8] sm:$0xff]   ;;  %v5467_v33 = vld [vmem:[#allocation14 + $0xb0] sm:$0xff]   ;;  %v5468_v34 = vld [vmem:[#allocation14 + $0x78] sm:$0xff]  }
 0x135   : > { %5040 = vmatpush3.bf16.msra.mxu1 %v5443_v6  ;;  %5021 = vmatprep.subr.bf16.mxu0 %v5929_v1  ;;  %v884_v35 = vld [vmem:[%s573_s26] sm:$0xff]  ;;  %v885_v36 = vld [vmem:[%s573_s26 + $0x8] sm:$0xff] }
 0x136   : > { %5041 = vmatprep.subr.bf16.mxu1 %v5929_v1  ;;  %v5469_v37 = vld [vmem:[#allocation14 + $0xb8] sm:$0xff]   ;;  %v886_v38 = vpack.c.bf16 %v885_v36, %v884_v35  ;;  %v4734_v39 = vld [vmem:[%s7184_s13 + $0x1] ss:$0 sm:$0xff]  ;;  %v4743_v40 = vld [vmem:[%s7184_s13 + $0x2] ss:$0 sm:$0xff] }
 0x137   : > { %v4752_v55 = vld [vmem:[%s7185_s30 + $0x1] ss:$0 sm:$0xff]  ;;  %v4761_v57 = vld [vmem:[%s7185_s30 + $0x2] ss:$0 sm:$0xff] }
 0x138   : > { %5022 = vmatpush3.bf16.msra.mxu0 %v5444_v7 }
 0x139   : > { %5042 = vmatpush3.bf16.msra.mxu1 %v5445_v8  ;;  %5023 = vmatprep.subr.bf16.mxu0 %v5929_v1 }
 0x13a   : > { %5043 = vmatprep.subr.bf16.mxu1 %v5929_v1 }
 0x13c   : > { %5024 = vmatpush3.bf16.msra.mxu0 %v5446_v9 }
 0x13d   : > { %5044 = vmatpush3.bf16.msra.mxu1 %v5447_v10  ;;  %5025 = vmatprep.subr.bf16.mxu0 %v5929_v1 }
 0x13e   : > { %5045 = vmatprep.subr.bf16.mxu1 %v5929_v1 }
 0x140   : > { %5026 = vmatpush3.bf16.msra.mxu0 %v5448_v11 }
 0x141   : > { %5046 = vmatpush3.bf16.msra.mxu1 %v5449_v12  ;;  %5027 = vmatprep.subr.bf16.mxu0 %v5929_v1 }
 0x142   : > { %5047 = vmatprep.subr.bf16.mxu1 %v5929_v1 }
 0x144   : > { %5028 = vmatpush3.bf16.msra.mxu0 %v5450_v13 }
 0x145   : > { %5048 = vmatpush3.bf16.msra.mxu1 %v5451_v14  ;;  %5029 = vmatprep.subr.bf16.mxu0 %v5929_v1 }
 0x146   : > { %5049 = vmatprep.subr.bf16.mxu1 %v5929_v1 }
 0x148   : > { %5030 = vmatpush3.bf16.msra.mxu0 %v5452_v15 }
 0x149   : > { %5050 = vmatpush3.bf16.msra.mxu1 %v5453_v18  ;;  %5055 = vmatprep.subr.bf16.mxu0 %v5929_v1 }
 0x14a   : > { %5075 = vmatprep.subr.bf16.mxu1 %v5929_v1 }
 0x14b   : > { %5032 = vmatmul.mubr.bf16.vlgmr.msra.gmra.mrb[0].mxu0 %v657_v19 }
 0x14c   : > { %5052 = vmatmul.mubr.bf16.vlgmr.msra.gmra.mrb[0].mxu1 %v657_v19  ;;  %5056 = vmatpush3.bf16.msra.mxu0 %v5454_v20 }
 0x14d   : > { %5076 = vmatpush3.bf16.msra.mxu1 %v5455_v21  ;;  %5057 = vmatprep.subr.bf16.mxu0 %v5929_v1 }
 0x14e   : > { %5077 = vmatprep.subr.bf16.mxu1 %v5929_v1  ;;  %5071 = vmatprep.mubr.msk.bf16.mxu0 %vm5930_vm0, %v5929_v1 }
 0x14f   : > { %5091 = vmatprep.mubr.msk.bf16.mxu1 %vm5930_vm0, %v5929_v1 }
 0x150   : > { %5058 = vmatpush3.bf16.msra.mxu0 %v5456_v22 }
 0x151   : > { %5078 = vmatpush3.bf16.msra.mxu1 %v5457_v23  ;;  %5059 = vmatprep.subr.bf16.mxu0 %v5929_v1 }
 0x152   : > { %5079 = vmatprep.subr.bf16.mxu1 %v5929_v1 }
 0x154   : > { %5060 = vmatpush3.bf16.msra.mxu0 %v5458_v24 }
 0x155   : > { %5080 = vmatpush3.bf16.msra.mxu1 %v5459_v25  ;;  %5061 = vmatprep.subr.bf16.mxu0 %v5929_v1 }
 0x156   : > { %5081 = vmatprep.subr.bf16.mxu1 %v5929_v1 }
 0x158   : > { %5062 = vmatpush3.bf16.msra.mxu0 %v5460_v26 }
 0x159   : > { %5082 = vmatpush3.bf16.msra.mxu1 %v5461_v27  ;;  %5063 = vmatprep.subr.bf16.mxu0 %v5929_v1 }
 0x15a   : > { %5083 = vmatprep.subr.bf16.mxu1 %v5929_v1 }
 0x15c   : > { %5064 = vmatpush3.bf16.msra.mxu0 %v5462_v28 }
 0x15d   : > { %5084 = vmatpush3.bf16.msra.mxu1 %v5463_v29  ;;  %5065 = vmatprep.subr.bf16.mxu0 %v5929_v1 }
 0x15e   : > { %5085 = vmatprep.subr.bf16.mxu1 %v5929_v1 }
 0x160   : > { %5066 = vmatpush3.bf16.msra.mxu0 %v5464_v30 }
 0x161   : > { %5086 = vmatpush3.bf16.msra.mxu1 %v5465_v31  ;;  %5067 = vmatprep.subr.bf16.mxu0 %v5929_v1 }
 0x162   : > { %5087 = vmatprep.subr.bf16.mxu1 %v5929_v1 }
 0x164   : > { %5068 = vmatpush3.bf16.msra.mxu0 %v5466_v32 }
 0x165   : > { %5088 = vmatpush3.bf16.msra.mxu1 %v5467_v33  ;;  %5069 = vmatprep.subr.bf16.mxu0 %v5929_v1 }
 0x166   : > { %5089 = vmatprep.subr.bf16.mxu1 %v5929_v1 }
 0x168   : > { %5070 = vmatpush3.bf16.msra.mxu0 %v5468_v34 }
 0x169   : > { %5090 = vmatpush3.bf16.msra.mxu1 %v5469_v37 }
 0x16b   : > { %5072 = vmatmul.mubr.bf16.vlgmr.msra.gmra.mrb[4].mxu0 %v886_v38 }
 0x16c   : > { %5092 = vmatmul.mubr.bf16.vlgmr.msra.gmra.mrb[4].mxu1 %v886_v38 }
 0x21e   : > { %v762_v41 = vpop.f32.mrb[0].mxu0 }
 0x21f   : > { %v763_v42 = vadd.f32 %v4734_v39, %v762_v41  ;;  %v873_v43 = vpop.f32.mrb[0].mxu1  ;;  %v5033_v44 = vpop.f32.mrb[1].mxu0 }
 0x220   : > { %v874_v45 = vadd.f32 %v4743_v40, %v873_v43  ;;  %v5053_v46 = vpop.f32.mrb[1].mxu1  ;;  %v765_v47 = vpop.f32.mrb[2].mxu0 }
 0x221   : > { %v766_v48 = vadd.f32 %v4734_v39, %v765_v47  ;;  %v876_v49 = vpop.f32.mrb[2].mxu1  ;;  %v5034_v50 = vpop.f32.mrb[3].mxu0 }
 0x222   : > { %v877_v51 = vadd.f32 %v4743_v40, %v876_v49  ;;  %v5054_v52 = vpop.f32.mrb[3].mxu1 }
 0x223   : > { %v880_v53 = vpack.c.bf16 %v766_v48, %v763_v42 }
 0x224   : > { %v881_v54 = vpack.c.bf16 %v877_v51, %v874_v45 }
 0x225   : > { %882 = vst [vmem:[#allocation2] sm:$0xff] %v880_v53 }
 0x226   : > { %883 = vst [vmem:[#allocation3] sm:$0xff] %v881_v54 }
 0x23e   : > { %v991_v56 = vpop.f32.mrb[4].mxu0 }
 0x23f   : > { %v1102_v58 = vpop.f32.mrb[4].mxu1  ;;  %v5073_v59 = vpop.f32.mrb[5].mxu0  ;;  %v992_v62 = vadd.f32 %v4752_v55, %v991_v56 }
 0x240   : > { %v5093_v60 = vpop.f32.mrb[5].mxu1  ;;  %v994_v61 = vpop.f32.mrb[6].mxu0  ;;  %v1103_v2 = vadd.f32 %v4761_v57, %v1102_v58 }
 0x241   : > { %v995_v63 = vadd.f32 %v4752_v55, %v994_v61  ;;  %v1105_v0 = vpop.f32.mrb[6].mxu1  ;;  %v5074_v1 = vpop.f32.mrb[7].mxu0 }
 0x242   : > { %v1106_v3 = vadd.f32 %v4761_v57, %v1105_v0  ;;  %v5094_v4 = vpop.f32.mrb[7].mxu1 }
 0x243   : > { %v1109_v5 = vpack.c.bf16 %v995_v63, %v992_v62 }
 0x244   : > { %v1110_v6 = vpack.c.bf16 %v1106_v3, %v1103_v2 }
 0x245   : > { %1111 = vst [vmem:[#allocation4] sm:$0xff] %v1109_v5 }
 0x246   : > { %1112 = vst [vmem:[#allocation5] sm:$0xff] %v1110_v6 }
 0x247 PF: > { %v5470_v7 = vld [vmem:[#allocation12] sm:$0xff]   ;;  %v5931_v8 = vmov 0.0   ;;  %v5471_v9 = vld [vmem:[#allocation12 + $0x8] sm:$0xff]   ;;  %vm5932_vm1 = vmmov 0   ;;  %v5472_v10 = vld [vmem:[#allocation12 + $0x10] sm:$0xff]   ;;  %s5933_s10 = smov 96   ;;  %v1115_v24 = vlaneseq }
 0x248   : > { %5095 = vmatprep.subr.bf16.mxu0 %v5931_v8  ;;  %5115 = vmatprep.subr.bf16.mxu1 %v5931_v8  ;;  %v5473_v11 = vld [vmem:[#allocation12 + $0x18] sm:$0xff]   ;;  %v1123_v12 = vld [vmem:[#allocation2] sm:$0xff]  ;;  %s5934_s26 = smov 32   ;;  %v5474_v13 = vld [vmem:[#allocation12 + $0x20] sm:$0xff]   ;;  %s5935_s25 = smov 64   ;;  %v5937_v29 = vmov 0  }
 0x249   : > { %5096 = vmatpush3.bf16.msra.mxu0 %v5470_v7  ;;  %5111 = vmatprep.mubr.msk.bf16.mxu0 %vm5932_vm1, %v5931_v8  ;;  %v5475_v14 = vld [vmem:[#allocation12 + $0x28] sm:$0xff]   ;;  %v5476_v15 = vld [vmem:[#allocation12 + $0x30] sm:$0xff]   ;;  %v5477_v16 = vld [vmem:[#allocation12 + $0x38] sm:$0xff]   ;;  %v5936_v22 = vmov 1983009808   ;;  %v1135_v25 = vshrl.u32 %v1123_v12, 16  ;;  %v6514_v30 = vpack.i.b16 %v5937_v29, %v5937_v29 }
 0x24a   : > { %5097 = vmatprep.subr.bf16.mxu0 %v5931_v8  ;;  %5117 = vmatprep.mubr.msk.bf16.mxu1 %vm5932_vm1, %v5931_v8  ;;  %v6504_v17 = vld [vmem:[%s6393_s19] sm:$0xff]  ;;  %v1155_v23 = vunpack.c.l.s4 %v5936_v22  ;;  %v6517_v34 = vshrl.u32 %v1115_v24, 7  ;;  %v5938_v37 = vmov 1934713408   ;;  %s7186_s5 = sld [smem:[#allocation40_spill]]  ;;  %vm1949_vm2 = vcmask 261120  }
 0x24b   : > { %1125 = vrot.lane.b32.xlu0 %v1123_v12, %s5933_s10  ;;  %1129 = vrot.lane.b32.xlu1 %v1123_v12, %s5934_s26  ;;  %v1669_v18 = vpack.c.bf16 %v6504_v17, %v6504_v17  ;;  %v1186_v38 = vunpack.c.l.s4 %v5938_v37  ;;  %s7187_s12 = sld [smem:[#allocation27_spill]]  ;;  %vm2134_vm4 = vcmask 130048   ;;  %vm2504_vm5 = vcmask 523264   ;;  %s7189_s6 = sld [smem:[#allocation48_spill]] }
 0x24c   : > { %v1156_v33 = vunpack.c.0.s8 %v1155_v23  ;;  %vm2506_vm6 = vcmask 785408   ;;  %s7188_s3 = sld [smem:[#allocation47_spill]]  ;;  %s7190_s15 = sld [smem:[#allocation42_spill]] }
 0x24d   : > { %5098 = vmatpush3.bf16.msra.mxu0 %v5471_v9  ;;  %v1187_v44 = vunpack.c.0.s8 %v1186_v38  ;;  %s7192_s27 = sld [smem:[#allocation44_spill]]  ;;  %s7193_s19 = sld [smem:[#allocation46_spill]] }
 0x24e   : > { %5099 = vmatprep.subr.bf16.mxu0 %v5931_v8  ;;  %v6522_v41 = vsub.s32 %v1156_v33, %v6517_v34  ;;  %s4532_s13 = sshll.u32 %s6425_s14, 4  ;;  %s6990_s13 = int_to_ptr.vmem [resolvable:$true] %s4532_s13 }
 0x24f   : > { %1127 = vrot.lane.b32.xlu0 %v1123_v12, %s5935_s25  ;;  %v6535_v53 = vsub.s32 %v1187_v44, %v6517_v34  ;;  %s5782_s1 = scalar_lea.vmem %s6990_s13, 128 }
 0x250   : > { %p5783_p6 = scmp.ne.s32.totalorder %s6990_s13, %s5782_s1 }
 0x251   : > { %5100 = vmatpush3.bf16.msra.mxu0 %v5472_v10  ;;  %s4770_s20 = sshll.u32 %s7187_s12, 3 }
 0x252   : > { %5101 = vmatprep.subr.bf16.mxu0 %v5931_v8 }
 0x255   : > { %5102 = vmatpush3.bf16.msra.mxu0 %v5473_v11 }
 0x256   : > { %5103 = vmatprep.subr.bf16.mxu0 %v5931_v8 }
 0x259   : > { %5104 = vmatpush3.bf16.msra.mxu0 %v5474_v13 }
 0x25a   : > { %5105 = vmatprep.subr.bf16.mxu0 %v5931_v8 }
 0x25d   : > { %5106 = vmatpush3.bf16.msra.mxu0 %v5475_v14 }
 0x25e   : > { %5107 = vmatprep.subr.bf16.mxu0 %v5931_v8 }
 0x261   : > { %5108 = vmatpush3.bf16.msra.mxu0 %v5476_v15 }
 0x262   : > { %5109 = vmatprep.subr.bf16.mxu0 %v5931_v8 }
 0x265   : > { %5110 = vmatpush3.bf16.msra.mxu0 %v5477_v16 }
 0x266   : > { %5163 = vmatprep.subr.bf16.mxu0 %v5931_v8 }
 0x268   : > { %5112 = vmatmul.mubr.bf16.vlgmr.msra.gmra.mrb[0].mxu0 %v1669_v18 }
 0x269   : > { %5179 = vmatprep.mubr.msk.bf16.mxu0 %vm5932_vm1, %v5931_v8 }
 0x2bd   : > { %v1126_v19 = vpop.permute.xlu0 %1125  ;;  %v1130_v20 = vpop.permute.xlu1 %1129 }
 0x2be   : > { %v1136_v26 = vshrl.u32 %v1126_v19, 16  ;;  %v1144_v27 = vshrl.u32 %v1130_v20, 16  ;;  %v1133_v31 = vpack.i.b16 %v1126_v19, %v1123_v12 }
 0x2c0   : > { %v1137_v35 = vpack.i.b16 %v1136_v26, %v1135_v25  ;;  %v1153_v39 = vcombine.high %v1133_v31, %v6514_v30  ;;  %v1160_v45 = vrot.slane %v1133_v31, %v6522_v41  ;;  %v4779_v25 = vld [vmem:[%s7186_s5] ss:$0 sm:$0xff] }
 0x2c1   : > { %v1128_v21 = vpop.permute.xlu0 %1127 }
 0x2c2   : > { %v1143_v28 = vshrl.u32 %v1128_v21, 16  ;;  %v1141_v32 = vpack.i.b16 %v1130_v20, %v1128_v21  ;;  %v1219_v42 = vcombine.high %v1137_v35, %v6514_v30  ;;  %v1167_v46 = vrot.slane %v1153_v39, %v6522_v41 }
 0x2c3   : > { %v1226_v49 = vrot.slane %v1137_v35, %v6522_v41 }
 0x2c4   : > { %v1145_v36 = vpack.i.b16 %v1144_v27, %v1143_v28  ;;  %v1168_v40 = vcombine.high %v1141_v32, %v6514_v30  ;;  %v1175_v47 = vrot.slane %v1141_v32, %v6522_v41  ;;  %v1233_v51 = vrot.slane %v1219_v42, %v6522_v41 }
 0x2c6   : > { %v1234_v43 = vcombine.high %v1145_v36, %v6514_v30  ;;  %v1182_v48 = vrot.slane %v1168_v40, %v6522_v41  ;;  %v1241_v50 = vrot.slane %v1145_v36, %v6522_v41  ;;  %v1183_v54 = vcombine.low %v1160_v45, %v1175_v47 }
 0x2c7   : > { %v1184_v55 = vcombine.high %v1160_v45, %v1175_v47 }
 0x2c8   : > { %v1248_v52 = vrot.slane %v1234_v43, %v6522_v41  ;;  %v1199_v56 = vcombine.low %v1167_v46, %v1182_v48  ;;  %v1200_v57 = vcombine.high %v1167_v46, %v1182_v48  ;;  %v1249_v58 = vcombine.low %v1226_v49, %v1241_v50 }
 0x2c9   : > { %v1250_v59 = vcombine.high %v1226_v49, %v1241_v50  ;;  %v1191_v62 = vrot.slane %v1183_v54, %v6535_v53  ;;  %v1198_v63 = vrot.slane %v1184_v55, %v6535_v53 }
 0x2ca   : > { %v1265_v60 = vcombine.low %v1233_v51, %v1248_v52  ;;  %v1266_v61 = vcombine.high %v1233_v51, %v1248_v52  ;;  %v1207_v0 = vrot.slane %v1199_v56, %v6535_v53  ;;  %v1214_v1 = vrot.slane %v1200_v57, %v6535_v53 }
 0x2cb   : > { %v1257_v2 = vrot.slane %v1249_v58, %v6535_v53  ;;  %v1264_v3 = vrot.slane %v1250_v59, %v6535_v53  ;;  %v1285_v6 = vcombine.low %v1191_v62, %v1198_v63  ;;  %v4771_v7 = vcombine.high %v1191_v62, %v1198_v63 }
 0x2cc   : > { %v1273_v4 = vrot.slane %v1265_v60, %v6535_v53  ;;  %v1280_v5 = vrot.slane %v1266_v61, %v6535_v53  ;;  %v1301_v9 = vcombine.low %v1207_v0, %v1214_v1  ;;  %v4772_v10 = vcombine.high %v1207_v0, %v1214_v1 }
 0x2cd   : > { %v1335_v11 = vcombine.low %v1257_v2, %v1264_v3  ;;  %v4773_v12 = vcombine.high %v1257_v2, %v1264_v3  ;;  %v1292_v15 = vrot.slane %v1285_v6, %v6522_v41  ;;  %v1300_v16 = vrot.slane %v4771_v7, %v6522_v41 }
 0x2ce   : > { %v1351_v13 = vcombine.low %v1273_v4, %v1280_v5  ;;  %v4774_v14 = vcombine.high %v1273_v4, %v1280_v5  ;;  %v1308_v18 = vrot.slane %v1301_v9, %v6522_v41  ;;  %v1316_v19 = vrot.slane %v4772_v10, %v6522_v41 }
 0x2cf   : > { %v1342_v20 = vrot.slane %v1335_v11, %v6522_v41  ;;  %v1350_v21 = vrot.slane %v4773_v12, %v6522_v41  ;;  %v1317_v26 = vcombine.low %v1292_v15, %v1300_v16 }
 0x2d0   : > { %v1358_v22 = vrot.slane %v1351_v13, %v6522_v41  ;;  %v1366_v23 = vrot.slane %v4774_v14, %v6522_v41  ;;  %v1325_v27 = vcombine.low %v1308_v18, %v1316_v19 }
 0x2d1   : > { %v1367_v28 = vcombine.low %v1342_v20, %v1350_v21  ;;  %v1324_v33 = vrot.slane %v1317_v26, %v6535_v53 }
 0x2d2   : > { %v1375_v31 = vcombine.low %v1358_v22, %v1366_v23  ;;  %v1332_v35 = vrot.slane %v1325_v27, %v6535_v53 }
 0x2d3   : > { %v1374_v38 = vrot.slane %v1367_v28, %v6535_v53 }
 0x2d4   : > { %v1382_v39 = vrot.slane %v1375_v31, %v6535_v53  ;;  %v1333_v42 = vcombine.low %v1324_v33, %v1332_v35  ;;  %v6560_v46 = vcombine.high %v1324_v33, %v1332_v35 }
 0x2d6   : > { %v1383_v45 = vcombine.low %v1374_v38, %v1382_v39  ;;  %v6562_v47 = vcombine.high %v1374_v38, %v1382_v39  ;;  %v1388_v48 = vshrl.u32 %v1333_v42, 16  ;;  %v1394_v54 = vshrl.u32 %v6560_v46, 16 }
 0x2d8   : > { %v1387_v50 = vpack.i.b16 %v1383_v45, %v1333_v42  ;;  %v1389_v51 = vshrl.u32 %v1383_v45, 16  ;;  %v1393_v52 = vpack.i.b16 %v6562_v47, %v6560_v46  ;;  %v1395_v55 = vshrl.u32 %v6562_v47, 16 }
 0x2da   : > { %v1954_v56 = vsel %vm1949_vm2, %v1387_v50, 0  ;;  %v1390_v57 = vpack.i.b16 %v1389_v51, %v1388_v48  ;;  %v6571_v58 = vpack.i.b16 %v1395_v55, %v1394_v54 }
 0x2db   : > { %5116 = vmatpush3.bf16.xpose.msra.mxu1 %v1954_v56 }
 0x2dc   : > { %5121 = vmatprep.subr.bf16.mxu1 %v5931_v8  ;;  %v2000_v54 = vsel %vm1949_vm2, %v1390_v57, 0 }
 0x33b   : > { %v1773_v32 = vpop.f32.mrb[0].mxu0 }
 0x33c   : > { %v1774_v36 = vadd.f32 %v4779_v25, %v1773_v32  ;;  %v5113_v37 = vpop.f32.mrb[1].mxu0 }
 0x33d   : > { %v1776_v40 = vpop.f32.mrb[2].mxu0 }
 0x33e   : > { %v1779_v43 = vmul.f32 0.17677669, %v1774_v36  ;;  %v5114_v44 = vpop.f32.mrb[3].mxu0 }
 0x340   : > { %v1780_v49 = vpack.c.bf16 %v1779_v43, %v1779_v43 }
 0x342   : > { %1784 = vrot.lane.b32.xlu0 %v1780_v49, %s5935_s25  ;;  %1782 = vrot.lane.b32.xlu1 %v1780_v49, %s5933_s10  ;;  %v1794_v61 = vrot.slane %v1780_v49, %v6522_v41 }
 0x346   : > { %1786 = vrot.lane.b32.xlu1 %v1780_v49, %s5934_s26 }
 0x3b4   : > { %v1785_v59 = vpop.permute.xlu0 %1784  ;;  %v1783_v60 = vpop.permute.xlu1 %1782 }
 0x3b5   : > { %v1802_v62 = vrot.slane %v1785_v59, %v6522_v41  ;;  %v1828_v4 = vrot.slane %v1783_v60, %v6522_v41  ;;  %v2046_v60 = vsel %vm1949_vm2, %v1393_v52, 0 }
 0x3b7   : > { %v1803_v63 = vcombine.low %v1794_v61, %v1802_v62  ;;  %v1804_v0 = vcombine.high %v1794_v61, %v1802_v62 }
 0x3b8   : > { %v1787_v1 = vpop.permute.xlu1 %1786 }
 0x3b9   : > { %v1811_v2 = vrot.slane %v1803_v63, %v6535_v53  ;;  %v1836_v3 = vrot.slane %v1787_v1, %v6522_v41  ;;  %v1818_v5 = vrot.slane %v1804_v0, %v6535_v53  ;;  %v2092_v63 = vsel %vm1949_vm2, %v6571_v58, 0 }
 0x3ba   : > { %v1117_v0 = vstv %s4770_s20  ;;  %v1120_v58 = vand.u32 127, %v1115_v24  ;;  %s7195_s20 = sld [smem:[#allocation35_spill]] }
 0x3bb   : > { %v1837_v6 = vcombine.low %v1828_v4, %v1836_v3  ;;  %v1838_v7 = vcombine.high %v1828_v4, %v1836_v3  ;;  %v1819_v9 = vcombine.high %v1811_v2, %v5937_v29  ;;  %v1820_v12 = vcombine.high %v1818_v5, %v5937_v29 }
 0x3bc   : > { %v1859_v13 = vshrl.u32 %v1811_v2, 16  ;;  %v1875_v20 = vshrl.u32 %v1818_v5, 16  ;;  %v1118_v1 = vadd.s32 %v1117_v0, %v6517_v34 }
 0x3bd   : > { %v1845_v10 = vrot.slane %v1837_v6, %v6535_v53  ;;  %v1852_v11 = vrot.slane %v1838_v7, %v6535_v53  ;;  %v1867_v19 = vshrl.u32 %v1819_v9, 16  ;;  %v1883_v28 = vshrl.u32 %v1820_v12, 16 }
 0x3be   : > { %vm1121_vm3 = vcmp.gt.s32.totalorder %v1120_v58, %v1118_v1 }
 0x3bf   : > { %v1853_v14 = vcombine.high %v1845_v10, %v5937_v29  ;;  %v1854_v15 = vcombine.high %v1852_v11, %v5937_v29  ;;  %v1857_v16 = vpack.i.b16 %v1845_v10, %v1811_v2  ;;  %v1860_v18 = vshrl.u32 %v1845_v10, 16 }
 0x3c0   : > { %v1873_v21 = vpack.i.b16 %v1852_v11, %v1818_v5  ;;  %v1876_v22 = vshrl.u32 %v1852_v11, 16  ;;  %v1122_v2 = vsel %vm1121_vm3, -1e+09, %v5931_v8  ;;  %p7197_p4 = scmp.ne.s32.totalorder %s7195_s20, 0 }
 0x3c1   : > { %v1861_v23 = vpack.i.b16 %v1860_v18, %v1859_v13  ;;  %v1865_v25 = vpack.i.b16 %v1853_v14, %v1819_v9  ;;  %v1868_v26 = vshrl.u32 %v1853_v14, 16  ;;  %v1881_v27 = vpack.i.b16 %v1854_v15, %v1820_v12 }
 0x3c2   : > { %v1877_v31 = vpack.i.b16 %v1876_v22, %v1875_v20  ;;  %v1884_v32 = vshrl.u32 %v1854_v15, 16  ;;  %v1887_v33 = vcombine.low %v1857_v16, %v1873_v21  ;;  %p5784_p9 = pnand %p5783_p6, %p7197_p4 }
 0x3c3   : > { %v1869_v35 = vpack.i.b16 %v1868_v26, %v1867_v19  ;;  %v1895_v36 = vcombine.low %v1865_v25, %v1881_v27  ;;  %v1397_v27 = vld [vmem:[#allocation3] sm:$0xff] }
 0x3c4   : > { %v1885_v37 = vpack.i.b16 %v1884_v32, %v1883_v28  ;;  %v1912_v38 = vcombine.low %v1861_v23, %v1877_v31  ;;  %v1894_v40 = vrot.slane %v1887_v33, %v6522_v41  ;;  %p5785_p5 = pneg %p5784_p9 }
 0x3c5   : > { %v1902_v39 = vrot.slane %v1895_v36, %v6522_v41 }
 0x3c6   : > { %v1920_v42 = vcombine.low %v1869_v35, %v1885_v37  ;;  %v1919_v43 = vrot.slane %v1912_v38, %v6522_v41 }
 0x3c7   : > { %v1903_v44 = vcombine.low %v1894_v40, %v1902_v39 }
 0x3c8   : > { %v1927_v45 = vrot.slane %v1920_v42, %v6522_v41 }
 0x3c9   : > { %v1910_v49 = vrot.slane %v1903_v44, %v6535_v53 }
 0x3ca   : > { %v1928_v48 = vcombine.low %v1919_v43, %v1927_v45 }
 0x3cb   : > { %v1940_v56 = vshrl.u32 %v1910_v49, 16  ;;  %v1911_v61 = vcombine.high %v1910_v49, %v5937_v29 }
 0x3cc   : > { %v1935_v50 = vrot.slane %v1928_v48, %v6535_v53 }
 0x3cd   : > { %v1946_v47 = vshrl.u32 %v1911_v61, 16 }
 0x3ce   : > { %v1939_v51 = vpack.i.b16 %v1935_v50, %v1910_v49  ;;  %v1941_v55 = vshrl.u32 %v1935_v50, 16  ;;  %v1936_v57 = vcombine.high %v1935_v50, %v5937_v29 }
 0x3d0   : > { %5118 = vmatmul.mubr.msk.bf16.vlgmr.msra.gmra.mrb[0].mxu1 %vm1949_vm2, %v1939_v51  ;;  %v1942_v59 = vpack.i.b16 %v1941_v55, %v1940_v56  ;;  %v1945_v62 = vpack.i.b16 %v1936_v57, %v1911_v61  ;;  %v1947_v46 = vshrl.u32 %v1936_v57, 16  ;;  %v1409_v61 = vshrl.u32 %v1397_v27, 16 }
 0x3d1   : > { %5122 = vmatpush3.bf16.xpose.msra.mxu1 %v2000_v54  ;;  %5123 = vmatprep.mubr.msk.bf16.mxu1 %vm5932_vm1, %v5931_v8 }
 0x3d2   : > { %5127 = vmatprep.subr.bf16.mxu1 %v5931_v8  ;;  %v1948_v52 = vpack.i.b16 %v1947_v46, %v1946_v47 }
 0x3d8   : > { %5124 = vmatmul.mubr.msk.bf16.vlgmr.msra.gmra.mrb[4].mxu1 %vm1949_vm2, %v1942_v59 }
 0x3d9   : > { %5128 = vmatpush3.bf16.xpose.msra.mxu1 %v2046_v60  ;;  %5129 = vmatprep.mubr.msk.bf16.mxu1 %vm5932_vm1, %v5931_v8 }
 0x3da   : > { %5133 = vmatprep.subr.bf16.mxu1 %v5931_v8 }
 0x3e0   : > { %5130 = vmatmul.mubr.msk.bf16.vlgmr.msra.gmra.mrb[8].mxu1 %vm1949_vm2, %v1945_v62 }
 0x3e1   : > { %5134 = vmatpush3.bf16.xpose.msra.mxu1 %v2092_v63  ;;  %5135 = vmatprep.mubr.msk.bf16.mxu1 %vm5932_vm1, %v5931_v8 }
 0x3e2   : > { %5139 = vmatprep.subr.bf16.mxu1 %v5931_v8 }
 0x3e8   : > { %5136 = vmatmul.mubr.msk.bf16.vlgmr.msra.gmra.mrb[12].mxu1 %vm1949_vm2, %v1948_v52 }
 0x3e9   : > { %5141 = vmatprep.mubr.msk.bf16.mxu1 %vm5932_vm1, %v5931_v8 }
 0x4a3   : > { %v1990_v3 = vpop.f32.mrb[0].mxu1 }
 0x4a4   : > { %v1991_v4 = vadd.f32 %v1990_v3, %v1122_v2  ;;  %v5119_v5 = vpop.f32.mrb[1].mxu1 }
 0x4a5   : > { %v1993_v6 = vpop.f32.mrb[2].mxu1 }
 0x4a6   : > { %v5120_v7 = vpop.f32.mrb[3].mxu1  ;;  %v2135_v9 = vsel %vm2134_vm4, %v1991_v4, -inf }
 0x4a7   : > { %2136 = vmax.xlane.f32.xlu0 %v2135_v9 }
 0x4ab   : > { %v2036_v10 = vpop.f32.mrb[4].mxu1 }
 0x4ac   : > { %v2037_v11 = vadd.f32 %v2036_v10, %v1122_v2  ;;  %v5125_v12 = vpop.f32.mrb[5].mxu1 }
 0x4ad   : > { %v2039_v13 = vpop.f32.mrb[6].mxu1 }
 0x4ae   : > { %v5126_v14 = vpop.f32.mrb[7].mxu1  ;;  %v2138_v15 = vsel %vm2134_vm4, %v2037_v11, -inf }
 0x4af   : > { %2139 = vmax.xlane.f32.xlu1 %v2138_v15 }
 0x4b3   : > { %v2082_v24 = vpop.f32.mrb[8].mxu1 }
 0x4b4   : > { %v2083_v16 = vadd.f32 %v2082_v24, %v1122_v2  ;;  %v5131_v18 = vpop.f32.mrb[9].mxu1 }
 0x4b5   : > { %v2085_v19 = vpop.f32.mrb[10].mxu1 }
 0x4b6   : > { %v5132_v20 = vpop.f32.mrb[11].mxu1  ;;  %v2141_v21 = vsel %vm2134_vm4, %v2083_v16, -inf }
 0x4b7   : > { %2142 = vmax.xlane.f32.xlu0 %v2141_v21 }
 0x4bb   : > { %v2128_v22 = vpop.f32.mrb[12].mxu1 }
 0x4bc   : > { %v2129_v23 = vadd.f32 %v2128_v22, %v1122_v2  ;;  %v5137_v25 = vpop.f32.mrb[13].mxu1 }
 0x4bd   : > { %v2131_v26 = vpop.f32.mrb[14].mxu1 }
 0x4be   : > { %v5138_v28 = vpop.f32.mrb[15].mxu1  ;;  %v2144_v31 = vsel %vm2134_vm4, %v2129_v23, -inf }
 0x4bf   : > { %2145 = vmax.xlane.f32.xlu0 %v2144_v31 }
 0x4c0   : > { %1401 = vrot.lane.b32.xlu1 %v1397_v27, %s5935_s25 }
 0x4d5   : > { %1399 = vrot.lane.b32.xlu0 %v1397_v27, %s5933_s10 }
 0x534   : > { %v2137_v32 = vpop.xlane.xlu0 %2136 }
 0x535   : > { %v2147_v33 = vsub.f32 %v1991_v4, %v2137_v32 }
 0x537   : > { %v2151_v35 = vmul.f32 1.442695, %v2147_v33 }
 0x539   : > { %5542 = vpow2.f32 %v2151_v35 }
 0x53c   : > { %v2140_v36 = vpop.xlane.xlu1 %2139 }
 0x53d   : > { %v2148_v37 = vsub.f32 %v2037_v11, %v2140_v36 }
 0x53f   : > { %v2153_v38 = vmul.f32 1.442695, %v2148_v37 }
 0x540   : > { %v1402_v57 = vpop.permute.xlu1 %1401 }
 0x541   : > { %5544 = vpow2.f32 %v2153_v38  ;;  %v1417_v1 = vshrl.u32 %v1402_v57, 16 }
 0x543   : > { %v6627_v39 = vpop.eup %5542 }
 0x544   : > { %v2159_v40 = vsel %vm2134_vm4, %v6627_v39, 0.0  ;;  %v2143_v42 = vpop.xlane.xlu0 %2142 }
 0x545   : > { %2160 = vadd.xlane.f32.xlu1 %v2159_v40  ;;  %v2149_v54 = vsub.f32 %v2083_v16, %v2143_v42 }
 0x547   : > { %v2155_v55 = vmul.f32 1.442695, %v2149_v54 }
 0x54b   : > { %v6631_v43 = vpop.eup %5544 }
 0x54c   : > { %v2146_v44 = vpop.xlane.xlu0 %2145  ;;  %v2162_v45 = vsel %vm2134_vm4, %v6631_v43, 0.0 }
 0x54d   : > { %v2150_v48 = vsub.f32 %v2129_v23, %v2146_v44  ;;  %2163 = vadd.xlane.f32.xlu0 %v2162_v45 }
 0x54f   : > { %v2157_v49 = vmul.f32 1.442695, %v2150_v48 }
 0x550   : > { %v1400_v60 = vpop.permute.xlu0 %1399 }
 0x551   : > { %5546 = vpow2.f32 %v2157_v49  ;;  %v1410_v62 = vshrl.u32 %v1400_v60, 16  ;;  %v1407_v63 = vpack.i.b16 %v1400_v60, %v1397_v27 }
 0x552   : > { %5548 = vpow2.f32 %v2155_v55 }
 0x553   : > { %v1411_v47 = vpack.i.b16 %v1410_v62, %v1409_v61  ;;  %v1421_v52 = vcombine.high %v1407_v63, %v6514_v30  ;;  %v1428_v4 = vrot.slane %v1407_v63, %v6522_v41 }
 0x555   : > { %v1487_v3 = vcombine.high %v1411_v47, %v6514_v30  ;;  %v1435_v9 = vrot.slane %v1421_v52, %v6522_v41  ;;  %v1494_v14 = vrot.slane %v1411_v47, %v6522_v41 }
 0x556   : > { %1403 = vrot.lane.b32.xlu1 %v1397_v27, %s5934_s26 }
 0x557   : > { %v1501_v15 = vrot.slane %v1487_v3, %v6522_v41 }
 0x55b   : > { %v6636_v50 = vpop.eup %5546 }
 0x55c   : > { %v2168_v51 = vsel %vm2134_vm4, %v6636_v50, 0.0  ;;  %v6640_v56 = vpop.eup %5548 }
 0x55d   : > { %2169 = vadd.xlane.f32.xlu0 %v2168_v51  ;;  %v2165_v59 = vsel %vm2134_vm4, %v6640_v56, 0.0 }
 0x57a   : > { %2166 = vadd.xlane.f32.xlu1 %v2165_v59 }
 0x5d2   : > { %v2161_v46 = vpop.xlane.xlu1 %2160 }
 0x5d3   : > { %5550 = vrcp.f32 %v2161_v46 }
 0x5d6   : > { %v1404_v0 = vpop.permute.xlu1 %1403 }
 0x5d7   : > { %v1415_v58 = vpack.i.b16 %v1404_v0, %v1402_v57  ;;  %v1418_v2 = vshrl.u32 %v1404_v0, 16 }
 0x5d9   : > { %v1419_v5 = vpack.i.b16 %v1418_v2, %v1417_v1  ;;  %v1436_v6 = vcombine.high %v1415_v58, %v6514_v30  ;;  %v1443_v7 = vrot.slane %v1415_v58, %v6522_v41 }
 0x5da   : > { %v2164_v57 = vpop.xlane.xlu0 %2163 }
 0x5db   : > { %v1450_v10 = vrot.slane %v1436_v6, %v6522_v41  ;;  %v1451_v11 = vcombine.low %v1428_v4, %v1443_v7  ;;  %v1452_v12 = vcombine.high %v1428_v4, %v1443_v7  ;;  %v1502_v13 = vcombine.high %v1419_v5, %v6514_v30 }
 0x5dc   : > { %v1509_v24 = vrot.slane %v1419_v5, %v6522_v41  ;;  %5552 = vrcp.f32 %v2164_v57 }
 0x5dd   : > { %v1459_v16 = vrot.slane %v1451_v11, %v6535_v53  ;;  %v1466_v18 = vrot.slane %v1452_v12, %v6535_v53  ;;  %v1467_v19 = vcombine.low %v1435_v9, %v1450_v10  ;;  %v1468_v20 = vcombine.high %v1435_v9, %v1450_v10  ;;  %v5551_v52 = vpop.eup %5550 }
 0x5de   : > { %v1516_v21 = vrot.slane %v1502_v13, %v6522_v41  ;;  %v1517_v22 = vcombine.low %v1494_v14, %v1509_v24  ;;  %v1518_v23 = vcombine.high %v1494_v14, %v1509_v24  ;;  %v2175_v6 = vmul.f32 %v5551_v52, %v6627_v39 }
 0x5df   : > { %v1475_v25 = vrot.slane %v1467_v19, %v6535_v53  ;;  %v1482_v26 = vrot.slane %v1468_v20, %v6535_v53  ;;  %v1553_v27 = vcombine.low %v1459_v16, %v1466_v18  ;;  %v4775_v28 = vcombine.high %v1459_v16, %v1466_v18 }
 0x5e0   : > { %v1525_v31 = vrot.slane %v1517_v22, %v6535_v53  ;;  %v1532_v32 = vrot.slane %v1518_v23, %v6535_v53  ;;  %v1533_v33 = vcombine.low %v1501_v15, %v1516_v21  ;;  %v1534_v35 = vcombine.high %v1501_v15, %v1516_v21 }
 0x5e1   : > { %v1560_v36 = vrot.slane %v1553_v27, %v6522_v41  ;;  %v1568_v37 = vrot.slane %v4775_v28, %v6522_v41  ;;  %v1569_v38 = vcombine.low %v1475_v25, %v1482_v26  ;;  %v4776_v40 = vcombine.high %v1475_v25, %v1482_v26 }
 0x5e2   : > { %v1541_v42 = vrot.slane %v1533_v33, %v6535_v53  ;;  %v1548_v44 = vrot.slane %v1534_v35, %v6535_v53  ;;  %v1603_v45 = vcombine.low %v1525_v31, %v1532_v32  ;;  %v4777_v48 = vcombine.high %v1525_v31, %v1532_v32  ;;  %v5479_v31 = vld [vmem:[#allocation12 + $0xc8] sm:$0xff]   ;;  %v5480_v32 = vld [vmem:[#allocation12 + $0xd0] sm:$0xff]   ;;  %v5481_v33 = vld [vmem:[#allocation12 + $0xd8] sm:$0xff]  }
 0x5e3   : > { %v1576_v49 = vrot.slane %v1569_v38, %v6522_v41  ;;  %v1584_v51 = vrot.slane %v4776_v40, %v6522_v41  ;;  %v1585_v62 = vcombine.low %v1560_v36, %v1568_v37  ;;  %v2179_v11 = vpack.c.bf16 %v2175_v6, %v2175_v6  ;;  %v5483_v35 = vld [vmem:[#allocation12 + $0xe8] sm:$0xff]   ;;  %v5484_v6 = vld [vmem:[#allocation12 + $0xf0] sm:$0xff]  }
 0x5e4   : > { %v1610_v54 = vrot.slane %v1603_v45, %v6522_v41  ;;  %v1618_v55 = vrot.slane %v4777_v48, %v6522_v41  ;;  %v1619_v59 = vcombine.low %v1541_v42, %v1548_v44  ;;  %v4778_v60 = vcombine.high %v1541_v42, %v1548_v44 }
 0x5e5   : > { %v1593_v61 = vcombine.low %v1576_v49, %v1584_v51  ;;  %v1592_v58 = vrot.slane %v1585_v62, %v6535_v53 }
 0x5e6   : > { %v1626_v63 = vrot.slane %v1619_v59, %v6522_v41  ;;  %v1634_v46 = vrot.slane %v4778_v60, %v6522_v41  ;;  %v1635_v47 = vcombine.low %v1610_v54, %v1618_v55  ;;  %v5553_v12 = vpop.eup %5552 }
 0x5e7   : > { %v1600_v0 = vrot.slane %v1593_v61, %v6535_v53  ;;  %v2176_v14 = vmul.f32 %v5553_v12, %v6631_v43 }
 0x5e8   : > { %v1643_v1 = vcombine.low %v1626_v63, %v1634_v46  ;;  %v1642_v2 = vrot.slane %v1635_v47, %v6535_v53 }
 0x5e9   : > { %v1601_v4 = vcombine.low %v1592_v58, %v1600_v0  ;;  %v1602_v15 = vcombine.high %v1592_v58, %v1600_v0  ;;  %v2180_v24 = vpack.c.bf16 %v2176_v14, %v2176_v14 }
 0x5ea   : > { %v1650_v3 = vrot.slane %v1643_v1, %v6535_v53  ;;  %v2170_v19 = vpop.xlane.xlu0 %2169 }
 0x5eb   : > { %v1657_v10 = vshrl.u32 %v1601_v4, 16  ;;  %v1665_v22 = vshrl.u32 %v1602_v15, 16 }
 0x5ec   : > { %v1651_v5 = vcombine.low %v1642_v2, %v1650_v3  ;;  %v1652_v39 = vcombine.high %v1642_v2, %v1650_v3 }
 0x5ee   : > { %v1655_v7 = vpack.i.b16 %v1651_v5, %v1601_v4  ;;  %v1658_v9 = vshrl.u32 %v1651_v5, 16  ;;  %v1663_v16 = vpack.i.b16 %v1652_v39, %v1602_v15  ;;  %v1666_v43 = vshrl.u32 %v1652_v39, 16 }
 0x5f0   : > { %5140 = vmatpush3.bf16.msra.mxu1 %v1655_v7  ;;  %v1659_v13 = vpack.i.b16 %v1658_v9, %v1657_v10  ;;  %v1667_v26 = vpack.i.b16 %v1666_v43, %v1665_v22 }
 0x5f1   : > { %5145 = vmatprep.subr.bf16.mxu1 %v5931_v8 }
 0x5f3   : > { %5142 = vmatmul.mubr.msk.bf16.vlgmr.msra.gmra.mrb[16].mxu1 %vm2134_vm4, %v2179_v11 }
 0x5f4   : > { %5146 = vmatpush3.bf16.msra.mxu1 %v1659_v13  ;;  %5147 = vmatprep.mubr.msk.bf16.mxu1 %vm5932_vm1, %v5931_v8 }
 0x5f5   : > { %5151 = vmatprep.subr.bf16.mxu1 %v5931_v8 }
 0x5fb   : > { %5148 = vmatmul.mubr.msk.bf16.vlgmr.msra.gmra.mrb[20].mxu1 %vm2134_vm4, %v2180_v24 }
 0x5fc   : > { %5152 = vmatpush3.bf16.msra.mxu1 %v1663_v16  ;;  %5153 = vmatprep.mubr.msk.bf16.mxu1 %vm5932_vm1, %v5931_v8 }
 0x5fd   : > { %5157 = vmatprep.subr.bf16.mxu1 %v5931_v8 }
 0x607   : > { %v2167_v18 = vpop.xlane.xlu1 %2166 }
 0x608   : > { %5554 = vrcp.f32 %v2167_v18 }
 0x609   : > { %5556 = vrcp.f32 %v2170_v19  ;;  %v5485_v19 = vld [vmem:[#allocation12 + $0xf8] sm:$0xff]  }
 0x612   : > { %v5555_v20 = vpop.eup %5554 }
 0x613   : > { %v2177_v21 = vmul.f32 %v5555_v20, %v6640_v56  ;;  %v5557_v25 = vpop.eup %5556  ;;  %v5478_v56 = vld [vmem:[#allocation12 + $0xc0] sm:$0xff]  }
 0x614   : > { %v2178_v27 = vmul.f32 %v5557_v25, %v6636_v50  ;;  %5164 = vmatpush3.bf16.msra.mxu0 %v5478_v56  ;;  %v5482_v50 = vld [vmem:[#allocation12 + $0xe0] sm:$0xff]  }
 0x615   : > { %v2181_v23 = vpack.c.bf16 %v2177_v21, %v2177_v21  ;;  %5165 = vmatprep.subr.bf16.mxu0 %v5931_v8 }
 0x616   : > { %v2182_v28 = vpack.c.bf16 %v2178_v27, %v2178_v27 }
 0x617   : > { %5154 = vmatmul.mubr.msk.bf16.vlgmr.msra.gmra.mrb[24].mxu1 %vm2134_vm4, %v2181_v23 }
 0x618   : > { %5158 = vmatpush3.bf16.msra.mxu1 %v1667_v26  ;;  %5159 = vmatprep.mubr.msk.bf16.mxu1 %vm5932_vm1, %v5931_v8 }
 0x619   : > { %5183 = vmatprep.subr.bf16.mxu1 %v5931_v8  ;;  %5166 = vmatpush3.bf16.msra.mxu0 %v5479_v31 }
 0x61a   : > { %5167 = vmatprep.subr.bf16.mxu0 %v5931_v8 }
 0x61d   : > { %5168 = vmatpush3.bf16.msra.mxu0 %v5480_v32 }
 0x61e   : > { %5169 = vmatprep.subr.bf16.mxu0 %v5931_v8 }
 0x61f   : > { %5160 = vmatmul.mubr.msk.bf16.vlgmr.msra.gmra.mrb[28].mxu1 %vm2134_vm4, %v2182_v28 }
 0x620   : > { %5199 = vmatprep.mubr.msk.bf16.mxu1 %vm5932_vm1, %v5931_v8 }
 0x621   : > { %5170 = vmatpush3.bf16.msra.mxu0 %v5481_v33 }
 0x622   : > { %5171 = vmatprep.subr.bf16.mxu0 %v5931_v8 }
 0x625   : > { %5172 = vmatpush3.bf16.msra.mxu0 %v5482_v50 }
 0x626   : > { %5173 = vmatprep.subr.bf16.mxu0 %v5931_v8 }
 0x629   : > { %5174 = vmatpush3.bf16.msra.mxu0 %v5483_v35 }
 0x62a   : > { %5175 = vmatprep.subr.bf16.mxu0 %v5931_v8 }
 0x62d   : > { %5176 = vmatpush3.bf16.msra.mxu0 %v5484_v6 }
 0x62e   : > { %5177 = vmatprep.subr.bf16.mxu0 %v5931_v8 }
 0x631   : > { %5178 = vmatpush3.bf16.msra.mxu0 %v5485_v19 }
 0x632   : > { %5203 = vmatprep.subr.bf16.mxu0 %v5931_v8 }
 0x6c6   : > { %v2220_v36 = vpop.f32.mrb[16].mxu1 }
 0x6c7   : > { %v5143_v37 = vpop.f32.mrb[17].mxu1 }
 0x6c8   : > { %v2223_v38 = vpop.f32.mrb[18].mxu1 }
 0x6c9   : > { %v5144_v40 = vpop.f32.mrb[19].mxu1 }
 0x6ce   : > { %v2263_v42 = vpop.f32.mrb[20].mxu1 }
 0x6cf   : > { %v5149_v44 = vpop.f32.mrb[21].mxu1 }
 0x6d0   : > { %v2266_v45 = vpop.f32.mrb[22].mxu1 }
 0x6d1   : > { %v5150_v48 = vpop.f32.mrb[23].mxu1 }
 0x6ea   : > { %v2306_v49 = vpop.f32.mrb[24].mxu1 }
 0x6eb   : > { %v2355_v51 = vcombine.low %v2220_v36, %v2306_v49  ;;  %v2356_v54 = vcombine.high %v2220_v36, %v2306_v49  ;;  %v5155_v55 = vpop.f32.mrb[25].mxu1 }
 0x6ec   : > { %v2309_v59 = vpop.f32.mrb[26].mxu1  ;;  %v5486_v55 = vld [vmem:[#allocation14] sm:$0xff]  }
 0x6ed   : > { %v5156_v60 = vpop.f32.mrb[27].mxu1  ;;  %v2363_v47 = vrot.slane %v2355_v51, %v6522_v41  ;;  %v2370_v52 = vrot.slane %v2356_v54, %v6522_v41  ;;  %5184 = vmatpush3.bf16.msra.mxu1 %v5486_v55  ;;  %v5487_v59 = vld [vmem:[#allocation14 + $0x8] sm:$0xff]  }
 0x6ee   : > { %5185 = vmatprep.subr.bf16.mxu1 %v5931_v8 }
 0x6f1   : > { %5186 = vmatpush3.bf16.msra.mxu1 %v5487_v59 }
 0x6f2   : > { %v2349_v57 = vpop.f32.mrb[28].mxu1  ;;  %5187 = vmatprep.subr.bf16.mxu1 %v5931_v8 }
 0x6f3   : > { %v2371_v61 = vcombine.low %v2263_v42, %v2349_v57  ;;  %v2372_v62 = vcombine.high %v2263_v42, %v2349_v57  ;;  %v5161_v63 = vpop.f32.mrb[29].mxu1  ;;  %v4798_v42 = vld [vmem:[%s7186_s5 + $0x3] ss:$0 sm:$0xff] }
 0x6f4   : > { %v2352_v46 = vpop.f32.mrb[30].mxu1  ;;  %v5488_v63 = vld [vmem:[#allocation14 + $0x10] sm:$0xff]  }
 0x6f5   : > { %v2379_v0 = vrot.slane %v2371_v61, %v6522_v41  ;;  %v2386_v1 = vrot.slane %v2372_v62, %v6522_v41  ;;  %v5162_v58 = vpop.f32.mrb[31].mxu1  ;;  %5188 = vmatpush3.bf16.msra.mxu1 %v5488_v63  ;;  %v5489_v46 = vld [vmem:[#allocation14 + $0x18] sm:$0xff]  }
 0x6f6   : > { %5189 = vmatprep.subr.bf16.mxu1 %v5931_v8 }
 0x6f7   : > { %v2387_v2 = vcombine.low %v2363_v47, %v2379_v0  ;;  %v2388_v3 = vcombine.high %v2363_v47, %v2379_v0  ;;  %v2403_v4 = vcombine.low %v2370_v52, %v2386_v1  ;;  %v2404_v5 = vcombine.high %v2370_v52, %v2386_v1  ;;  %v5491_v47 = vld [vmem:[#allocation14 + $0x28] sm:$0xff]   ;;  %v5492_v52 = vld [vmem:[#allocation14 + $0x30] sm:$0xff]   ;;  %v5493_v0 = vld [vmem:[#allocation14 + $0x38] sm:$0xff]  }
 0x6f8   : > { %v2646_v1 = vld [vmem:[#allocation4] sm:$0xff] }
 0x6f9   : > { %v2395_v7 = vrot.slane %v2387_v2, %v6535_v53  ;;  %v2402_v9 = vrot.slane %v2388_v3, %v6535_v53  ;;  %v2411_v10 = vrot.slane %v2403_v4, %v6535_v53  ;;  %v2418_v11 = vrot.slane %v2404_v5, %v6535_v53  ;;  %5190 = vmatpush3.bf16.msra.mxu1 %v5489_v46  ;;  %v4807_v5 = vld [vmem:[%s7188_s3] ss:$0 sm:$0xff] }
 0x6fa   : > { %5191 = vmatprep.subr.bf16.mxu1 %v5931_v8 }
 0x6fb   : > { %v2423_v12 = vcombine.low %v2395_v7, %v2402_v9  ;;  %v4796_v13 = vcombine.high %v2395_v7, %v2402_v9  ;;  %v2439_v14 = vcombine.low %v2411_v10, %v2418_v11  ;;  %v4797_v39 = vcombine.high %v2411_v10, %v2418_v11  ;;  %v4808_v7 = vld [vmem:[%s7189_s6] ss:$0 sm:$0xff] }
 0x6fd   : > { %v2430_v15 = vrot.slane %v2423_v12, %v6522_v41  ;;  %v2438_v24 = vrot.slane %v4796_v13, %v6522_v41  ;;  %v2446_v16 = vrot.slane %v2439_v14, %v6522_v41  ;;  %v2454_v18 = vrot.slane %v4797_v39, %v6522_v41 }
 0x6fe   : > { %v2658_v39 = vshrl.u32 %v2646_v1, 16 }
 0x6ff   : > { %v2456_v20 = vcombine.high %v2430_v15, %v2438_v24  ;;  %v2472_v43 = vcombine.high %v2446_v16, %v2454_v18  ;;  %v2455_v21 = vcombine.low %v2430_v15, %v2438_v24  ;;  %v2471_v22 = vcombine.low %v2446_v16, %v2454_v18 }
 0x701   : > { %v2470_v23 = vrot.slane %v2456_v20, %v6535_v53  ;;  %v2486_v25 = vrot.slane %v2472_v43, %v6535_v53  ;;  %v2463_v26 = vrot.slane %v2455_v21, %v6535_v53  ;;  %v2479_v27 = vrot.slane %v2471_v22, %v6535_v53 }
 0x703   : > { %v2489_v28 = vcombine.low %v2470_v23, %v2486_v25  ;;  %v2488_v56 = vcombine.high %v2463_v26, %v2479_v27  ;;  %v2490_v31 = vcombine.high %v2470_v23, %v2486_v25  ;;  %v2487_v32 = vcombine.low %v2463_v26, %v2479_v27 }
 0x705   : > { %2496 = vrot.lane.b32.xlu1 %v2489_v28, %s5935_s25  ;;  %2492 = vrot.lane.b32.xlu0 %v2488_v56, %s5934_s26 }
 0x709   : > { %2500 = vrot.lane.b32.xlu1 %v2490_v31, %s5933_s10 }
 0x777   : > { %v2497_v33 = vpop.permute.xlu1 %2496  ;;  %v2493_v50 = vpop.permute.xlu0 %2492 }
 0x778   : > { %v2503_v35 = vsel %vm1949_vm2, %v2487_v32, %v2493_v50 }
 0x779   : > { %v2505_v37 = vsel %vm2504_vm5, %v2503_v35, %v2497_v33 }
 0x77b   : > { %v2501_v36 = vpop.permute.xlu1 %2500 }
 0x77c   : > { %v2507_v38 = vsel %vm2506_vm6, %v2505_v37, %v2501_v36 }
 0x77d   : > { %v2508_v40 = vpack.c.bf16 %v2507_v38, %v2507_v38 }
 0x77f   : > { %5180 = vmatmul.mubr.bf16.vlgmr.msra.gmra.mrb[4].mxu0 %v2508_v40 }
 0x780   : > { %5205 = vmatprep.mubr.msk.bf16.mxu0 %vm5932_vm1, %v5931_v8 }
 0x852   : > { %v2613_v44 = vpop.f32.mrb[4].mxu0 }
 0x853   : > { %v2614_v45 = vadd.f32 %v4798_v42, %v2613_v44  ;;  %v5181_v48 = vpop.f32.mrb[5].mxu0 }
 0x854   : > { %v2616_v49 = vpop.f32.mrb[6].mxu0 }
 0x855   : > { %v5182_v51 = vpop.f32.mrb[7].mxu0  ;;  %v2619_v54 = vadd.f32 %v2614_v45, %v6504_v17  ;;  %v5490_v17 = vld [vmem:[#allocation14 + $0x20] sm:$0xff]  }
 0x856   : > { %5192 = vmatpush3.bf16.msra.mxu1 %v5490_v17 }
 0x857   : > { %2622 = vadd.xlane.f32.xlu0 %v2619_v54  ;;  %5193 = vmatprep.subr.bf16.mxu1 %v5931_v8 }
 0x85a   : > { %5194 = vmatpush3.bf16.msra.mxu1 %v5491_v47 }
 0x85b   : > { %5195 = vmatprep.subr.bf16.mxu1 %v5931_v8 }
 0x85e   : > { %5196 = vmatpush3.bf16.msra.mxu1 %v5492_v52 }
 0x85f   : > { %5197 = vmatprep.subr.bf16.mxu1 %v5931_v8 }
 0x862   : > { %5198 = vmatpush3.bf16.msra.mxu1 %v5493_v0 }
 0x863   : > { %5209 = vmatprep.subr.bf16.mxu1 %v5931_v8 }
 0x86d   : > { %2648 = vrot.lane.b32.xlu0 %v2646_v1, %s5933_s10 }
 0x871   : > { %2652 = vrot.lane.b32.xlu0 %v2646_v1, %s5934_s26 }
 0x8e4   : > { %v2623_v60 = vpop.xlane.xlu0 %2622 }
 0x8e5   : > { %v2625_v57 = vmul.f32 0.0078125, %v2623_v60 }
 0x8e7   : > { %v2626_v61 = vsub.f32 %v2619_v54, %v2625_v57 }
 0x8e8   : > { %v2649_v12 = vpop.permute.xlu0 %2648 }
 0x8e9   : > { %v2627_v62 = vmul.f32 %v2626_v61, %v2626_v61  ;;  %v2659_v15 = vshrl.u32 %v2649_v12, 16  ;;  %v2656_v18 = vpack.i.b16 %v2649_v12, %v2646_v1 }
 0x8eb   : > { %2628 = vadd.xlane.f32.xlu1 %v2627_v62  ;;  %v2660_v20 = vpack.i.b16 %v2659_v15, %v2658_v39  ;;  %v2670_v21 = vcombine.high %v2656_v18, %v6514_v30  ;;  %v2677_v26 = vrot.slane %v2656_v18, %v6522_v41 }
 0x8ec   : > { %v2653_v14 = vpop.permute.xlu0 %2652 }
 0x8ed   : > { %v2667_v16 = vshrl.u32 %v2653_v14, 16  ;;  %v2736_v23 = vcombine.high %v2660_v20, %v6514_v30  ;;  %v2684_v28 = vrot.slane %v2670_v21, %v6522_v41  ;;  %v2743_v56 = vrot.slane %v2660_v20, %v6522_v41 }
 0x8ef   : > { %v2750_v33 = vrot.slane %v2736_v23, %v6522_v41 }
 0x8fc   : > { %2650 = vrot.lane.b32.xlu1 %v2646_v1, %s5935_s25 }
 0x978   : > { %v2629_v58 = vpop.xlane.xlu1 %2628 }
 0x979   : > { %v2630_v2 = vmul.f32 0.0078125, %v2629_v58 }
 0x97b   : > { %v2631_v3 = vadd.f32 1e-06, %v2630_v2 }
 0x97c   : > { %v2651_v13 = vpop.permute.xlu1 %2650 }
 0x97d   : > { %5558 = vrsqrt.f32 %v2631_v3  ;;  %v2666_v24 = vshrl.u32 %v2651_v13, 16  ;;  %v2664_v19 = vpack.i.b16 %v2653_v14, %v2651_v13 }
 0x97f   : > { %v2668_v43 = vpack.i.b16 %v2667_v16, %v2666_v24  ;;  %v2685_v22 = vcombine.high %v2664_v19, %v6514_v30  ;;  %v2692_v27 = vrot.slane %v2664_v19, %v6522_v41 }
 0x981   : > { %v2751_v25 = vcombine.high %v2668_v43, %v6514_v30  ;;  %v2699_v31 = vrot.slane %v2685_v22, %v6522_v41  ;;  %v2758_v32 = vrot.slane %v2668_v43, %v6522_v41  ;;  %v2700_v35 = vcombine.low %v2677_v26, %v2692_v27 }
 0x982   : > { %v2701_v36 = vcombine.high %v2677_v26, %v2692_v27 }
 0x983   : > { %v2765_v50 = vrot.slane %v2751_v25, %v6522_v41  ;;  %v2716_v37 = vcombine.low %v2684_v28, %v2699_v31  ;;  %v2717_v38 = vcombine.high %v2684_v28, %v2699_v31  ;;  %v2766_v40 = vcombine.low %v2743_v56, %v2758_v32 }
 0x984   : > { %v2767_v42 = vcombine.high %v2743_v56, %v2758_v32  ;;  %v2708_v48 = vrot.slane %v2700_v35, %v6535_v53  ;;  %v2715_v49 = vrot.slane %v2701_v36, %v6535_v53 }
 0x985   : > { %v2782_v44 = vcombine.low %v2750_v33, %v2765_v50  ;;  %v2783_v45 = vcombine.high %v2750_v33, %v2765_v50  ;;  %v2724_v51 = vrot.slane %v2716_v37, %v6535_v53  ;;  %v2731_v54 = vrot.slane %v2717_v38, %v6535_v53 }
 0x986   : > { %v2774_v55 = vrot.slane %v2766_v40, %v6535_v53  ;;  %v2781_v59 = vrot.slane %v2767_v42, %v6535_v53  ;;  %v4809_v62 = vcombine.high %v2708_v48, %v2715_v49 }
 0x987   : > { %v5559_v4 = vpop.eup %5558  ;;  %v2790_v60 = vrot.slane %v2782_v44, %v6535_v53  ;;  %v2797_v57 = vrot.slane %v2783_v45, %v6535_v53  ;;  %v2818_v63 = vcombine.low %v2724_v51, %v2731_v54  ;;  %v4810_v46 = vcombine.high %v2724_v51, %v2731_v54 }
 0x988   : > { %v2633_v6 = vmul.f32 %v5559_v4, %v2626_v61  ;;  %v2802_v61 = vcombine.low %v2708_v48, %v2715_v49  ;;  %v2852_v17 = vcombine.low %v2774_v55, %v2781_v59  ;;  %v4811_v47 = vcombine.high %v2774_v55, %v2781_v59 }
 0x989   : > { %v2868_v52 = vcombine.low %v2790_v60, %v2797_v57  ;;  %v4812_v0 = vcombine.high %v2790_v60, %v2797_v57  ;;  %v2817_v58 = vrot.slane %v4809_v62, %v6522_v41  ;;  %v2825_v2 = vrot.slane %v2818_v63, %v6522_v41 }
 0x98a   : > { %v2638_v9 = vmul.f32 %v4807_v5, %v2633_v6  ;;  %v2809_v1 = vrot.slane %v2802_v61, %v6522_v41  ;;  %v2833_v3 = vrot.slane %v4810_v46, %v6522_v41  ;;  %v2859_v4 = vrot.slane %v2852_v17, %v6522_v41  ;;  %v4817_v6 = vld [vmem:[%s7190_s15] ss:$0 sm:$0xff] }
 0x98b   : > { %v2867_v5 = vrot.slane %v4811_v47, %v6522_v41 }
 0x98c   : > { %v6749_v10 = vadd.f32 %v4808_v7, %v2638_v9  ;;  %v2875_v7 = vrot.slane %v2868_v52, %v6522_v41  ;;  %v2883_v9 = vrot.slane %v4812_v0, %v6522_v41  ;;  %v2842_v12 = vcombine.low %v2825_v2, %v2833_v3 }
 0x98d   : > { %v2884_v13 = vcombine.low %v2859_v4, %v2867_v5 }
 0x98e   : > { %v3186_v11 = vpack.c.bf16 %v6749_v10, %v6749_v10  ;;  %v2892_v39 = vcombine.low %v2875_v7, %v2883_v9  ;;  %v2849_v18 = vrot.slane %v2842_v12, %v6535_v53 }
 0x98f   : > { %v2891_v19 = vrot.slane %v2884_v13, %v6535_v53 }
 0x990   : > { %5200 = vmatmul.mubr.bf16.vlgmr.msra.gmra.mrb[32].mxu1 %v3186_v11  ;;  %v2834_v11 = vcombine.low %v2809_v1, %v2817_v58  ;;  %v2899_v43 = vrot.slane %v2892_v39, %v6535_v53 }
 0x991   : > { %5211 = vmatprep.mubr.msk.bf16.mxu1 %vm5932_vm1, %v5931_v8 }
 0x992   : > { %v2841_v16 = vrot.slane %v2834_v11, %v6535_v53  ;;  %v2900_v26 = vcombine.low %v2891_v19, %v2899_v43  ;;  %v6792_v27 = vcombine.high %v2891_v19, %v2899_v43 }
 0x994   : > { %v2850_v23 = vcombine.low %v2841_v16, %v2849_v18  ;;  %v6790_v25 = vcombine.high %v2841_v16, %v2849_v18  ;;  %v2906_v33 = vshrl.u32 %v2900_v26, 16  ;;  %v2912_v35 = vshrl.u32 %v6792_v27, 16 }
 0x996   : > { %v2905_v56 = vshrl.u32 %v2850_v23, 16  ;;  %v2911_v31 = vshrl.u32 %v6790_v25, 16  ;;  %v2904_v32 = vpack.i.b16 %v2900_v26, %v2850_v23  ;;  %v2910_v50 = vpack.i.b16 %v6792_v27, %v6790_v25 }
 0x998   : > { %v3476_v36 = vsel %vm1949_vm2, %v2904_v32, 0  ;;  %v2907_v37 = vpack.i.b16 %v2906_v33, %v2905_v56  ;;  %v6801_v38 = vpack.i.b16 %v2912_v35, %v2911_v31 }
 0x999   : > { %5204 = vmatpush3.bf16.xpose.msra.mxu0 %v3476_v36  ;;  %v3568_v36 = vsel %vm1949_vm2, %v2910_v50, 0 }
 0x99a   : > { %v3522_v40 = vsel %vm1949_vm2, %v2907_v37, 0  ;;  %5215 = vmatprep.subr.bf16.mxu0 %v5931_v8 }
 0x99b   : > { %5210 = vmatpush3.bf16.xpose.msra.mxu1 %v3522_v40 }
 0x99c   : > { %5221 = vmatprep.subr.bf16.mxu1 %v5931_v8 }
 0xa63   : > { %v3290_v14 = vpop.f32.mrb[32].mxu1 }
 0xa64   : > { %v3291_v15 = vadd.f32 %v4817_v6, %v3290_v14  ;;  %v5201_v24 = vpop.f32.mrb[33].mxu1 }
 0xa65   : > { %v3293_v20 = vpop.f32.mrb[34].mxu1 }
 0xa66   : > { %v3296_v21 = vmul.f32 0.17677669, %v3291_v15  ;;  %v5202_v22 = vpop.f32.mrb[35].mxu1 }
 0xa68   : > { %v3297_v28 = vpack.c.bf16 %v3296_v21, %v3296_v21 }
 0xa6a   : > { %3301 = vrot.lane.b32.xlu0 %v3297_v28, %s5935_s25  ;;  %3299 = vrot.lane.b32.xlu1 %v3297_v28, %s5933_s10  ;;  %v3311_v45 = vrot.slane %v3297_v28, %v6522_v41 }
 0xa6e   : > { %3303 = vrot.lane.b32.xlu1 %v3297_v28, %s5934_s26 }
 0xadc   : > { %v3300_v42 = vpop.permute.xlu1 %3299  ;;  %v3302_v44 = vpop.permute.xlu0 %3301 }
 0xadd   : > { %v3319_v48 = vrot.slane %v3302_v44, %v6522_v41  ;;  %v3345_v60 = vrot.slane %v3300_v42, %v6522_v41  ;;  %v3614_v42 = vsel %vm1949_vm2, %v6801_v38, 0  ;;  %v2644_v38 = vld [vmem:[%s649_s0] sm:$0x1] }
 0xadf   : > { %v3320_v49 = vcombine.low %v3311_v45, %v3319_v48  ;;  %v3321_v51 = vcombine.high %v3311_v45, %v3319_v48  ;;  %v2645_v48 = vmul.f32 -1e+09, %v2644_v38 }
 0xae0   : > { %v3304_v54 = vpop.permute.xlu1 %3303 }
 0xae1   : > { %v3328_v55 = vrot.slane %v3320_v49, %v6535_v53  ;;  %v3353_v59 = vrot.slane %v3304_v54, %v6522_v41  ;;  %v3335_v57 = vrot.slane %v3321_v51, %v6535_v53  ;;  %v3469_v49 = vsub.s32 0, %v6517_v34 }
 0xae3   : > { %v3354_v61 = vcombine.low %v3345_v60, %v3353_v59  ;;  %v3355_v62 = vcombine.high %v3345_v60, %v3353_v59  ;;  %v3336_v63 = vcombine.high %v3328_v55, %v5937_v29  ;;  %v3337_v47 = vcombine.high %v3335_v57, %v5937_v29 }
 0xae4   : > { %v3376_v52 = vshrl.u32 %v3328_v55, 16  ;;  %v3392_v4 = vshrl.u32 %v3335_v57, 16  ;;  %v3470_v51 = vrot.slane %v2645_v48, %v3469_v49 }
 0xae5   : > { %v3362_v46 = vrot.slane %v3354_v61, %v6535_v53  ;;  %v3369_v17 = vrot.slane %v3355_v62, %v6535_v53  ;;  %v3384_v3 = vshrl.u32 %v3336_v63, 16  ;;  %v3400_v13 = vshrl.u32 %v3337_v47, 16 }
 0xae7   : > { %v3370_v0 = vcombine.high %v3362_v46, %v5937_v29  ;;  %v3371_v1 = vcombine.high %v3369_v17, %v5937_v29  ;;  %v3374_v58 = vpack.i.b16 %v3362_v46, %v3328_v55  ;;  %v3377_v2 = vshrl.u32 %v3362_v46, 16 }
 0xae8   : > { %v3390_v5 = vpack.i.b16 %v3369_v17, %v3335_v57  ;;  %v3393_v6 = vshrl.u32 %v3369_v17, 16 }
 0xae9   : > { %v3378_v7 = vpack.i.b16 %v3377_v2, %v3376_v52  ;;  %v3382_v9 = vpack.i.b16 %v3370_v0, %v3336_v63  ;;  %v3385_v11 = vshrl.u32 %v3370_v0, 16  ;;  %v3398_v12 = vpack.i.b16 %v3371_v1, %v3337_v47 }
 0xaea   : > { %v3394_v14 = vpack.i.b16 %v3393_v6, %v3392_v4  ;;  %v3401_v39 = vshrl.u32 %v3371_v1, 16  ;;  %v3404_v15 = vcombine.low %v3374_v58, %v3390_v5 }
 0xaeb   : > { %v3386_v24 = vpack.i.b16 %v3385_v11, %v3384_v3  ;;  %v3412_v16 = vcombine.low %v3382_v9, %v3398_v12 }
 0xaec   : > { %v3402_v18 = vpack.i.b16 %v3401_v39, %v3400_v13  ;;  %v3429_v19 = vcombine.low %v3378_v7, %v3394_v14  ;;  %v3411_v20 = vrot.slane %v3404_v15, %v6522_v41  ;;  %v2914_v13 = vld [vmem:[#allocation5] sm:$0xff] }
 0xaed   : > { %v3419_v43 = vrot.slane %v3412_v16, %v6522_v41 }
 0xaee   : > { %v3437_v21 = vcombine.low %v3386_v24, %v3402_v18  ;;  %v3436_v23 = vrot.slane %v3429_v19, %v6522_v41 }
 0xaef   : > { %v3420_v22 = vcombine.low %v3411_v20, %v3419_v43 }
 0xaf0   : > { %v3444_v26 = vrot.slane %v3437_v21, %v6522_v41  ;;  %v2926_v21 = vshrl.u32 %v2914_v13, 16 }
 0xaf1   : > { %v3427_v56 = vrot.slane %v3420_v22, %v6535_v53 }
 0xaf2   : > { %v3445_v28 = vcombine.low %v3436_v23, %v3444_v26 }
 0xaf3   : > { %v3457_v33 = vshrl.u32 %v3427_v56, 16  ;;  %v3428_v44 = vcombine.high %v3427_v56, %v5937_v29 }
 0xaf4   : > { %v3452_v31 = vrot.slane %v3445_v28, %v6535_v53 }
 0xaf5   : > { %v3463_v50 = vshrl.u32 %v3428_v44, 16 }
 0xaf6   : > { %v3456_v32 = vpack.i.b16 %v3452_v31, %v3427_v56  ;;  %v3458_v35 = vshrl.u32 %v3452_v31, 16  ;;  %v3453_v40 = vcombine.high %v3452_v31, %v5937_v29 }
 0xaf8   : > { %5206 = vmatmul.mubr.msk.bf16.vlgmr.msra.gmra.mrb[8].mxu0 %vm1949_vm2, %v3456_v32  ;;  %v3459_v37 = vpack.i.b16 %v3458_v35, %v3457_v33  ;;  %v3464_v25 = vshrl.u32 %v3453_v40, 16  ;;  %v3462_v27 = vpack.i.b16 %v3453_v40, %v3428_v44 }
 0xaf9   : > { %5216 = vmatpush3.bf16.xpose.msra.mxu0 %v3568_v36  ;;  %5217 = vmatprep.mubr.msk.bf16.mxu0 %vm5932_vm1, %v5931_v8 }
 0xafa   : > { %5212 = vmatmul.mubr.msk.bf16.vlgmr.msra.gmra.mrb[36].mxu1 %vm1949_vm2, %v3459_v37  ;;  %5227 = vmatprep.subr.bf16.mxu0 %v5931_v8  ;;  %v3465_v45 = vpack.i.b16 %v3464_v25, %v3463_v50 }
 0xafb   : > { %5222 = vmatpush3.bf16.xpose.msra.mxu1 %v3614_v42  ;;  %5223 = vmatprep.mubr.msk.bf16.mxu1 %vm5932_vm1, %v5931_v8 }
 0xafc   : > { %5233 = vmatprep.subr.bf16.mxu1 %v5931_v8 }
 0xb00   : > { %5218 = vmatmul.mubr.msk.bf16.vlgmr.msra.gmra.mrb[12].mxu0 %vm1949_vm2, %v3462_v27 }
 0xb01   : > { %5229 = vmatprep.mubr.msk.bf16.mxu0 %vm5932_vm1, %v5931_v8 }
 0xb02   : > { %5224 = vmatmul.mubr.msk.bf16.vlgmr.msra.gmra.mrb[40].mxu1 %vm1949_vm2, %v3465_v45 }
 0xb03   : > { %5235 = vmatprep.mubr.msk.bf16.mxu1 %vm5932_vm1, %v5931_v8 }
 0xbcb   : > { %v3512_v54 = vpop.f32.mrb[8].mxu0 }
 0xbcc   : > { %v3513_v55 = vadd.f32 %v3512_v54, %v3470_v51  ;;  %v5207_v59 = vpop.f32.mrb[9].mxu0 }
 0xbcd   : > { %v3515_v60 = vpop.f32.mrb[10].mxu0  ;;  %v3558_v57 = vpop.f32.mrb[36].mxu1 }
 0xbce   : > { %v3559_v61 = vadd.f32 %v3558_v57, %v3470_v51  ;;  %v5208_v62 = vpop.f32.mrb[11].mxu0  ;;  %v5213_v63 = vpop.f32.mrb[37].mxu1  ;;  %v3656_v46 = vsel %vm2134_vm4, %v3513_v55, -inf }
 0xbcf   : > { %v3561_v17 = vpop.f32.mrb[38].mxu1  ;;  %3657 = vmax.xlane.f32.xlu0 %v3656_v46 }
 0xbd0   : > { %v5214_v47 = vpop.f32.mrb[39].mxu1  ;;  %v3659_v52 = vsel %vm2134_vm4, %v3559_v61, -inf }
 0xbd1   : > { %3660 = vmax.xlane.f32.xlu1 %v3659_v52 }
 0xbd3   : > { %v3604_v0 = vpop.f32.mrb[12].mxu0 }
 0xbd4   : > { %v3605_v1 = vadd.f32 %v3604_v0, %v3470_v51  ;;  %v5219_v58 = vpop.f32.mrb[13].mxu0 }
 0xbd5   : > { %v3607_v2 = vpop.f32.mrb[14].mxu0  ;;  %v3650_v3 = vpop.f32.mrb[40].mxu1 }
 0xbd6   : > { %v3651_v4 = vadd.f32 %v3650_v3, %v3470_v51  ;;  %v5220_v5 = vpop.f32.mrb[15].mxu0  ;;  %v5225_v6 = vpop.f32.mrb[41].mxu1  ;;  %v3662_v7 = vsel %vm2134_vm4, %v3605_v1, -inf }
 0xbd7   : > { %v3653_v9 = vpop.f32.mrb[42].mxu1  ;;  %3663 = vmax.xlane.f32.xlu0 %v3662_v7 }
 0xbd8   : > { %v5226_v11 = vpop.f32.mrb[43].mxu1  ;;  %v3665_v12 = vsel %vm2134_vm4, %v3651_v4, -inf }
 0xbdb   : > { %3666 = vmax.xlane.f32.xlu0 %v3665_v12 }
 0xbe2   : > { %2916 = vrot.lane.b32.xlu1 %v2914_v13, %s5933_s10 }
 0xbe6   : > { %2920 = vrot.lane.b32.xlu1 %v2914_v13, %s5934_s26 }
 0xbf1   : > { %2918 = vrot.lane.b32.xlu0 %v2914_v13, %s5935_s25 }
 0xc5c   : > { %v3658_v14 = vpop.xlane.xlu0 %3657 }
 0xc5d   : > { %v3668_v39 = vsub.f32 %v3513_v55, %v3658_v14 }
 0xc5e   : > { %v3661_v15 = vpop.xlane.xlu1 %3660 }
 0xc5f   : > { %v3672_v24 = vmul.f32 1.442695, %v3668_v39  ;;  %v3669_v16 = vsub.f32 %v3559_v61, %v3661_v15 }
 0xc61   : > { %5560 = vpow2.f32 %v3672_v24  ;;  %v3674_v18 = vmul.f32 1.442695, %v3669_v16 }
 0xc62   : > { %v2917_v19 = vpop.permute.xlu1 %2916 }
 0xc63   : > { %5562 = vpow2.f32 %v3674_v18  ;;  %v2927_v22 = vshrl.u32 %v2917_v19, 16  ;;  %v2924_v26 = vpack.i.b16 %v2917_v19, %v2914_v13 }
 0xc64   : > { %v3664_v20 = vpop.xlane.xlu0 %3663 }
 0xc65   : > { %v3670_v43 = vsub.f32 %v3605_v1, %v3664_v20  ;;  %v2928_v32 = vpack.i.b16 %v2927_v22, %v2926_v21  ;;  %v2938_v36 = vcombine.high %v2924_v26, %v6514_v30  ;;  %v2945_v25 = vrot.slane %v2924_v26, %v6522_v41 }
 0xc66   : > { %v2921_v56 = vpop.permute.xlu1 %2920 }
 0xc67   : > { %v3676_v23 = vmul.f32 1.442695, %v3670_v43  ;;  %v2935_v37 = vshrl.u32 %v2921_v56, 16  ;;  %v3004_v38 = vcombine.high %v2928_v32, %v6514_v30  ;;  %v2952_v48 = vrot.slane %v2938_v36, %v6522_v41 }
 0xc68   : > { %v3667_v28 = vpop.xlane.xlu0 %3666  ;;  %v3011_v59 = vrot.slane %v2928_v32, %v6522_v41 }
 0xc69   : > { %5564 = vpow2.f32 %v3676_v23  ;;  %v3671_v31 = vsub.f32 %v3651_v4, %v3667_v28  ;;  %v3018_v63 = vrot.slane %v3004_v38, %v6522_v41 }
 0xc6b   : > { %v6862_v33 = vpop.eup %5560  ;;  %v3678_v35 = vmul.f32 1.442695, %v3671_v31 }
 0xc6c   : > { %v3680_v40 = vsel %vm2134_vm4, %v6862_v33, 0.0  ;;  %v2919_v42 = vpop.permute.xlu0 %2918 }
 0xc6d   : > { %v6867_v44 = vpop.eup %5562  ;;  %5566 = vpow2.f32 %v3678_v35  ;;  %3681 = vadd.xlane.f32.xlu1 %v3680_v40  ;;  %v2932_v27 = vpack.i.b16 %v2921_v56, %v2919_v42  ;;  %v2934_v50 = vshrl.u32 %v2919_v42, 16 }
 0xc6e   : > { %v3683_v45 = vsel %vm2134_vm4, %v6867_v44, 0.0 }
 0xc6f   : > { %3684 = vadd.xlane.f32.xlu0 %v3683_v45  ;;  %v2936_v51 = vpack.i.b16 %v2935_v37, %v2934_v50  ;;  %v2953_v54 = vcombine.high %v2932_v27, %v6514_v30  ;;  %v2960_v55 = vrot.slane %v2932_v27, %v6522_v41 }
 0xc71   : > { %v2967_v60 = vrot.slane %v2953_v54, %v6522_v41  ;;  %v2968_v57 = vcombine.low %v2945_v25, %v2960_v55  ;;  %v2969_v61 = vcombine.high %v2945_v25, %v2960_v55  ;;  %v3019_v62 = vcombine.high %v2936_v51, %v6514_v30 }
 0xc72   : > { %v3026_v46 = vrot.slane %v2936_v51, %v6522_v41 }
 0xc73   : > { %v6881_v17 = vpop.eup %5564  ;;  %v2976_v47 = vrot.slane %v2968_v57, %v6535_v53  ;;  %v2983_v52 = vrot.slane %v2969_v61, %v6535_v53  ;;  %v2984_v0 = vcombine.low %v2952_v48, %v2967_v60  ;;  %v2985_v1 = vcombine.high %v2952_v48, %v2967_v60 }
 0xc74   : > { %v3686_v58 = vsel %vm2134_vm4, %v6881_v17, 0.0  ;;  %v3033_v2 = vrot.slane %v3019_v62, %v6522_v41  ;;  %v3034_v3 = vcombine.low %v3011_v59, %v3026_v46  ;;  %v3035_v4 = vcombine.high %v3011_v59, %v3026_v46 }
 0xc75   : > { %3687 = vadd.xlane.f32.xlu0 %v3686_v58  ;;  %v2992_v30 = vrot.slane %v2984_v0, %v6535_v53  ;;  %v2999_v5 = vrot.slane %v2985_v1, %v6535_v53  ;;  %v3070_v6 = vcombine.low %v2976_v47, %v2983_v52  ;;  %v4813_v7 = vcombine.high %v2976_v47, %v2983_v52 }
 0xc76   : > { %v3042_v9 = vrot.slane %v3034_v3, %v6535_v53  ;;  %v3049_v11 = vrot.slane %v3035_v4, %v6535_v53  ;;  %v3050_v12 = vcombine.low %v3018_v63, %v3033_v2  ;;  %v3051_v13 = vcombine.high %v3018_v63, %v3033_v2 }
 0xc77   : > { %v6892_v14 = vpop.eup %5566  ;;  %v3077_v39 = vrot.slane %v3070_v6, %v6522_v41  ;;  %v3085_v15 = vrot.slane %v4813_v7, %v6522_v41  ;;  %v3086_v24 = vcombine.low %v2992_v30, %v2999_v5  ;;  %v4814_v16 = vcombine.high %v2992_v30, %v2999_v5 }
 0xc78   : > { %v3689_v18 = vsel %vm2134_vm4, %v6892_v14, 0.0  ;;  %v3058_v19 = vrot.slane %v3050_v12, %v6535_v53  ;;  %v3065_v20 = vrot.slane %v3051_v13, %v6535_v53  ;;  %v3120_v43 = vcombine.low %v3042_v9, %v3049_v11  ;;  %v5494_v12 = vld [vmem:[#allocation14 + $0xc0] sm:$0xff]   ;;  %v5495_v13 = vld [vmem:[#allocation14 + $0xc8] sm:$0xff]  }
 0xc79   : > { %3690 = vadd.xlane.f32.xlu1 %v3689_v18  ;;  %v3093_v21 = vrot.slane %v3086_v24, %v6522_v41  ;;  %v3101_v22 = vrot.slane %v4814_v16, %v6522_v41  ;;  %v4815_v23 = vcombine.high %v3042_v9, %v3049_v11  ;;  %v3102_v26 = vcombine.low %v3077_v39, %v3085_v15  ;;  %v5498_v39 = vld [vmem:[#allocation14 + $0xe0] sm:$0xff]   ;;  %v5499_v15 = vld [vmem:[#allocation14 + $0xe8] sm:$0xff]  }
 0xc7a   : > { %v3127_v28 = vrot.slane %v3120_v43, %v6522_v41  ;;  %v3136_v56 = vcombine.low %v3058_v19, %v3065_v20  ;;  %v4816_v31 = vcombine.high %v3058_v19, %v3065_v20 }
 0xc7b   : > { %v3135_v32 = vrot.slane %v4815_v23, %v6522_v41  ;;  %v3109_v35 = vrot.slane %v3102_v26, %v6535_v53  ;;  %v3110_v36 = vcombine.low %v3093_v21, %v3101_v22 }
 0xc7c   : > { %v3143_v37 = vrot.slane %v3136_v56, %v6522_v41  ;;  %v3151_v40 = vrot.slane %v4816_v31, %v6522_v41 }
 0xc7d   : > { %v3117_v42 = vrot.slane %v3110_v36, %v6535_v53  ;;  %v3152_v25 = vcombine.low %v3127_v28, %v3135_v32 }
 0xc7e   : > { %v3160_v27 = vcombine.low %v3143_v37, %v3151_v40 }
 0xc7f   : > { %v3118_v50 = vcombine.low %v3109_v35, %v3117_v42  ;;  %v3159_v45 = vrot.slane %v3152_v25, %v6535_v53  ;;  %v3119_v38 = vcombine.high %v3109_v35, %v3117_v42 }
 0xc80   : > { %v3167_v48 = vrot.slane %v3160_v27, %v6535_v53 }
 0xc81   : > { %v3174_v54 = vshrl.u32 %v3118_v50, 16  ;;  %v3182_v59 = vshrl.u32 %v3119_v38, 16 }
 0xc82   : > { %v3168_v51 = vcombine.low %v3159_v45, %v3167_v48  ;;  %v3169_v55 = vcombine.high %v3159_v45, %v3167_v48 }
 0xc84   : > { %v3172_v60 = vpack.i.b16 %v3168_v51, %v3118_v50  ;;  %v3175_v57 = vshrl.u32 %v3168_v51, 16  ;;  %v3180_v61 = vpack.i.b16 %v3169_v55, %v3119_v38  ;;  %v3183_v62 = vshrl.u32 %v3169_v55, 16  ;;  %v5500_v55 = vld [vmem:[#allocation14 + $0xf0] sm:$0xff]  }
 0xc86   : > { %5228 = vmatpush3.bf16.msra.mxu0 %v3172_v60  ;;  %v3176_v63 = vpack.i.b16 %v3175_v57, %v3174_v54  ;;  %v3184_v46 = vpack.i.b16 %v3183_v62, %v3182_v59 }
 0xc87   : > { %5239 = vmatprep.subr.bf16.mxu0 %v5931_v8 }
 0xc88   : > { %5234 = vmatpush3.bf16.msra.mxu1 %v3176_v63 }
 0xc89   : > { %5245 = vmatprep.subr.bf16.mxu1 %v5931_v8 }
 0xcfa   : > { %v3682_v47 = vpop.xlane.xlu1 %3681 }
 0xcfb   : > { %5568 = vrcp.f32 %v3682_v47 }
 0xcfc   : > { %v3685_v52 = vpop.xlane.xlu0 %3684 }
 0xcfd   : > { %5570 = vrcp.f32 %v3685_v52  ;;  %v5501_v52 = vld [vmem:[#allocation14 + $0xf8] sm:$0xff]  }
 0xd02   : > { %v3688_v0 = vpop.xlane.xlu0 %3687 }
 0xd03   : > { %5572 = vrcp.f32 %v3688_v0 }
 0xd05   : > { %v5569_v1 = vpop.eup %5568 }
 0xd06   : > { %v3696_v58 = vmul.f32 %v5569_v1, %v6862_v33  ;;  %v3691_v2 = vpop.xlane.xlu1 %3690 }
 0xd07   : > { %v5571_v3 = vpop.eup %5570  ;;  %5574 = vrcp.f32 %v3691_v2 }
 0xd08   : > { %v3697_v4 = vmul.f32 %v5571_v3, %v6867_v44  ;;  %v3700_v30 = vpack.c.bf16 %v3696_v58, %v3696_v58 }
 0xd0a   : > { %5230 = vmatmul.mubr.msk.bf16.vlgmr.msra.gmra.mrb[16].mxu0 %vm2134_vm4, %v3700_v30  ;;  %v3701_v5 = vpack.c.bf16 %v3697_v4, %v3697_v4 }
 0xd0b   : > { %5240 = vmatpush3.bf16.msra.mxu0 %v3180_v61  ;;  %5241 = vmatprep.mubr.msk.bf16.mxu0 %vm5932_vm1, %v5931_v8 }
 0xd0c   : > { %5236 = vmatmul.mubr.msk.bf16.vlgmr.msra.gmra.mrb[44].mxu1 %vm2134_vm4, %v3701_v5  ;;  %5251 = vmatprep.subr.bf16.mxu0 %v5931_v8 }
 0xd0d   : > { %v5573_v6 = vpop.eup %5572  ;;  %5246 = vmatpush3.bf16.msra.mxu1 %v3184_v46  ;;  %5247 = vmatprep.mubr.msk.bf16.mxu1 %vm5932_vm1, %v5931_v8 }
 0xd0e   : > { %v3698_v33 = vmul.f32 %v5573_v6, %v6881_v17  ;;  %v5496_v17 = vld [vmem:[#allocation14 + $0xd0] sm:$0xff]  }
 0xd10   : > { %v3702_v44 = vpack.c.bf16 %v3698_v33, %v3698_v33 }
 0xd11   : > { %v5575_v7 = vpop.eup %5574 }
 0xd12   : > { %v3699_v9 = vmul.f32 %v5575_v7, %v6892_v14  ;;  %5242 = vmatmul.mubr.msk.bf16.vlgmr.msra.gmra.mrb[20].mxu0 %vm2134_vm4, %v3702_v44  ;;  %v5497_v14 = vld [vmem:[#allocation14 + $0xd8] sm:$0xff]  }
 0xd13   : > { %5267 = vmatprep.mubr.msk.bf16.mxu0 %vm5932_vm1, %v5931_v8  ;;  %5252 = vmatpush3.bf16.msra.mxu0 %v5494_v12 }
 0xd14   : > { %v3703_v11 = vpack.c.bf16 %v3699_v9, %v3699_v9  ;;  %5253 = vmatprep.subr.bf16.mxu0 %v5931_v8 }
 0xd16   : > { %5248 = vmatmul.mubr.msk.bf16.vlgmr.msra.gmra.mrb[48].mxu1 %vm2134_vm4, %v3703_v11 }
 0xd17   : > { %4303 = vmatprep.mubr.bf16.mxu1 %v5937_v29  ;;  %5254 = vmatpush3.bf16.msra.mxu0 %v5495_v13 }
 0xd18   : > { %5255 = vmatprep.subr.bf16.mxu0 %v5931_v8 }
 0xd1b   : > { %5256 = vmatpush3.bf16.msra.mxu0 %v5496_v17 }
 0xd1c   : > { %5257 = vmatprep.subr.bf16.mxu0 %v5931_v8 }
 0xd1f   : > { %5258 = vmatpush3.bf16.msra.mxu0 %v5497_v14 }
 0xd20   : > { %5259 = vmatprep.subr.bf16.mxu0 %v5931_v8 }
 0xd23   : > { %5260 = vmatpush3.bf16.msra.mxu0 %v5498_v39 }
 0xd24   : > { %5261 = vmatprep.subr.bf16.mxu0 %v5931_v8 }
 0xd27   : > { %5262 = vmatpush3.bf16.msra.mxu0 %v5499_v15 }
 0xd28   : > { %5263 = vmatprep.subr.bf16.mxu0 %v5931_v8 }
 0xd2b   : > { %5264 = vmatpush3.bf16.msra.mxu0 %v5500_v55  ;;  %v5528_v55 = vld [vmem:[#allocation17 + $0x48] sm:$0xff]  }
 0xd2c   : > { %5265 = vmatprep.subr.bf16.mxu0 %v5931_v8 }
 0xd2f   : > { %5266 = vmatpush3.bf16.msra.mxu0 %v5501_v52  ;;  %v5537_v52 = vld [vmem:[#allocation17 + $0x28] sm:$0xff]  }
 0xddd   : > { %v3741_v29 = vpop.f32.mrb[16].mxu0 }
 0xdde   : > { %v5231_v24 = vpop.f32.mrb[17].mxu0 }
 0xddf   : > { %v3744_v16 = vpop.f32.mrb[18].mxu0  ;;  %v3784_v18 = vpop.f32.mrb[44].mxu1 }
 0xde0   : > { %v5232_v19 = vpop.f32.mrb[19].mxu0  ;;  %v5237_v20 = vpop.f32.mrb[45].mxu1 }
 0xde1   : > { %v3787_v43 = vpop.f32.mrb[46].mxu1 }
 0xde2   : > { %v5238_v21 = vpop.f32.mrb[47].mxu1 }
 0xde3   : > { %v5502_v21 = vld [vmem:[#allocation15] ss:$8 sps:$4 sm:$0xff]  }
 0xde5   : > { %v3827_v22 = vpop.f32.mrb[20].mxu0 }
 0xde6   : > { %v3876_v23 = vcombine.low %v3741_v29, %v3827_v22  ;;  %v3877_v26 = vcombine.high %v3741_v29, %v3827_v22  ;;  %v5243_v28 = vpop.f32.mrb[21].mxu0  ;;  %v4836_v29 = vld [vmem:[%s7190_s15 + $0x3] ss:$0 sm:$0xff]  ;;  %v5504_v22 = vld [vmem:[#allocation15 + $0x4] ss:$8 sps:$4 sm:$0xff]   ;;  %s7194_s15 = sld [smem:[#allocation28_spill]] }
 0xde7   : > { %v3830_v56 = vpop.f32.mrb[22].mxu0  ;;  %4271 = vmatprep.subr.bf16.mxu1 %v5504_v22  ;;  %v5510_v28 = vld [vmem:[#allocation15 + $0x24] ss:$8 sps:$4 sm:$0xff]  }
 0xde8   : > { %v5244_v31 = vpop.f32.mrb[23].mxu0  ;;  %v3884_v42 = vrot.slane %v3876_v23, %v6522_v41  ;;  %v3891_v25 = vrot.slane %v3877_v26, %v6522_v41  ;;  %v5507_v23 = vld [vmem:[#allocation15 + $0x14] ss:$8 sps:$4 sm:$0xff]   ;;  %4272 = vmatpush1.bf16.msra.mxu1 %v5502_v21  ;;  %v5505_v26 = vld [vmem:[#allocation15 + $0x10] ss:$8 sps:$4 sm:$0xff]  }
 0xde9   : > { %v3870_v32 = vpop.f32.mrb[48].mxu1  ;;  %4273 = vmatprep.subr.bf16.mxu1 %v5507_v23  ;;  %v5508_v56 = vld [vmem:[#allocation15 + $0x20] ss:$8 sps:$4 sm:$0xff]  }
 0xdea   : > { %v3892_v35 = vcombine.low %v3784_v18, %v3870_v32  ;;  %v3893_v36 = vcombine.high %v3784_v18, %v3870_v32  ;;  %v5249_v37 = vpop.f32.mrb[49].mxu1 }
 0xdeb   : > { %v3873_v40 = vpop.f32.mrb[50].mxu1  ;;  %v5513_v37 = vld [vmem:[#allocation15 + $0x34] ss:$8 sps:$4 sm:$0xff]  }
 0xdec   : > { %v3900_v27 = vrot.slane %v3892_v35, %v6522_v41  ;;  %v3907_v50 = vrot.slane %v3893_v36, %v6522_v41  ;;  %v5250_v45 = vpop.f32.mrb[51].mxu1  ;;  %4274 = vmatpush1.bf16.msra.mxu1 %v5505_v26  ;;  %v5516_v40 = vld [vmem:[#allocation15 + $0x44] ss:$8 sps:$4 sm:$0xff]   ;;  %s4883_s5 = sshll.u32 %s7194_s15, 1 }
 0xded   : > { %4275 = vmatprep.subr.bf16.mxu1 %v5510_v28  ;;  %v5520_v45 = vld [vmem:[#allocation15 + $0x60] ss:$8 sps:$4 sm:$0xff]   ;;  %s4528_s16 = sadd.s32 %s7187_s12, %s4883_s5  ;;  %s4517_s12 = scalar_lea.sflag [#allocation8], %s6389_s9 }
 0xdee   : > { %v3908_v38 = vcombine.low %v3884_v42, %v3900_v27  ;;  %v3909_v48 = vcombine.high %v3884_v42, %v3900_v27  ;;  %v3924_v51 = vcombine.low %v3891_v25, %v3907_v50  ;;  %v3925_v54 = vcombine.high %v3891_v25, %v3907_v50  ;;  %v5514_v42 = vld [vmem:[#allocation15 + $0x40] ss:$8 sps:$4 sm:$0xff]   ;;  %v5519_v25 = vld [vmem:[#allocation15 + $0x54] ss:$8 sps:$4 sm:$0xff]   ;;  %v5517_v27 = vld [vmem:[#allocation15 + $0x50] ss:$8 sps:$4 sm:$0xff]  }
 0xdef   : > { %v5522_v50 = vld [vmem:[#allocation15 + $0x64] ss:$8 sps:$4 sm:$0xff]  }
 0xdf0   : > { %v3916_v59 = vrot.slane %v3908_v38, %v6535_v53  ;;  %v3923_v60 = vrot.slane %v3909_v48, %v6535_v53  ;;  %v3932_v57 = vrot.slane %v3924_v51, %v6535_v53  ;;  %v3939_v61 = vrot.slane %v3925_v54, %v6535_v53  ;;  %4276 = vmatpush1.bf16.msra.mxu1 %v5508_v56  ;;  %v5525_v38 = vld [vmem:[#allocation15 + $0x74] ss:$8 sps:$4 sm:$0xff]   ;;  %v5523_v48 = vld [vmem:[#allocation15 + $0x70] ss:$8 sps:$4 sm:$0xff]   ;;  %v5526_v51 = vld [vmem:[#allocation17 + $0x40] sm:$0xff]  }
 0xdf1   : > { %4277 = vmatprep.subr.bf16.mxu1 %v5513_v37  ;;  %v5527_v54 = vld [vmem:[#allocation17] sm:$0xff]   ;;  %4993 = vmatprep.subr.bf16.mxu0 %v5526_v51 }
 0xdf2   : > { %v3944_v62 = vcombine.low %v3916_v59, %v3923_v60  ;;  %v4834_v63 = vcombine.high %v3916_v59, %v3923_v60  ;;  %v3960_v46 = vcombine.low %v3932_v57, %v3939_v61  ;;  %v4835_v47 = vcombine.high %v3932_v57, %v3939_v61  ;;  %v5529_v59 = vld [vmem:[#allocation17 + $0x8] sm:$0xff]   ;;  %v5530_v60 = vld [vmem:[#allocation17 + $0x50] sm:$0xff]   ;;  %v5532_v61 = vld [vmem:[#allocation17 + $0x58] sm:$0xff]  }
 0xdf3   : > { %v5531_v57 = vld [vmem:[#allocation17 + $0x10] sm:$0xff]  }
 0xdf4   : > { %v3951_v0 = vrot.slane %v3944_v62, %v6522_v41  ;;  %v3959_v1 = vrot.slane %v4834_v63, %v6522_v41  ;;  %v3967_v58 = vrot.slane %v3960_v46, %v6522_v41  ;;  %v3975_v2 = vrot.slane %v4835_v47, %v6522_v41  ;;  %v5533_v62 = vld [vmem:[#allocation17 + $0x18] sm:$0xff]   ;;  %v5534_v63 = vld [vmem:[#allocation17 + $0x60] sm:$0xff]   ;;  %v5536_v47 = vld [vmem:[#allocation17 + $0x68] sm:$0xff]  }
 0xdf5   : > { %v5535_v46 = vld [vmem:[#allocation17 + $0x20] sm:$0xff]  }
 0xdf6   : > { %v3977_v3 = vcombine.high %v3951_v0, %v3959_v1  ;;  %v3993_v4 = vcombine.high %v3967_v58, %v3975_v2  ;;  %v3976_v30 = vcombine.low %v3951_v0, %v3959_v1  ;;  %v3992_v5 = vcombine.low %v3967_v58, %v3975_v2 }
 0xdf8   : > { %v3991_v8 = vrot.slane %v3977_v3, %v6535_v53  ;;  %v4007_v6 = vrot.slane %v3993_v4, %v6535_v53  ;;  %v3984_v33 = vrot.slane %v3976_v30, %v6535_v53  ;;  %v4000_v44 = vrot.slane %v3992_v5, %v6535_v53  ;;  %v4845_v3 = vld [vmem:[%s7188_s3 + $0x1] ss:$0 sm:$0xff] }
 0xdf9   : > { %v4846_v30 = vld [vmem:[%s7189_s6 + $0x1] ss:$0 sm:$0xff] }
 0xdfa   : > { %v4010_v7 = vcombine.low %v3991_v8, %v4007_v6  ;;  %v4009_v9 = vcombine.high %v3984_v33, %v4000_v44  ;;  %v4011_v11 = vcombine.high %v3991_v8, %v4007_v6  ;;  %v4008_v12 = vcombine.low %v3984_v33, %v4000_v44  ;;  %v5538_v33 = vld [vmem:[#allocation17 + $0x70] sm:$0xff]  }
 0xdfb   : > { %v5539_v44 = vld [vmem:[#allocation17 + $0x30] sm:$0xff]  }
 0xdfc   : > { %4017 = vrot.lane.b32.xlu1 %v4010_v7, %s5935_s25  ;;  %4013 = vrot.lane.b32.xlu0 %v4009_v9, %s5934_s26  ;;  %v5540_v7 = vld [vmem:[#allocation17 + $0x78] sm:$0xff]   ;;  %s4884_s25 = sshll.u32 %s4528_s16, 7 }
 0xdfd   : > { %v5541_v9 = vld [vmem:[#allocation17 + $0x38] sm:$0xff]  }
 0xe00   : > { %4021 = vrot.lane.b32.xlu1 %v4011_v11, %s5933_s10  ;;  %v4179_v11 = vld [vmem:[%s7192_s27] sm:$0x3]  ;;  %s7196_s27 = sld [smem:[#allocation49_spill]] }
 0xe06   : > { %s6988_s30 = scalar_lea.hbm %s7196_s27, %s4884_s25 }
 0xe6e   : > { %v4018_v41 = vpop.permute.xlu1 %4017  ;;  %v4014_v13 = vpop.permute.xlu0 %4013 }
 0xe6f   : > { %v4024_v17 = vsel %vm1949_vm2, %v4008_v12, %v4014_v13  ;;  %v4187_v12 = vsub.s32 1, %v6517_v34 }
 0xe70   : > { %v4025_v39 = vsel %vm2504_vm5, %v4024_v17, %v4018_v41  ;;  %v4184_v41 = vrot.slane %v4179_v11, %v3469_v49 }
 0xe71   : > { %v4188_v13 = vrot.slane %v4179_v11, %v4187_v12 }
 0xe72   : > { %v4022_v14 = vpop.permute.xlu1 %4021 }
 0xe73   : > { %v4026_v15 = vsel %vm2506_vm6, %v4025_v39, %v4022_v14 }
 0xe74   : > { %v4027_v53 = vpack.c.bf16 %v4026_v15, %v4026_v15 }
 0xe76   : > { %5268 = vmatmul.mubr.bf16.vlgmr.msra.gmra.mrb[24].mxu0 %v4027_v53 }
 0xe77   : > { %4994 = vmatpush3.bf16.msra.mxu0 %v5527_v54 }
 0xe78   : > { %4995 = vmatprep.subr.bf16.mxu0 %v5528_v55 }
 0xe7b   : > { %4996 = vmatpush3.bf16.msra.mxu0 %v5529_v59 }
 0xe7c   : > { %4997 = vmatprep.subr.bf16.mxu0 %v5530_v60 }
 0xe7f   : > { %4998 = vmatpush3.bf16.msra.mxu0 %v5531_v57 }
 0xe80   : > { %4999 = vmatprep.subr.bf16.mxu0 %v5532_v61 }
 0xe83   : > { %5000 = vmatpush3.bf16.msra.mxu0 %v5533_v62 }
 0xe84   : > { %5001 = vmatprep.subr.bf16.mxu0 %v5534_v63 }
 0xe87   : > { %5002 = vmatpush3.bf16.msra.mxu0 %v5535_v46 }
 0xe88   : > { %5003 = vmatprep.subr.bf16.mxu0 %v5536_v47 }
 0xe8b   : > { %5004 = vmatpush3.bf16.msra.mxu0 %v5537_v52 }
 0xe8c   : > { %5005 = vmatprep.subr.bf16.mxu0 %v5538_v33 }
 0xe8f   : > { %5006 = vmatpush3.bf16.msra.mxu0 %v5539_v44 }
 0xe90   : > { %5007 = vmatprep.subr.bf16.mxu0 %v5540_v7 }
 0xe93   : > { %5008 = vmatpush3.bf16.msra.mxu0 %v5541_v9 }
 0xf49   : > { %v4132_v24 = vpop.f32.mrb[24].mxu0 }
 0xf4a   : > { %v4133_v16 = vadd.f32 %v4836_v29, %v4132_v24  ;;  %v5269_v18 = vpop.f32.mrb[25].mxu0 }
 0xf4b   : > { %v4135_v19 = vpop.f32.mrb[26].mxu0 }
 0xf4c   : > { %v5270_v20 = vpop.f32.mrb[27].mxu0  ;;  %v4138_v43 = vadd.f32 %v4133_v16, %v6749_v10  ;;  %v5511_v10 = vld [vmem:[#allocation15 + $0x30] ss:$8 sps:$4 sm:$0xff]  }
 0xf4d   : > { %4278 = vmatpush1.bf16.msra.mxu1 %v5511_v10 }
 0xf4e   : > { %4141 = vadd.xlane.f32.xlu0 %v4138_v43  ;;  %4279 = vmatprep.subr.bf16.mxu1 %v5516_v40  ;;  %v4880_v40 = vld [vmem:[%s7188_s3 + $0x2] ss:$0 sm:$0xff] }
 0xf51   : > { %4280 = vmatpush1.bf16.msra.mxu1 %v5514_v42 }
 0xf52   : > { %4281 = vmatprep.subr.bf16.mxu1 %v5519_v25  ;;  %v4881_v25 = vld [vmem:[%s7189_s6 + $0x2] ss:$0 sm:$0xff] }
 0xf55   : > { %4282 = vmatpush1.bf16.msra.mxu1 %v5517_v27 }
 0xf56   : > { %4283 = vmatprep.subr.bf16.mxu1 %v5522_v50 }
 0xf59   : > { %4284 = vmatpush1.bf16.msra.mxu1 %v5520_v45 }
 0xf5a   : > { %4285 = vmatprep.subr.bf16.mxu1 %v5525_v38 }
 0xf5d   : > { %4286 = vmatpush1.bf16.msra.mxu1 %v5523_v48 }
 0xfdb   : > { %v4142_v31 = vpop.xlane.xlu0 %4141 }
 0xfdc   : > { %v4143_v32 = vmul.f32 0.0078125, %v4142_v31 }
 0xfde   : > { %v4144_v35 = vsub.f32 %v4138_v43, %v4143_v32  ;;  %v4863_v43 = vld [vmem:[%s7193_s19] ss:$0 sm:$0xff]  ;;  %s5939_s19 = smov [#allocation18]  }
 0xfdf   : > { %s5786_s15 = sshll.u32 %s5939_s19, 4  ;;  %s5787_s15 = int_to_ptr.vmem [resolvable:$false] %s5786_s15 }
 0xfe0   : > { %v4145_v36 = vmul.f32 %v4144_v35, %v4144_v35  ;;  %s5788_s5 = scalar_lea.vmem %s5787_s15, 256  ;;  %p5789_p7 = scmp.lt.s32.totalorder %s6990_s13, %s5787_s15 }
 0xfe1   : > { %p5790_p10 = scmp.lt.s32.totalorder %s5788_s5, %s5782_s1 }
 0xfe2   : > { %4146 = vadd.xlane.f32.xlu1 %v4145_v36 }
 0xfe3   : > { %p5791_p13 = por %p5790_p10, %p5789_p7 }
 0xfe5   : > { %p5792_p12 = pnand %p5791_p13, %p5785_p5 }
0x106f   : > { %v4147_v0 = vpop.xlane.xlu1 %4146 }
0x1070   : > { %v4148_v1 = vmul.f32 0.0078125, %v4147_v0 }
0x1072   : > { %v4149_v58 = vadd.f32 1e-06, %v4148_v1 }
0x1074   : > { %5576 = vrsqrt.f32 %v4149_v58 }
0x107e   : > { %v5577_v2 = vpop.eup %5576 }
0x107f   : > { %v4151_v4 = vmul.f32 %v5577_v2, %v4144_v35 }
0x1081   : > { %v4156_v5 = vmul.f32 %v4845_v3, %v4151_v4 }
0x1083   : > { %v4161_v8 = vadd.f32 %v4846_v30, %v4156_v5 }
0x1085   : > { %v4162_v6 = vpack.c.bf16 %v4161_v8, %v4161_v8 }
0x1087   : > { %4304 = vmatmul.mubr.bf16.vlgmr.msra.gmra.mrb[52].mxu1 %v4162_v6 }
0x115a   : > { %v4305_v17 = vpop.f32.mrb[52].mxu1 }
0x115b   : > { %v4306_v14 = vadd.f32 %v4305_v17, %v4184_v41  ;;  %v4307_v39 = vpop.f32.mrb[53].mxu1 }
0x115c   : > { %v4308_v15 = vadd.f32 %v4307_v39, %v4188_v13  ;;  %v4309_v53 = vpop.f32.mrb[54].mxu1 }
0x115d   : > { %v4312_v29 = vmax.f32 %v4306_v14, 0.0  ;;  %v4310_v24 = vpop.f32.mrb[55].mxu1 }
0x115e   : > { %v4313_v16 = vmax.f32 %v4308_v15, 0.0 }
0x115f   : > { %v4314_v19 = vpack.c.bf16 %v4312_v29, %v4312_v29 }
0x1160   : > { %v4315_v18 = vpack.c.bf16 %v4313_v16, %v4313_v16 }
0x1162   : > { %4483 = vmatprep.mubr.bf16.mxu0 %v4315_v18 }
0x1163   : > { %4484 = vmatmul.mubr.bf16.vlgmr.msra.gmra.mrb[28].mxu0 %v4314_v19 }
0x1236   : > { %v5009_v20 = vpop.f32.mrb[28].mxu0 }
0x1237   : > { %v5010_v34 = vpop.f32.mrb[29].mxu0 }
0x1238   : > { %v5011_v49 = vadd.f32 %v5010_v34, %v5009_v20  ;;  %v5012_v21 = vpop.f32.mrb[30].mxu0 }
0x1239   : > { %v5013_v22 = vpop.f32.mrb[31].mxu0 }
0x123a   : > { %v4486_v23 = vadd.f32 %v5011_v49, %v4863_v43 }
0x123c   : > { %v4491_v26 = vadd.f32 %v4486_v23, %v4161_v8 }
0x123e   : > { %4494 = vadd.xlane.f32.xlu0 %v4491_v26 }
0x12cb   : > { %v4495_v28 = vpop.xlane.xlu0 %4494 }
0x12cc   : > { %v4496_v56 = vmul.f32 0.0078125, %v4495_v28 }
0x12ce   : > { %v4497_v31 = vsub.f32 %v4491_v26, %v4496_v56 }
0x12d0   : > { %v4498_v32 = vmul.f32 %v4497_v31, %v4497_v31 }
0x12d2   : > { %4499 = vadd.xlane.f32.xlu0 %v4498_v32 }
0x135f   : > { %v4500_v35 = vpop.xlane.xlu0 %4499 }
0x1360   : > { %v4501_v36 = vmul.f32 0.0078125, %v4500_v35 }
0x1362   : > { %v4502_v37 = vadd.f32 1e-06, %v4501_v36 }
0x1364   : > { %5578 = vrsqrt.f32 %v4502_v37 }
0x136e   : > { %v5579_v10 = vpop.eup %5578 }
0x136f   : > { %v4504_v42 = vmul.f32 %v5579_v10, %v4497_v31 }
0x1371   : > { %v4509_v27 = vmul.f32 %v4880_v40, %v4504_v42 }
0x1373   : > { %v4514_v50 = vadd.f32 %v4881_v25, %v4509_v27 }
0x1375   : > { %4515 = vst [vmem:[%s6425_s14] sm:$0xff] %v4514_v50 }
0x1376   : > { %5795 = shalt.err (!%p5792_p12)
}
0x1377   : > { %s5796_s9 = scalar_lea.hbm %s6988_s30, 128  ;;  %s5800_s8 = scalar_lea.hbm %s7196_s27, 512 }
0x1378   : > { %p5797_p0 = scmp.ne.s32.totalorder %s6988_s30, %s5796_s9  ;;  %p5801_p11 = scmp.lt.u32.totalorder %s6988_s30, %s7196_s27 }
0x1379   : > { %p5802_p2 = scmp.lt.u32.totalorder %s5800_s8, %s5796_s9  ;;  %p5804_p6 = scmp.lt.u32.totalorder %s5796_s9, %s6988_s30 }
0x137a   : > { %p5798_p1 = pnand %p5797_p0, %p7197_p4 }
0x137b   : > { %p5803_p3 = por %p5802_p2, %p5801_p11 }
0x137c   : > { %p5799_p8 = pneg %p5798_p1 }
0x137d   : > { %p5805_p9 = por %p5804_p6, %p5803_p3 }
0x137f   : > { %p5806_p5 = pnand %p5805_p9, %p5799_p8 }
0x1381   : > { %5809 = shalt.err (!%p5806_p5)
}
0x1382   : > { %5293 = dma.vmem_to_hbm [thread:$0]  (%p7197_p4), %s6990_s13, 128, %s6988_s30, %s4517_s12  }
0x1383 PF: > { %s7198_s26 = sld [smem:[#allocation26_spill]]  ;;  %p5331_p7 = scmp.ge.s32.totalorder %s5916_s23, 2 }
0x1384   : > { %p7199_p10 = scmp.ne.s32.totalorder %s7163_s4, 0 }
0x1386   : > { %p5319_p13 = pnand %p5331_p7, %p7199_p10 }
0x1389   : > { %s4544_s25 = sand.u32 1, %s7198_s26  }
0x138a   : > { %s4545_s7 = scalar_lea.sflag [#allocation8], %s4544_s25 }
0x138b   : > { %5871 = dma.done.wait (!%p5319_p13), %s4545_s7, 128  }
0x138c   : > { %5873 = vsyncadd (!%p5319_p13), %s4545_s7, 4294967168  ;;  %s35_s23 = sadd.s32 1, %s5916_s23   ;;  %s7200_s24 = sld [smem:[#allocation24_spill]] }
0x138d   : > { %p32_p12 = scmp.ge.s32.totalorder %s35_s23, 6   ;;  %s7201_s30 = sld [smem:[#allocation25_spill]] }
0x138e   : > { %s7202_s20 = smov %s6311_s29  ;;  %s7203_s13 = sld [smem:[#allocation33_spill]] }
0x138f   : > { %s7204_s12 = sld [smem:[#allocation34_spill]]  ;;  %s7206_s15 = smov %s7221_s28 }
0x1390   : > { %s7207_s16 = smov %s5892_s17  ;;  %s7208_s17 = smov %s5896_s18 }
0x1391   : > { %s7209_s18 = smov %s7202_s20  ;;  %s7210_s19 = smov %s5908_s21 }
0x1392   : > { %s7205_s29 = smov %s7200_s24  ;;  %s7211_s20 = smov %s5912_s22 }
0x1393   :  { %34 = sbr.rel (!%p32_p12) target bundleno = 28 (0x1c), region = 174 }
0x1394   : > { %s7212_s21 = smov %s7203_s13 }
0x1395   : > { %s7213_s22 = smov %s7204_s12 }
0x139a   :  { %4550 = vsyncpa [#allocation7], 1 }
0x139b   :  { %4552 = vsyncpa [#allocation7 + $0x1], 1 }
0x139c   :  { %4553 = vsyncpa [#allocation10], 1 }
0x139d   :  { %4555 = vsyncpa [#allocation10 + $0x1], 1 }
0x139e   :  { %4556 = vsyncpa [#allocation13], 1 }
0x139f   :  { %4557 = vsyncpa [#allocation16], 1 }
0x13a0   :  { %4558 = vsyncpa [#allocation8], 1 }
0x13a1   :  { %4560 = vsyncpa [#allocation8 + $0x1], 1 }

</bundles_post_ra>
